<compile_context>
chip_gen: v6e
topology: v6e:2x2x1
jax: 0.10.0
libtpu: 0.0.40
codegen_flags: <defaults>
</compile_context>

<pallas_src>
import functools
import math

import jax
import jax.numpy as jnp
from jax.experimental import pallas as pl
from jax.experimental.pallas import tpu as pltpu


def _round_up(x, m):
    return (x + m - 1) // m * m


def _full_spec(a):
    return pl.BlockSpec(a.shape, lambda *_: (0,) * a.ndim)


# ----------------------------- GEMM-chain kernel ----------------------------

def _linear_chain_kernel(*refs, acts):
    """y = act_n(...act_1(x @ W1 + b1)... @ Wn + bn), all resident in VMEM."""
    x_ref, o_ref = refs[0], refs[-1]
    wb_refs = refs[1:-1]
    h = x_ref[...]
    for i, act in enumerate(acts):
        w = wb_refs[2 * i][...]                       # bf16 (K_i, N_i)
        b = wb_refs[2 * i + 1][...]                   # f32  (1, N_i)
        h = jnp.dot(h.astype(w.dtype), w,
                    preferred_element_type=jnp.float32) + b
        if act == "relu":
            h = jnp.maximum(h, 0.0)
    o_ref[...] = h.astype(o_ref.dtype)


def linear_chain_pallas(x, layers, acts, out_dtype=jnp.float32):
    """Fused chain of linears. x:(M,K); layers: [(W(K_i,N_i) bf16, b(1,N_i) f32)]."""
    assert len(layers) == len(acts)
    M, K = x.shape
    N = layers[-1][0].shape[1]
    TM = _round_up(M, 16)
    if TM > 1024:          # review: 512-1024 row tiles amortize per-step overhead
        TM = 1024
    M_pad = _round_up(M, TM)
    if M_pad != M:
        x = jnp.pad(x, ((0, M_pad - M), (0, 0)))
    flat_args = [x]
    in_specs = [pl.BlockSpec((TM, K), lambda i: (i, 0))]
    for w, b in layers:
        flat_args += [w, b]
        in_specs += [pl.BlockSpec(w.shape, lambda i: (0, 0)),
                     pl.BlockSpec(b.shape, lambda i: (0, 0))]
    out = pl.pallas_call(
        functools.partial(_linear_chain_kernel, acts=tuple(acts)),
        out_shape=jax.ShapeDtypeStruct((M_pad, N), out_dtype),
        grid=(M_pad // TM,),
        in_specs=in_specs,
        out_specs=pl.BlockSpec((TM, N), lambda i: (i, 0)),
        compiler_params=pltpu.CompilerParams(dimension_semantics=("parallel",)),
    )(*flat_args)
    return out[:M] if M_pad != M else out


# ------------------ fused token-LN + transformer stack + pool/proj ----------

def _ln_rows(x, g, b, eps):
    mu = jnp.mean(x, axis=-1, keepdims=True)
    xc = x - mu
    var = jnp.mean(xc * xc, axis=-1, keepdims=True)
    return xc * jax.lax.rsqrt(var + eps) * g + b


def _transformer_stack_kernel(*refs, nheads, BB, token_norm, max_pool,
                              per_modal, eps):
    """token_ln + N post-norm TransformerEncoderLayers (relu, dropout=0)
    + mean/max token pooling + final relu projection, fully resident in VMEM.
    Processes BB batch elements per grid step (unrolled)."""
    n_layers = len(nheads)
    pos = 0
    tok_ref = refs[pos]; pos += 1
    if token_norm:
        tln_g_ref, tln_b_ref = refs[pos], refs[pos + 1]; pos += 2
    layer_refs = [refs[pos + 12 * l: pos + 12 * (l + 1)] for l in range(n_layers)]
    pos += 12 * n_layers
    wout_ref, bout_ref = refs[pos], refs[pos + 1]; pos += 2
    o_ref = refs[pos]; pos += 1
    ctx_ref, pooled_ref = refs[pos], refs[pos + 1]

    D = tok_ref.shape[-1]
    cdt = layer_refs[0][0].dtype                       # bf16 MXU input dtype

    for b in range(BB):                                # unrolled, BB is tiny/static
        x = tok_ref[b]                                 # (S, D) f32
        if token_norm:
            x = _ln_rows(x, tln_g_ref[...], tln_b_ref[...], eps)

        for lrefs, nhead in zip(layer_refs, nheads):
            (in_w, in_b, wo, bo, g1, b1,
             wf1, bf1, wf2, bf2, g2, b2) = lrefs
            hd = D // nhead
            # Fused QKV projection (softmax scale already folded into Q cols).
            qkv = jnp.dot(x.astype(cdt), in_w[...],
                          preferred_element_type=jnp.float32) + in_b[...]
            qkvb = qkv.astype(cdt)                     # single f32->bf16 pass
            for h in range(nhead):                     # heads are tiny; unrolled
                q = qkvb[:, h * hd:(h + 1) * hd]
                k = qkvb[:, D + h * hd:D + (h + 1) * hd]
                v = qkvb[:, 2 * D + h * hd:2 * D + (h + 1) * hd]
                s = jax.lax.dot_general(q, k, (((1,), (1,)), ((), ())),
                                        preferred_element_type=jnp.float32)
                m = jnp.max(s, axis=-1, keepdims=True)           # softmax in f32
                p = jnp.exp(s - m)
                p = p * pl.reciprocal(jnp.sum(p, axis=-1, keepdims=True),
                                      approx=True)
                ctx_ref[:, h * hd:(h + 1) * hd] = jnp.dot(
                    p.astype(cdt), v, preferred_element_type=jnp.float32)
            # Merged out-projection: single (S,D)x(D,D) GEMM over all heads.
            attn = jnp.dot(ctx_ref[...].astype(cdt), wo[...],
                           preferred_element_type=jnp.float32) + bo[...]
            y = _ln_rows(x + attn, g1[...], b1[...], eps)        # LN1
            ff = jnp.dot(y.astype(cdt), wf1[...],
                         preferred_element_type=jnp.float32) + bf1[...]
            ff = jnp.maximum(ff, 0.0)
            ff = jnp.dot(ff.astype(cdt), wf2[...],
                         preferred_element_type=jnp.float32) + bf2[...]
            x = _ln_rows(y + ff, g2[...], b2[...], eps)          # LN2

        # Pool epilogue: row 0 = state token, rows 1..1+16 = visual tokens.
        state = x[0:1, :]
        vis = x[1:1 + per_modal, :]
        pooled = (jnp.max(vis, axis=0, keepdims=True) if max_pool
                  else jnp.mean(vis, axis=0, keepdims=True))
        pooled_ref[b:b + 1, :D] = state
        pooled_ref[b:b + 1, D:] = pooled

    # Final projection: ONE (BB, 2D) @ (2D, E) GEMM + relu.
    feats = pooled_ref[...]
    out = jnp.dot(feats.astype(cdt), wout_ref[...],
                  preferred_element_type=jnp.float32) + bout_ref[...]
    out = jnp.maximum(out, 0.0)
    for b in range(BB):
        o_ref[b] = out[b:b + 1, :]


def _per_step_batch(B):
    """One batch element per grid step only on multi-TensorCore parts (v7x);
    single-TC v5e/v6e process the whole batch in one grid step."""
    try:
        kind = jax.devices()[0].device_kind.lower()
    except Exception:
        kind = ""
    if "v7" in kind and B > 1:
        return 1
    return B if B <= 8 else 1


def transformer_stack_pallas(tokens, kp, cfg):
    B, S, D = tokens.shape
    E = kp["out_w"].shape[1]
    nheads = tuple(nh for nh, _ in cfg["transformer_params"])
    token_norm = cfg["token_norm"]
    BB = _per_step_batch(B)
    assert B % BB == 0

    weights = []
    if token_norm:
        weights += [kp["token_ln_g"], kp["token_ln_b"]]
    for lp in kp["layers"]:
        weights += [lp["in_w"], lp["in_b"], lp["out_w"], lp["out_b"],
                    lp["ln1_g"], lp["ln1_b"], lp["ff1_w"], lp["ff1_b"],
                    lp["ff2_w"], lp["ff2_b"], lp["ln2_g"], lp["ln2_b"]]
    weights += [kp["out_w"], kp["out_b"]]

    out = pl.pallas_call(
        functools.partial(_transformer_stack_kernel, nheads=nheads, BB=BB,
                          token_norm=token_norm, max_pool=cfg["max_pool"],
                          per_modal=16, eps=1e-5),
        out_shape=jax.ShapeDtypeStruct((B, 1, E), jnp.float32),
        grid=(B // BB,),
        in_specs=[pl.BlockSpec((BB, S, D), lambda i: (i, 0, 0))]
                 + [_full_spec(w) for w in weights],
        out_specs=pl.BlockSpec((BB, 1, E), lambda i: (i, 0, 0)),
        scratch_shapes=[pltpu.VMEM((S, D), jnp.float32),       # merged head ctx
                        pltpu.VMEM((BB, 2 * D), jnp.float32)], # pooled features
        compiler_params=pltpu.CompilerParams(dimension_semantics=("parallel",)),
    )(tokens.astype(jnp.float32), *weights)
    return out.reshape(B, E)


# ------------------------------- JAX glue ----------------------------------

def conv_rows(x, ksize, stride):
    """PyTorch-semantics valid-padding im2col (one XLA op).  x NCHW ->
    rows (B*Ho*Wo, C*KH*KW) with channel-major (c, kh, kw) feature ordering
    (== PyTorch weight.reshape(Co, Ci*KH*KW))."""
    patches = jax.lax.conv_general_dilated_patches(
        x, filter_shape=ksize, window_strides=(stride, stride), padding="VALID")
    B, K, Ho, Wo = patches.shape
    rows = patches.transpose(0, 2, 3, 1).reshape(B * Ho * Wo, K)
    return rows, (Ho, Wo)


def rows_to_nchw(rows, B, hw):
    Ho, Wo = hw
    Co = rows.shape[-1]
    return rows.reshape(B, Ho, Wo, Co).transpose(0, 3, 1, 2)


def loco_transformer_forward(x, kp, cfg):
    state_dim = cfg["state_dim"]
    in_channels = cfg["in_channels"]
    camera_num = cfg["camera_num"]
    td = cfg["token_dim"]
    wh = cfg["w"]

    state_x = x[..., :state_dim]
    visual_x = x[..., state_dim:]
    orig_state_shape = state_x.shape
    state_x = state_x.reshape(-1, state_dim).astype(jnp.float32)
    visual_x = visual_x.reshape(-1, in_channels * camera_num, wh, wh).astype(jnp.float32)
    B = state_x.shape[0]

    # ---- LocoTransformerBaseEncoder (camera_num == 1 path) ----
    # TODO(synk): camera_num == 2 (second camera tower) not implemented.
    # Conv tower = im2col (XLA) + fused Pallas GEMM chains; intermediates kept
    # in bf16 for lane-dense stores (they feed bf16 MXU GEMMs anyway).
    h, hw = conv_rows(visual_x, (8, 8), 4)
    h = linear_chain_pallas(h, kp["conv1"], ("relu",), out_dtype=jnp.bfloat16)
    h = rows_to_nchw(h, B, hw)                                  # (B, 32, 15, 15)
    h, hw = conv_rows(h, (4, 4), 2)
    h = linear_chain_pallas(h, kp["conv2"], ("relu",), out_dtype=jnp.bfloat16)
    h = rows_to_nchw(h, B, hw)                                  # (B, 64, 6, 6)
    h, hw = conv_rows(h, (3, 3), 1)
    # conv3 (relu) + 1x1 up-conv (no act) fused into one GEMM-chain kernel.
    h = linear_chain_pallas(h, kp["conv3_up"], ("relu", "none"),
                            out_dtype=jnp.float32)              # (B*16, td)
    P = hw[0]
    front_tokens = h.reshape(B, P * P, td)                      # (B, 16, td)

    # state MLP (hidden relu layers) + visual_projector (relu), one kernel.
    s = linear_chain_pallas(state_x, kp["mlp"], ("relu",) * len(kp["mlp"]),
                            out_dtype=jnp.float32)

    # Token assembly stays in XLA (three tiny ops on an 8 KB slab).
    tokens = jnp.concatenate([s[:, None, :], front_tokens], axis=1)   # (B, 17, td)
    S = tokens.shape[1]
    if cfg["add_pos_emb"]:
        pe = kp["pos_emb"][:S]                                   # (17, td)
        tokens = jnp.concatenate(
            [tokens, jnp.broadcast_to(pe[None], (B, S, td))], axis=-1)

    # token-LN + all transformer layers + pooling + out projection: ONE kernel.
    y = transformer_stack_pallas(tokens, kp, cfg)

    if len(orig_state_shape) >= 3:
        y = y.reshape(*orig_state_shape[:2], -1)
    return y


# --------------------------- deterministic params --------------------------

def init_params(key, cfg):
    """PyTorch-layout f32 parameters (like a state_dict)."""
    keys = iter(jax.random.split(key, 64))

    def wmat(shape, scale=0.05):
        return scale * jax.random.normal(next(keys), shape, jnp.float32)

    Cin = cfg["in_channels"]
    td = cfg["token_dim"]
    D = td * (1 + int(cfg["add_pos_emb"]))
    n_tokens = (1 + (cfg["camera_num"] == 2)) * 16 + 1

    params = {
        "conv1_w": wmat((32, Cin, 8, 8)), "conv1_b": wmat((32,)),
        "conv2_w": wmat((64, 32, 4, 4)), "conv2_b": wmat((64,)),
        "conv3_w": wmat((64, 64, 3, 3)), "conv3_b": wmat((64,)),
        "up_w": wmat((td, 64, 1, 1)), "up_b": wmat((td,)),
        "mlp": [],
        "proj_w": wmat((td, cfg["hidden_dims"][-1])), "proj_b": wmat((td,)),
        "pos_emb": wmat((n_tokens, td)),
        "token_ln_g": jnp.ones((D,), jnp.float32),
        "token_ln_b": jnp.zeros((D,), jnp.float32),
        "layers": [],
        "out_w": wmat((cfg["encoder_out"], (cfg["camera_num"] + 1) * D)),
        "out_b": wmat((cfg["encoder_out"],)),
    }
    prev = cfg["state_dim"]
    for hdim in cfg["hidden_dims"]:
        params["mlp"].append((wmat((hdim, prev)), wmat((hdim,))))
        prev = hdim
    for _nhead, dff in cfg["transformer_params"]:
        params["layers"].append({
            "in_w": wmat((3 * D, D)), "in_b": wmat((3 * D,)),
            "out_w": wmat((D, D)), "out_b": wmat((D,)),
            "ln1_g": jnp.ones((D,), jnp.float32),
            "ln1_b": jnp.zeros((D,), jnp.float32),
            "ff1_w": wmat((dff, D)), "ff1_b": wmat((dff,)),
            "ff2_w": wmat((D, dff)), "ff2_b": wmat((D,)),
            "ln2_g": jnp.ones((D,), jnp.float32),
            "ln2_b": jnp.zeros((D,), jnp.float32),
        })
    return params


def prepare_params(p, cfg):
    """One-time (outside jit) repack: transpose GEMM weights to (K, N), cast to
    bf16 for the MXU; biases/LN params stay f32, shaped (1, N).  The 1/sqrt(hd)
    softmax scale is folded into the Q rows of each layer's in_proj weight/bias."""
    bf16 = jnp.bfloat16
    f32 = jnp.float32

    def wT(w):
        return jnp.asarray(w).T.astype(bf16)

    def bias(b):
        return jnp.asarray(b, f32).reshape(1, -1)

    def lnp(v):
        return jnp.asarray(v, f32).reshape(1, -1)

    td = cfg["token_dim"]
    kp = {
        "conv1": [(p["conv1_w"].reshape(32, -1).T.astype(bf16), bias(p["conv1_b"]))],
        "conv2": [(p["conv2_w"].reshape(64, -1).T.astype(bf16), bias(p["conv2_b"]))],
        "conv3_up": [(p["conv3_w"].reshape(64, -1).T.astype(bf16), bias(p["conv3_b"])),
                     (p["up_w"].reshape(td, -1).T.astype(bf16), bias(p["up_b"]))],
        "mlp": [(wT(w), bias(b)) for (w, b) in p["mlp"]]
               + [(wT(p["proj_w"]), bias(p["proj_b"]))],
        "pos_emb": jnp.asarray(p["pos_emb"], f32),
        "token_ln_g": lnp(p["token_ln_g"]),
        "token_ln_b": lnp(p["token_ln_b"]),
        "layers": [],
        "out_w": wT(p["out_w"]),
        "out_b": bias(p["out_b"]),
    }
    for lp, (nhead, _dff) in zip(p["layers"], cfg["transformer_params"]):
        in_w = jnp.asarray(lp["in_w"], f32)            # torch (3D, D): rows 0..D-1 = Q
        in_b = jnp.asarray(lp["in_b"], f32)
        Dm = in_w.shape[1]
        scale = 1.0 / math.sqrt(Dm // nhead)
        in_w = in_w.at[:Dm, :].multiply(scale)         # fold softmax scale into Q
        in_b = in_b.at[:Dm].multiply(scale)
        kp["layers"].append({
            "in_w": in_w.T.astype(bf16), "in_b": in_b.reshape(1, -1),
            "out_w": wT(lp["out_w"]), "out_b": bias(lp["out_b"]),
            "ln1_g": lnp(lp["ln1_g"]), "ln1_b": lnp(lp["ln1_b"]),
            "ff1_w": wT(lp["ff1_w"]), "ff1_b": bias(lp["ff1_b"]),
            "ff2_w": wT(lp["ff2_w"]), "ff2_b": bias(lp["ff2_b"]),
            "ln2_g": lnp(lp["ln2_g"]), "ln2_b": lnp(lp["ln2_b"]),
        })
    return kp


def _conv_order_selfcheck(key, cin):
    """One-off parity test: im2col feature ordering vs lax.conv_general_dilated."""
    k1, k2 = jax.random.split(key)
    xs = jax.random.normal(k1, (1, cin, 16, 16), jnp.float32)
    wt = jax.random.normal(k2, (8, cin, 8, 8), jnp.float32)
    ref = jax.lax.conv_general_dilated(
        xs, wt, (4, 4), "VALID", dimension_numbers=("NCHW", "OIHW", "NCHW"))
    rows, hw = conv_rows(xs, (8, 8), 4)
    got = rows_to_nchw(jnp.dot(rows, wt.reshape(8, -1).T), 1, hw)
    assert bool(jnp.allclose(ref, got, rtol=2e-2, atol=2e-2)), \
        "im2col feature ordering mismatch vs PyTorch conv weight layout"


# ---------------------------------- main ------------------------------------

if __name__ == "__main__":
    cfg = dict(
        in_channels=1,
        camera_num=1,
        token_dim=32,
        activation="relu",            # TODO(synk): 'elu' activation not implemented
        state_dim=16,
        hidden_dims=[32, 32],
        add_pos_emb=True,
        visual_dim=1 * 1 * 64 * 64,   # camera_num * in_channels * 64 * 64
        add_ln=False,
        max_pool=False,
        token_norm=True,
        transformer_params=[(2, 128)],  # (n_head, dim_feedforward)
        encoder_out=32,
    )
    cfg["w"] = int(math.sqrt(cfg["visual_dim"] // cfg["camera_num"] // cfg["in_channels"]))
    assert cfg["activation"] == "relu"
    assert cfg["camera_num"] == 1

    key = jax.random.PRNGKey(0)
    pkey, xkey, ckey = jax.random.split(key, 3)

    _conv_order_selfcheck(ckey, cfg["in_channels"] * cfg["camera_num"])

    params = init_params(pkey, cfg)
    kparams = prepare_params(params, cfg)   # transpose + bf16 cast + scale folding, once

    batch = 2
    x = jax.random.normal(
        xkey, (batch, cfg["state_dim"] + cfg["visual_dim"]), jnp.float32)

    fwd = jax.jit(lambda xx, pp: loco_transformer_forward(xx, pp, cfg))
    out = fwd(x, kparams)
    out = jax.block_until_ready(out)
    assert out.shape == (batch, cfg["encoder_out"]), out.shape
    assert bool(jnp.all(jnp.isfinite(out)))
    print("KERNEL_OK")
</pallas_src>

<mosaic_0001>
module attributes {stable_mosaic.version = 11 : i64} {
  func.func @_linear_chain_kernel(%arg0: i32, %arg1: memref<464x64xf32, #tpu.memory_space<vmem>>, %arg2: memref<64x32xbf16, #tpu.memory_space<vmem>>, %arg3: memref<1x32xf32, #tpu.memory_space<vmem>>, %arg4: memref<464x32xbf16, #tpu.memory_space<vmem>>) attributes {dimension_semantics = [#tpu.dimension_semantics<parallel>], iteration_bounds = array<i64: 1>, scalar_prefetch = 0 : i64, scratch_operands = 0 : i64, tpu.core_type = #tpu.core_type<tc>, window_params = [{transform_indices = @transform_0, window_bounds = array<i64: 464, 64>}, {pipeline_mode = #tpu.pipeline_mode<synchronous>, transform_indices = @transform_1, window_bounds = array<i64: 64, 32>}, {pipeline_mode = #tpu.pipeline_mode<synchronous>, transform_indices = @transform_2, window_bounds = array<i64: 1, 32>}, {transform_indices = @transform_3, window_bounds = array<i64: 464, 32>}]} {
    %c0 = arith.constant 0 : index
    %c0_0 = arith.constant 0 : index
    %0 = vector.load %arg1[%c0, %c0_0] : memref<464x64xf32, #tpu.memory_space<vmem>>, vector<464x64xf32>
    %c0_1 = arith.constant 0 : index
    %c0_2 = arith.constant 0 : index
    %1 = vector.load %arg2[%c0_1, %c0_2] : memref<64x32xbf16, #tpu.memory_space<vmem>>, vector<64x32xbf16>
    %c0_3 = arith.constant 0 : index
    %c0_4 = arith.constant 0 : index
    %2 = vector.load %arg3[%c0_3, %c0_4] : memref<1x32xf32, #tpu.memory_space<vmem>>, vector<1x32xf32>
    %3 = arith.truncf %0 : vector<464x64xf32> to vector<464x64xbf16>
    %cst = arith.constant dense<0.000000e+00> : vector<464x32xf32>
    %4 = tpu.matmul %3, %1, %cst {dimension_numbers = #tpu.dot_dimension_numbers<[1], [0], [0], [1], [0, 0, 1, 1], [], []>} : vector<464x64xbf16>, vector<64x32xbf16>, vector<464x32xf32> -> vector<464x32xf32>
    %5 = vector.broadcast %2 : vector<1x32xf32> to vector<464x32xf32>
    %6 = arith.addf %4, %5 : vector<464x32xf32>
    %cst_5 = arith.constant 0.000000e+00 : f32
    %7 = vector.broadcast %cst_5 : f32 to vector<464x32xf32>
    %8 = arith.maximumf %6, %7 : vector<464x32xf32>
    %9 = arith.truncf %8 : vector<464x32xf32> to vector<464x32xbf16>
    %c0_6 = arith.constant 0 : index
    %c0_7 = arith.constant 0 : index
    %10 = vector.load %arg4[%c0_6, %c0_7] : memref<464x32xbf16, #tpu.memory_space<vmem>>, vector<464x32xbf16>
    tpu.vector_store %arg4[%c0_6, %c0_7], %9 {strides = array<i32>} : memref<464x32xbf16, #tpu.memory_space<vmem>>, vector<464x32xbf16>,
    return
  }
  func.func @transform_0(%arg0: i32) -> (i32, i32) {
    %c0_i32 = arith.constant 0 : i32
    %c0_i32_0 = arith.constant 0 : i32
    return %arg0, %c0_i32 : i32, i32
  }
  func.func @transform_1(%arg0: i32) -> (i32, i32) {
    %c0_i32 = arith.constant 0 : i32
    %c0_i32_0 = arith.constant 0 : i32
    %c0_i32_1 = arith.constant 0 : i32
    return %c0_i32, %c0_i32_0 : i32, i32
  }
  func.func @transform_2(%arg0: i32) -> (i32, i32) {
    %c0_i32 = arith.constant 0 : i32
    %c0_i32_0 = arith.constant 0 : i32
    %c0_i32_1 = arith.constant 0 : i32
    return %c0_i32, %c0_i32_0 : i32, i32
  }
  func.func @transform_3(%arg0: i32) -> (i32, i32) {
    %c0_i32 = arith.constant 0 : i32
    %c0_i32_0 = arith.constant 0 : i32
    return %arg0, %c0_i32 : i32, i32
  }
}

module attributes {stable_mosaic.version = 11 : i64} {
  func.func @_linear_chain_kernel(%arg0: i32, %arg1: memref<80x512xbf16, #tpu.memory_space<vmem>>, %arg2: memref<512x64xbf16, #tpu.memory_space<vmem>>, %arg3: memref<1x64xf32, #tpu.memory_space<vmem>>, %arg4: memref<80x64xbf16, #tpu.memory_space<vmem>>) attributes {dimension_semantics = [#tpu.dimension_semantics<parallel>], iteration_bounds = array<i64: 1>, scalar_prefetch = 0 : i64, scratch_operands = 0 : i64, tpu.core_type = #tpu.core_type<tc>, window_params = [{transform_indices = @transform_0, window_bounds = array<i64: 80, 512>}, {pipeline_mode = #tpu.pipeline_mode<synchronous>, transform_indices = @transform_1, window_bounds = array<i64: 512, 64>}, {pipeline_mode = #tpu.pipeline_mode<synchronous>, transform_indices = @transform_2, window_bounds = array<i64: 1, 64>}, {transform_indices = @transform_3, window_bounds = array<i64: 80, 64>}]} {
    %c0 = arith.constant 0 : index
    %c0_0 = arith.constant 0 : index
    %0 = vector.load %arg1[%c0, %c0_0] : memref<80x512xbf16, #tpu.memory_space<vmem>>, vector<80x512xbf16>
    %c0_1 = arith.constant 0 : index
    %c0_2 = arith.constant 0 : index
    %1 = vector.load %arg2[%c0_1, %c0_2] : memref<512x64xbf16, #tpu.memory_space<vmem>>, vector<512x64xbf16>
    %c0_3 = arith.constant 0 : index
    %c0_4 = arith.constant 0 : index
    %2 = vector.load %arg3[%c0_3, %c0_4] : memref<1x64xf32, #tpu.memory_space<vmem>>, vector<1x64xf32>
    %cst = arith.constant dense<0.000000e+00> : vector<80x64xf32>
    %3 = tpu.matmul %0, %1, %cst {dimension_numbers = #tpu.dot_dimension_numbers<[1], [0], [0], [1], [0, 0, 1, 1], [], []>} : vector<80x512xbf16>, vector<512x64xbf16>, vector<80x64xf32> -> vector<80x64xf32>
    %4 = vector.broadcast %2 : vector<1x64xf32> to vector<80x64xf32>
    %5 = arith.addf %3, %4 : vector<80x64xf32>
    %cst_5 = arith.constant 0.000000e+00 : f32
    %6 = vector.broadcast %cst_5 : f32 to vector<80x64xf32>
    %7 = arith.maximumf %5, %6 : vector<80x64xf32>
    %8 = arith.truncf %7 : vector<80x64xf32> to vector<80x64xbf16>
    %c0_6 = arith.constant 0 : index
    %c0_7 = arith.constant 0 : index
    %9 = vector.load %arg4[%c0_6, %c0_7] : memref<80x64xbf16, #tpu.memory_space<vmem>>, vector<80x64xbf16>
    tpu.vector_store %arg4[%c0_6, %c0_7], %8 {strides = array<i32>} : memref<80x64xbf16, #tpu.memory_space<vmem>>, vector<80x64xbf16>,
    return
  }
  func.func @transform_0(%arg0: i32) -> (i32, i32) {
    %c0_i32 = arith.constant 0 : i32
    %c0_i32_0 = arith.constant 0 : i32
    return %arg0, %c0_i32 : i32, i32
  }
  func.func @transform_1(%arg0: i32) -> (i32, i32) {
    %c0_i32 = arith.constant 0 : i32
    %c0_i32_0 = arith.constant 0 : i32
    %c0_i32_1 = arith.constant 0 : i32
    return %c0_i32, %c0_i32_0 : i32, i32
  }
  func.func @transform_2(%arg0: i32) -> (i32, i32) {
    %c0_i32 = arith.constant 0 : i32
    %c0_i32_0 = arith.constant 0 : i32
    %c0_i32_1 = arith.constant 0 : i32
    return %c0_i32, %c0_i32_0 : i32, i32
  }
  func.func @transform_3(%arg0: i32) -> (i32, i32) {
    %c0_i32 = arith.constant 0 : i32
    %c0_i32_0 = arith.constant 0 : i32
    return %arg0, %c0_i32 : i32, i32
  }
}

module attributes {stable_mosaic.version = 11 : i64} {
  func.func @_linear_chain_kernel(%arg0: i32, %arg1: memref<32x576xbf16, #tpu.memory_space<vmem>>, %arg2: memref<576x64xbf16, #tpu.memory_space<vmem>>, %arg3: memref<1x64xf32, #tpu.memory_space<vmem>>, %arg4: memref<64x32xbf16, #tpu.memory_space<vmem>>, %arg5: memref<1x32xf32, #tpu.memory_space<vmem>>, %arg6: memref<32x32xf32, #tpu.memory_space<vmem>>) attributes {dimension_semantics = [#tpu.dimension_semantics<parallel>], iteration_bounds = array<i64: 1>, scalar_prefetch = 0 : i64, scratch_operands = 0 : i64, tpu.core_type = #tpu.core_type<tc>, window_params = [{transform_indices = @transform_0, window_bounds = array<i64: 32, 576>}, {pipeline_mode = #tpu.pipeline_mode<synchronous>, transform_indices = @transform_1, window_bounds = array<i64: 576, 64>}, {pipeline_mode = #tpu.pipeline_mode<synchronous>, transform_indices = @transform_2, window_bounds = array<i64: 1, 64>}, {pipeline_mode = #tpu.pipeline_mode<synchronous>, transform_indices = @transform_3, window_bounds = array<i64: 64, 32>}, {pipeline_mode = #tpu.pipeline_mode<synchronous>, transform_indices = @transform_4, window_bounds = array<i64: 1, 32>}, {transform_indices = @transform_5, window_bounds = array<i64: 32, 32>}]} {
    %c0 = arith.constant 0 : index
    %c0_0 = arith.constant 0 : index
    %0 = vector.load %arg1[%c0, %c0_0] : memref<32x576xbf16, #tpu.memory_space<vmem>>, vector<32x576xbf16>
    %c0_1 = arith.constant 0 : index
    %c0_2 = arith.constant 0 : index
    %1 = vector.load %arg2[%c0_1, %c0_2] : memref<576x64xbf16, #tpu.memory_space<vmem>>, vector<576x64xbf16>
    %c0_3 = arith.constant 0 : index
    %c0_4 = arith.constant 0 : index
    %2 = vector.load %arg3[%c0_3, %c0_4] : memref<1x64xf32, #tpu.memory_space<vmem>>, vector<1x64xf32>
    %cst = arith.constant dense<0.000000e+00> : vector<32x64xf32>
    %3 = tpu.matmul %0, %1, %cst {dimension_numbers = #tpu.dot_dimension_numbers<[1], [0], [0], [1], [0, 0, 1, 1], [], []>} : vector<32x576xbf16>, vector<576x64xbf16>, vector<32x64xf32> -> vector<32x64xf32>
    %4 = vector.broadcast %2 : vector<1x64xf32> to vector<32x64xf32>
    %5 = arith.addf %3, %4 : vector<32x64xf32>
    %cst_5 = arith.constant 0.000000e+00 : f32
    %6 = vector.broadcast %cst_5 : f32 to vector<32x64xf32>
    %7 = arith.maximumf %5, %6 : vector<32x64xf32>
    %c0_6 = arith.constant 0 : index
    %c0_7 = arith.constant 0 : index
    %8 = vector.load %arg4[%c0_6, %c0_7] : memref<64x32xbf16, #tpu.memory_space<vmem>>, vector<64x32xbf16>
    %c0_8 = arith.constant 0 : index
    %c0_9 = arith.constant 0 : index
    %9 = vector.load %arg5[%c0_8, %c0_9] : memref<1x32xf32, #tpu.memory_space<vmem>>, vector<1x32xf32>
    %10 = arith.truncf %7 : vector<32x64xf32> to vector<32x64xbf16>
    %cst_10 = arith.constant dense<0.000000e+00> : vector<32x32xf32>
    %11 = tpu.matmul %10, %8, %cst_10 {dimension_numbers = #tpu.dot_dimension_numbers<[1], [0], [0], [1], [0, 0, 1, 1], [], []>} : vector<32x64xbf16>, vector<64x32xbf16>, vector<32x32xf32> -> vector<32x32xf32>
    %12 = vector.broadcast %9 : vector<1x32xf32> to vector<32x32xf32>
    %13 = arith.addf %11, %12 : vector<32x32xf32>
    %c0_11 = arith.constant 0 : index
    %c0_12 = arith.constant 0 : index
    %14 = vector.load %arg6[%c0_11, %c0_12] : memref<32x32xf32, #tpu.memory_space<vmem>>, vector<32x32xf32>
    tpu.vector_store %arg6[%c0_11, %c0_12], %13 {strides = array<i32>} : memref<32x32xf32, #tpu.memory_space<vmem>>, vector<32x32xf32>,
    return
  }
  func.func @transform_0(%arg0: i32) -> (i32, i32) {
    %c0_i32 = arith.constant 0 : i32
    %c0_i32_0 = arith.constant 0 : i32
    return %arg0, %c0_i32 : i32, i32
  }
  func.func @transform_1(%arg0: i32) -> (i32, i32) {
    %c0_i32 = arith.constant 0 : i32
    %c0_i32_0 = arith.constant 0 : i32
    %c0_i32_1 = arith.constant 0 : i32
    return %c0_i32, %c0_i32_0 : i32, i32
  }
  func.func @transform_2(%arg0: i32) -> (i32, i32) {
    %c0_i32 = arith.constant 0 : i32
    %c0_i32_0 = arith.constant 0 : i32
    %c0_i32_1 = arith.constant 0 : i32
    return %c0_i32, %c0_i32_0 : i32, i32
  }
  func.func @transform_3(%arg0: i32) -> (i32, i32) {
    %c0_i32 = arith.constant 0 : i32
    %c0_i32_0 = arith.constant 0 : i32
    %c0_i32_1 = arith.constant 0 : i32
    return %c0_i32, %c0_i32_0 : i32, i32
  }
  func.func @transform_4(%arg0: i32) -> (i32, i32) {
    %c0_i32 = arith.constant 0 : i32
    %c0_i32_0 = arith.constant 0 : i32
    %c0_i32_1 = arith.constant 0 : i32
    return %c0_i32, %c0_i32_0 : i32, i32
  }
  func.func @transform_5(%arg0: i32) -> (i32, i32) {
    %c0_i32 = arith.constant 0 : i32
    %c0_i32_0 = arith.constant 0 : i32
    return %arg0, %c0_i32 : i32, i32
  }
}

module attributes {stable_mosaic.version = 11 : i64} {
  func.func @_linear_chain_kernel(%arg0: i32, %arg1: memref<16x16xf32, #tpu.memory_space<vmem>>, %arg2: memref<16x32xbf16, #tpu.memory_space<vmem>>, %arg3: memref<1x32xf32, #tpu.memory_space<vmem>>, %arg4: memref<32x32xbf16, #tpu.memory_space<vmem>>, %arg5: memref<1x32xf32, #tpu.memory_space<vmem>>, %arg6: memref<32x32xbf16, #tpu.memory_space<vmem>>, %arg7: memref<1x32xf32, #tpu.memory_space<vmem>>, %arg8: memref<16x32xf32, #tpu.memory_space<vmem>>) attributes {dimension_semantics = [#tpu.dimension_semantics<parallel>], iteration_bounds = array<i64: 1>, scalar_prefetch = 0 : i64, scratch_operands = 0 : i64, tpu.core_type = #tpu.core_type<tc>, window_params = [{transform_indices = @transform_0, window_bounds = array<i64: 16, 16>}, {pipeline_mode = #tpu.pipeline_mode<synchronous>, transform_indices = @transform_1, window_bounds = array<i64: 16, 32>}, {pipeline_mode = #tpu.pipeline_mode<synchronous>, transform_indices = @transform_2, window_bounds = array<i64: 1, 32>}, {pipeline_mode = #tpu.pipeline_mode<synchronous>, transform_indices = @transform_3, window_bounds = array<i64: 32, 32>}, {pipeline_mode = #tpu.pipeline_mode<synchronous>, transform_indices = @transform_4, window_bounds = array<i64: 1, 32>}, {pipeline_mode = #tpu.pipeline_mode<synchronous>, transform_indices = @transform_5, window_bounds = array<i64: 32, 32>}, {pipeline_mode = #tpu.pipeline_mode<synchronous>, transform_indices = @transform_6, window_bounds = array<i64: 1, 32>}, {transform_indices = @transform_7, window_bounds = array<i64: 16, 32>}]} {
    %c0 = arith.constant 0 : index
    %c0_0 = arith.constant 0 : index
    %0 = vector.load %arg1[%c0, %c0_0] : memref<16x16xf32, #tpu.memory_space<vmem>>, vector<16x16xf32>
    %c0_1 = arith.constant 0 : index
    %c0_2 = arith.constant 0 : index
    %1 = vector.load %arg2[%c0_1, %c0_2] : memref<16x32xbf16, #tpu.memory_space<vmem>>, vector<16x32xbf16>
    %c0_3 = arith.constant 0 : index
    %c0_4 = arith.constant 0 : index
    %2 = vector.load %arg3[%c0_3, %c0_4] : memref<1x32xf32, #tpu.memory_space<vmem>>, vector<1x32xf32>
    %3 = arith.truncf %0 : vector<16x16xf32> to vector<16x16xbf16>
    %cst = arith.constant dense<0.000000e+00> : vector<16x32xf32>
    %4 = tpu.matmul %3, %1, %cst {dimension_numbers = #tpu.dot_dimension_numbers<[1], [0], [0], [1], [0, 0, 1, 1], [], []>} : vector<16x16xbf16>, vector<16x32xbf16>, vector<16x32xf32> -> vector<16x32xf32>
    %5 = vector.broadcast %2 : vector<1x32xf32> to vector<16x32xf32>
    %6 = arith.addf %4, %5 : vector<16x32xf32>
    %cst_5 = arith.constant 0.000000e+00 : f32
    %7 = vector.broadcast %cst_5 : f32 to vector<16x32xf32>
    %8 = arith.maximumf %6, %7 : vector<16x32xf32>
    %c0_6 = arith.constant 0 : index
    %c0_7 = arith.constant 0 : index
    %9 = vector.load %arg4[%c0_6, %c0_7] : memref<32x32xbf16, #tpu.memory_space<vmem>>, vector<32x32xbf16>
    %c0_8 = arith.constant 0 : index
    %c0_9 = arith.constant 0 : index
    %10 = vector.load %arg5[%c0_8, %c0_9] : memref<1x32xf32, #tpu.memory_space<vmem>>, vector<1x32xf32>
    %11 = arith.truncf %8 : vector<16x32xf32> to vector<16x32xbf16>
    %cst_10 = arith.constant dense<0.000000e+00> : vector<16x32xf32>
    %12 = tpu.matmul %11, %9, %cst_10 {dimension_numbers = #tpu.dot_dimension_numbers<[1], [0], [0], [1], [0, 0, 1, 1], [], []>} : vector<16x32xbf16>, vector<32x32xbf16>, vector<16x32xf32> -> vector<16x32xf32>
    %13 = vector.broadcast %10 : vector<1x32xf32> to vector<16x32xf32>
    %14 = arith.addf %12, %13 : vector<16x32xf32>
    %cst_11 = arith.constant 0.000000e+00 : f32
    %15 = vector.broadcast %cst_11 : f32 to vector<16x32xf32>
    %16 = arith.maximumf %14, %15 : vector<16x32xf32>
    %c0_12 = arith.constant 0 : index
    %c0_13 = arith.constant 0 : index
    %17 = vector.load %arg6[%c0_12, %c0_13] : memref<32x32xbf16, #tpu.memory_space<vmem>>, vector<32x32xbf16>
    %c0_14 = arith.constant 0 : index
    %c0_15 = arith.constant 0 : index
    %18 = vector.load %arg7[%c0_14, %c0_15] : memref<1x32xf32, #tpu.memory_space<vmem>>, vector<1x32xf32>
    %19 = arith.truncf %16 : vector<16x32xf32> to vector<16x32xbf16>
    %cst_16 = arith.constant dense<0.000000e+00> : vector<16x32xf32>
    %20 = tpu.matmul %19, %17, %cst_16 {dimension_numbers = #tpu.dot_dimension_numbers<[1], [0], [0], [1], [0, 0, 1, 1], [], []>} : vector<16x32xbf16>, vector<32x32xbf16>, vector<16x32xf32> -> vector<16x32xf32>
    %21 = vector.broadcast %18 : vector<1x32xf32> to vector<16x32xf32>
    %22 = arith.addf %20, %21 : vector<16x32xf32>
    %cst_17 = arith.constant 0.000000e+00 : f32
    %23 = vector.broadcast %cst_17 : f32 to vector<16x32xf32>
    %24 = arith.maximumf %22, %23 : vector<16x32xf32>
    %c0_18 = arith.constant 0 : index
    %c0_19 = arith.constant 0 : index
    %25 = vector.load %arg8[%c0_18, %c0_19] : memref<16x32xf32, #tpu.memory_space<vmem>>, vector<16x32xf32>
    tpu.vector_store %arg8[%c0_18, %c0_19], %24 {strides = array<i32>} : memref<16x32xf32, #tpu.memory_space<vmem>>, vector<16x32xf32>,
    return
  }
  func.func @transform_0(%arg0: i32) -> (i32, i32) {
    %c0_i32 = arith.constant 0 : i32
    %c0_i32_0 = arith.constant 0 : i32
    return %arg0, %c0_i32 : i32, i32
  }
  func.func @transform_1(%arg0: i32) -> (i32, i32) {
    %c0_i32 = arith.constant 0 : i32
    %c0_i32_0 = arith.constant 0 : i32
    %c0_i32_1 = arith.constant 0 : i32
    return %c0_i32, %c0_i32_0 : i32, i32
  }
  func.func @transform_2(%arg0: i32) -> (i32, i32) {
    %c0_i32 = arith.constant 0 : i32
    %c0_i32_0 = arith.constant 0 : i32
    %c0_i32_1 = arith.constant 0 : i32
    return %c0_i32, %c0_i32_0 : i32, i32
  }
  func.func @transform_3(%arg0: i32) -> (i32, i32) {
    %c0_i32 = arith.constant 0 : i32
    %c0_i32_0 = arith.constant 0 : i32
    %c0_i32_1 = arith.constant 0 : i32
    return %c0_i32, %c0_i32_0 : i32, i32
  }
  func.func @transform_4(%arg0: i32) -> (i32, i32) {
    %c0_i32 = arith.constant 0 : i32
    %c0_i32_0 = arith.constant 0 : i32
    %c0_i32_1 = arith.constant 0 : i32
    return %c0_i32, %c0_i32_0 : i32, i32
  }
  func.func @transform_5(%arg0: i32) -> (i32, i32) {
    %c0_i32 = arith.constant 0 : i32
    %c0_i32_0 = arith.constant 0 : i32
    %c0_i32_1 = arith.constant 0 : i32
    return %c0_i32, %c0_i32_0 : i32, i32
  }
  func.func @transform_6(%arg0: i32) -> (i32, i32) {
    %c0_i32 = arith.constant 0 : i32
    %c0_i32_0 = arith.constant 0 : i32
    %c0_i32_1 = arith.constant 0 : i32
    return %c0_i32, %c0_i32_0 : i32, i32
  }
  func.func @transform_7(%arg0: i32) -> (i32, i32) {
    %c0_i32 = arith.constant 0 : i32
    %c0_i32_0 = arith.constant 0 : i32
    return %arg0, %c0_i32 : i32, i32
  }
}

module attributes {stable_mosaic.version = 11 : i64} {
  func.func @_transformer_stack_kernel(%arg0: i32, %arg1: memref<2x17x64xf32, #tpu.memory_space<vmem>>, %arg2: memref<1x64xf32, #tpu.memory_space<vmem>>, %arg3: memref<1x64xf32, #tpu.memory_space<vmem>>, %arg4: memref<64x192xbf16, #tpu.memory_space<vmem>>, %arg5: memref<1x192xf32, #tpu.memory_space<vmem>>, %arg6: memref<64x64xbf16, #tpu.memory_space<vmem>>, %arg7: memref<1x64xf32, #tpu.memory_space<vmem>>, %arg8: memref<1x64xf32, #tpu.memory_space<vmem>>, %arg9: memref<1x64xf32, #tpu.memory_space<vmem>>, %arg10: memref<64x128xbf16, #tpu.memory_space<vmem>>, %arg11: memref<1x128xf32, #tpu.memory_space<vmem>>, %arg12: memref<128x64xbf16, #tpu.memory_space<vmem>>, %arg13: memref<1x64xf32, #tpu.memory_space<vmem>>, %arg14: memref<1x64xf32, #tpu.memory_space<vmem>>, %arg15: memref<1x64xf32, #tpu.memory_space<vmem>>, %arg16: memref<128x32xbf16, #tpu.memory_space<vmem>>, %arg17: memref<1x32xf32, #tpu.memory_space<vmem>>, %arg18: memref<2x1x32xf32, #tpu.memory_space<vmem>>, %arg19: memref<17x64xf32, #tpu.memory_space<vmem>>, %arg20: memref<2x128xf32, #tpu.memory_space<vmem>>) attributes {dimension_semantics = [#tpu.dimension_semantics<parallel>], iteration_bounds = array<i64: 1>, scalar_prefetch = 0 : i64, scratch_operands = 2 : i64, tpu.core_type = #tpu.core_type<tc>, window_params = [{transform_indices = @transform_0, window_bounds = array<i64: 2, 17, 64>}, {pipeline_mode = #tpu.pipeline_mode<synchronous>, transform_indices = @transform_1, window_bounds = array<i64: 1, 64>}, {pipeline_mode = #tpu.pipeline_mode<synchronous>, transform_indices = @transform_2, window_bounds = array<i64: 1, 64>}, {pipeline_mode = #tpu.pipeline_mode<synchronous>, transform_indices = @transform_3, window_bounds = array<i64: 64, 192>}, {pipeline_mode = #tpu.pipeline_mode<synchronous>, transform_indices = @transform_4, window_bounds = array<i64: 1, 192>}, {pipeline_mode = #tpu.pipeline_mode<synchronous>, transform_indices = @transform_5, window_bounds = array<i64: 64, 64>}, {pipeline_mode = #tpu.pipeline_mode<synchronous>, transform_indices = @transform_6, window_bounds = array<i64: 1, 64>}, {pipeline_mode = #tpu.pipeline_mode<synchronous>, transform_indices = @transform_7, window_bounds = array<i64: 1, 64>}, {pipeline_mode = #tpu.pipeline_mode<synchronous>, transform_indices = @transform_8, window_bounds = array<i64: 1, 64>}, {pipeline_mode = #tpu.pipeline_mode<synchronous>, transform_indices = @transform_9, window_bounds = array<i64: 64, 128>}, {pipeline_mode = #tpu.pipeline_mode<synchronous>, transform_indices = @transform_10, window_bounds = array<i64: 1, 128>}, {pipeline_mode = #tpu.pipeline_mode<synchronous>, transform_indices = @transform_11, window_bounds = array<i64: 128, 64>}, {pipeline_mode = #tpu.pipeline_mode<synchronous>, transform_indices = @transform_12, window_bounds = array<i64: 1, 64>}, {pipeline_mode = #tpu.pipeline_mode<synchronous>, transform_indices = @transform_13, window_bounds = array<i64: 1, 64>}, {pipeline_mode = #tpu.pipeline_mode<synchronous>, transform_indices = @transform_14, window_bounds = array<i64: 1, 64>}, {pipeline_mode = #tpu.pipeline_mode<synchronous>, transform_indices = @transform_15, window_bounds = array<i64: 128, 32>}, {pipeline_mode = #tpu.pipeline_mode<synchronous>, transform_indices = @transform_16, window_bounds = array<i64: 1, 32>}, {transform_indices = @transform_17, window_bounds = array<i64: 2, 1, 32>}]} {
    %c0 = arith.constant 0 : index
    %c0_0 = arith.constant 0 : index
    %c0_1 = arith.constant 0 : index
    %0 = vector.load %arg1[%c0, %c0_0, %c0_1] : memref<2x17x64xf32, #tpu.memory_space<vmem>>, vector<1x17x64xf32>
    %1 = vector.shape_cast %0 : vector<1x17x64xf32> to vector<17x64xf32>
    %c0_2 = arith.constant 0 : index
    %c0_3 = arith.constant 0 : index
    %2 = vector.load %arg2[%c0_2, %c0_3] : memref<1x64xf32, #tpu.memory_space<vmem>>, vector<1x64xf32>
    %c0_4 = arith.constant 0 : index
    %c0_5 = arith.constant 0 : index
    %3 = vector.load %arg3[%c0_4, %c0_5] : memref<1x64xf32, #tpu.memory_space<vmem>>, vector<1x64xf32>
    %cst = arith.constant dense<0.000000e+00> : vector<17xf32>
    %4 = vector.multi_reduction <add>, %1, %cst [1] : vector<17x64xf32> to vector<17xf32>
    %5 = vector.shape_cast %4 : vector<17xf32> to vector<17x1xf32>
    %cst_6 = arith.constant 6.400000e+01 : f32
    %6 = vector.broadcast %cst_6 : f32 to vector<17x1xf32>
    %7 = arith.divf %5, %6 : vector<17x1xf32>
    %8 = vector.broadcast %7 : vector<17x1xf32> to vector<17x64xf32>
    %9 = arith.subf %1, %8 : vector<17x64xf32>
    %10 = arith.mulf %9, %9 : vector<17x64xf32>
    %cst_7 = arith.constant dense<0.000000e+00> : vector<17xf32>
    %11 = vector.multi_reduction <add>, %10, %cst_7 [1] : vector<17x64xf32> to vector<17xf32>
    %12 = vector.shape_cast %11 : vector<17xf32> to vector<17x1xf32>
    %cst_8 = arith.constant 6.400000e+01 : f32
    %13 = vector.broadcast %cst_8 : f32 to vector<17x1xf32>
    %14 = arith.divf %12, %13 : vector<17x1xf32>
    %cst_9 = arith.constant 9.99999974E-6 : f32
    %15 = vector.broadcast %cst_9 : f32 to vector<17x1xf32>
    %16 = arith.addf %14, %15 : vector<17x1xf32>
    %17 = math.rsqrt %16 : vector<17x1xf32>
    %18 = vector.broadcast %17 : vector<17x1xf32> to vector<17x64xf32>
    %19 = arith.mulf %9, %18 : vector<17x64xf32>
    %20 = vector.broadcast %2 : vector<1x64xf32> to vector<17x64xf32>
    %21 = arith.mulf %19, %20 : vector<17x64xf32>
    %22 = vector.broadcast %3 : vector<1x64xf32> to vector<17x64xf32>
    %23 = arith.addf %21, %22 : vector<17x64xf32>
    %24 = arith.truncf %23 : vector<17x64xf32> to vector<17x64xbf16>
    %c0_10 = arith.constant 0 : index
    %c0_11 = arith.constant 0 : index
    %25 = vector.load %arg4[%c0_10, %c0_11] : memref<64x192xbf16, #tpu.memory_space<vmem>>, vector<64x192xbf16>
    %cst_12 = arith.constant dense<0.000000e+00> : vector<17x192xf32>
    %26 = tpu.matmul %24, %25, %cst_12 {dimension_numbers = #tpu.dot_dimension_numbers<[1], [0], [0], [1], [0, 0, 1, 1], [], []>} : vector<17x64xbf16>, vector<64x192xbf16>, vector<17x192xf32> -> vector<17x192xf32>
    %c0_13 = arith.constant 0 : index
    %c0_14 = arith.constant 0 : index
    %27 = vector.load %arg5[%c0_13, %c0_14] : memref<1x192xf32, #tpu.memory_space<vmem>>, vector<1x192xf32>
    %28 = vector.broadcast %27 : vector<1x192xf32> to vector<17x192xf32>
    %29 = arith.addf %26, %28 : vector<17x192xf32>
    %30 = arith.truncf %29 : vector<17x192xf32> to vector<17x192xbf16>
    %31 = vector.extract_strided_slice %30 {offsets = [0, 0], sizes = [17, 32], strides = [1, 1]} : vector<17x192xbf16> to vector<17x32xbf16>
    %32 = vector.extract_strided_slice %30 {offsets = [0, 64], sizes = [17, 32], strides = [1, 1]} : vector<17x192xbf16> to vector<17x32xbf16>
    %33 = vector.extract_strided_slice %30 {offsets = [0, 128], sizes = [17, 32], strides = [1, 1]} : vector<17x192xbf16> to vector<17x32xbf16>
    %cst_15 = arith.constant dense<0.000000e+00> : vector<17x17xf32>
    %34 = tpu.matmul %31, %32, %cst_15 {dimension_numbers = #tpu.dot_dimension_numbers<[1], [1], [0], [0], [0, 0, 1, 0], [], []>} : vector<17x32xbf16>, vector<17x32xbf16>, vector<17x17xf32> -> vector<17x17xf32>
    %cst_16 = arith.constant dense<0xFF800000> : vector<17xf32>
    %35 = vector.multi_reduction <maximumf>, %34, %cst_16 [1] : vector<17x17xf32> to vector<17xf32>
    %36 = vector.shape_cast %35 : vector<17xf32> to vector<17x1xf32>
    %37 = vector.broadcast %36 : vector<17x1xf32> to vector<17x17xf32>
    %38 = arith.subf %34, %37 : vector<17x17xf32>
    %39 = math.exp %38 : vector<17x17xf32>
    %cst_17 = arith.constant dense<0.000000e+00> : vector<17xf32>
    %40 = vector.multi_reduction <add>, %39, %cst_17 [1] : vector<17x17xf32> to vector<17xf32>
    %41 = vector.shape_cast %40 : vector<17xf32> to vector<17x1xf32>
    %42 = tpu.reciprocal %41 {approx = true} : vector<17x1xf32> -> vector<17x1xf32>
    %43 = vector.broadcast %42 : vector<17x1xf32> to vector<17x17xf32>
    %44 = arith.mulf %39, %43 : vector<17x17xf32>
    %45 = arith.truncf %44 : vector<17x17xf32> to vector<17x17xbf16>
    %cst_18 = arith.constant dense<0.000000e+00> : vector<17x32xf32>
    %46 = tpu.matmul %45, %33, %cst_18 {dimension_numbers = #tpu.dot_dimension_numbers<[1], [0], [0], [1], [0, 0, 1, 1], [], []>} : vector<17x17xbf16>, vector<17x32xbf16>, vector<17x32xf32> -> vector<17x32xf32>
    %c0_19 = arith.constant 0 : index
    %c0_20 = arith.constant 0 : index
    %47 = vector.load %arg19[%c0_19, %c0_20] : memref<17x64xf32, #tpu.memory_space<vmem>>, vector<17x32xf32>
    tpu.vector_store %arg19[%c0_19, %c0_20], %46 {strides = array<i32>} : memref<17x64xf32, #tpu.memory_space<vmem>>, vector<17x32xf32>,
    %48 = vector.extract_strided_slice %30 {offsets = [0, 32], sizes = [17, 32], strides = [1, 1]} : vector<17x192xbf16> to vector<17x32xbf16>
    %49 = vector.extract_strided_slice %30 {offsets = [0, 96], sizes = [17, 32], strides = [1, 1]} : vector<17x192xbf16> to vector<17x32xbf16>
    %50 = vector.extract_strided_slice %30 {offsets = [0, 160], sizes = [17, 32], strides = [1, 1]} : vector<17x192xbf16> to vector<17x32xbf16>
    %cst_21 = arith.constant dense<0.000000e+00> : vector<17x17xf32>
    %51 = tpu.matmul %48, %49, %cst_21 {dimension_numbers = #tpu.dot_dimension_numbers<[1], [1], [0], [0], [0, 0, 1, 0], [], []>} : vector<17x32xbf16>, vector<17x32xbf16>, vector<17x17xf32> -> vector<17x17xf32>
    %cst_22 = arith.constant dense<0xFF800000> : vector<17xf32>
    %52 = vector.multi_reduction <maximumf>, %51, %cst_22 [1] : vector<17x17xf32> to vector<17xf32>
    %53 = vector.shape_cast %52 : vector<17xf32> to vector<17x1xf32>
    %54 = vector.broadcast %53 : vector<17x1xf32> to vector<17x17xf32>
    %55 = arith.subf %51, %54 : vector<17x17xf32>
    %56 = math.exp %55 : vector<17x17xf32>
    %cst_23 = arith.constant dense<0.000000e+00> : vector<17xf32>
    %57 = vector.multi_reduction <add>, %56, %cst_23 [1] : vector<17x17xf32> to vector<17xf32>
    %58 = vector.shape_cast %57 : vector<17xf32> to vector<17x1xf32>
    %59 = tpu.reciprocal %58 {approx = true} : vector<17x1xf32> -> vector<17x1xf32>
    %60 = vector.broadcast %59 : vector<17x1xf32> to vector<17x17xf32>
    %61 = arith.mulf %56, %60 : vector<17x17xf32>
    %62 = arith.truncf %61 : vector<17x17xf32> to vector<17x17xbf16>
    %cst_24 = arith.constant dense<0.000000e+00> : vector<17x32xf32>
    %63 = tpu.matmul %62, %50, %cst_24 {dimension_numbers = #tpu.dot_dimension_numbers<[1], [0], [0], [1], [0, 0, 1, 1], [], []>} : vector<17x17xbf16>, vector<17x32xbf16>, vector<17x32xf32> -> vector<17x32xf32>
    %c0_25 = arith.constant 0 : index
    %c32 = arith.constant 32 : index
    %64 = vector.load %arg19[%c0_25, %c32] : memref<17x64xf32, #tpu.memory_space<vmem>>, vector<17x32xf32>
    tpu.vector_store %arg19[%c0_25, %c32], %63 {strides = array<i32>} : memref<17x64xf32, #tpu.memory_space<vmem>>, vector<17x32xf32>,
    %c0_26 = arith.constant 0 : index
    %c0_27 = arith.constant 0 : index
    %65 = vector.load %arg19[%c0_26, %c0_27] : memref<17x64xf32, #tpu.memory_space<vmem>>, vector<17x64xf32>
    %66 = arith.truncf %65 : vector<17x64xf32> to vector<17x64xbf16>
    %c0_28 = arith.constant 0 : index
    %c0_29 = arith.constant 0 : index
    %67 = vector.load %arg6[%c0_28, %c0_29] : memref<64x64xbf16, #tpu.memory_space<vmem>>, vector<64x64xbf16>
    %cst_30 = arith.constant dense<0.000000e+00> : vector<17x64xf32>
    %68 = tpu.matmul %66, %67, %cst_30 {dimension_numbers = #tpu.dot_dimension_numbers<[1], [0], [0], [1], [0, 0, 1, 1], [], []>} : vector<17x64xbf16>, vector<64x64xbf16>, vector<17x64xf32> -> vector<17x64xf32>
    %c0_31 = arith.constant 0 : index
    %c0_32 = arith.constant 0 : index
    %69 = vector.load %arg7[%c0_31, %c0_32] : memref<1x64xf32, #tpu.memory_space<vmem>>, vector<1x64xf32>
    %70 = vector.broadcast %69 : vector<1x64xf32> to vector<17x64xf32>
    %71 = arith.addf %68, %70 : vector<17x64xf32>
    %72 = arith.addf %23, %71 : vector<17x64xf32>
    %c0_33 = arith.constant 0 : index
    %c0_34 = arith.constant 0 : index
    %73 = vector.load %arg8[%c0_33, %c0_34] : memref<1x64xf32, #tpu.memory_space<vmem>>, vector<1x64xf32>
    %c0_35 = arith.constant 0 : index
    %c0_36 = arith.constant 0 : index
    %74 = vector.load %arg9[%c0_35, %c0_36] : memref<1x64xf32, #tpu.memory_space<vmem>>, vector<1x64xf32>
    %cst_37 = arith.constant dense<0.000000e+00> : vector<17xf32>
    %75 = vector.multi_reduction <add>, %72, %cst_37 [1] : vector<17x64xf32> to vector<17xf32>
    %76 = vector.shape_cast %75 : vector<17xf32> to vector<17x1xf32>
    %cst_38 = arith.constant 6.400000e+01 : f32
    %77 = vector.broadcast %cst_38 : f32 to vector<17x1xf32>
    %78 = arith.divf %76, %77 : vector<17x1xf32>
    %79 = vector.broadcast %78 : vector<17x1xf32> to vector<17x64xf32>
    %80 = arith.subf %72, %79 : vector<17x64xf32>
    %81 = arith.mulf %80, %80 : vector<17x64xf32>
    %cst_39 = arith.constant dense<0.000000e+00> : vector<17xf32>
    %82 = vector.multi_reduction <add>, %81, %cst_39 [1] : vector<17x64xf32> to vector<17xf32>
    %83 = vector.shape_cast %82 : vector<17xf32> to vector<17x1xf32>
    %cst_40 = arith.constant 6.400000e+01 : f32
    %84 = vector.broadcast %cst_40 : f32 to vector<17x1xf32>
    %85 = arith.divf %83, %84 : vector<17x1xf32>
    %cst_41 = arith.constant 9.99999974E-6 : f32
    %86 = vector.broadcast %cst_41 : f32 to vector<17x1xf32>
    %87 = arith.addf %85, %86 : vector<17x1xf32>
    %88 = math.rsqrt %87 : vector<17x1xf32>
    %89 = vector.broadcast %88 : vector<17x1xf32> to vector<17x64xf32>
    %90 = arith.mulf %80, %89 : vector<17x64xf32>
    %91 = vector.broadcast %73 : vector<1x64xf32> to vector<17x64xf32>
    %92 = arith.mulf %90, %91 : vector<17x64xf32>
    %93 = vector.broadcast %74 : vector<1x64xf32> to vector<17x64xf32>
    %94 = arith.addf %92, %93 : vector<17x64xf32>
    %95 = arith.truncf %94 : vector<17x64xf32> to vector<17x64xbf16>
    %c0_42 = arith.constant 0 : index
    %c0_43 = arith.constant 0 : index
    %96 = vector.load %arg10[%c0_42, %c0_43] : memref<64x128xbf16, #tpu.memory_space<vmem>>, vector<64x128xbf16>
    %cst_44 = arith.constant dense<0.000000e+00> : vector<17x128xf32>
    %97 = tpu.matmul %95, %96, %cst_44 {dimension_numbers = #tpu.dot_dimension_numbers<[1], [0], [0], [1], [0, 0, 1, 1], [], []>} : vector<17x64xbf16>, vector<64x128xbf16>, vector<17x128xf32> -> vector<17x128xf32>
    %c0_45 = arith.constant 0 : index
    %c0_46 = arith.constant 0 : index
    %98 = vector.load %arg11[%c0_45, %c0_46] : memref<1x128xf32, #tpu.memory_space<vmem>>, vector<1x128xf32>
    %99 = vector.broadcast %98 : vector<1x128xf32> to vector<17x128xf32>
    %100 = arith.addf %97, %99 : vector<17x128xf32>
    %cst_47 = arith.constant 0.000000e+00 : f32
    %101 = vector.broadcast %cst_47 : f32 to vector<17x128xf32>
    %102 = arith.maximumf %100, %101 : vector<17x128xf32>
    %103 = arith.truncf %102 : vector<17x128xf32> to vector<17x128xbf16>
    %c0_48 = arith.constant 0 : index
    %c0_49 = arith.constant 0 : index
    %104 = vector.load %arg12[%c0_48, %c0_49] : memref<128x64xbf16, #tpu.memory_space<vmem>>, vector<128x64xbf16>
    %cst_50 = arith.constant dense<0.000000e+00> : vector<17x64xf32>
    %105 = tpu.matmul %103, %104, %cst_50 {dimension_numbers = #tpu.dot_dimension_numbers<[1], [0], [0], [1], [0, 0, 1, 1], [], []>} : vector<17x128xbf16>, vector<128x64xbf16>, vector<17x64xf32> -> vector<17x64xf32>
    %c0_51 = arith.constant 0 : index
    %c0_52 = arith.constant 0 : index
    %106 = vector.load %arg13[%c0_51, %c0_52] : memref<1x64xf32, #tpu.memory_space<vmem>>, vector<1x64xf32>
    %107 = vector.broadcast %106 : vector<1x64xf32> to vector<17x64xf32>
    %108 = arith.addf %105, %107 : vector<17x64xf32>
    %109 = arith.addf %94, %108 : vector<17x64xf32>
    %c0_53 = arith.constant 0 : index
    %c0_54 = arith.constant 0 : index
    %110 = vector.load %arg14[%c0_53, %c0_54] : memref<1x64xf32, #tpu.memory_space<vmem>>, vector<1x64xf32>
    %c0_55 = arith.constant 0 : index
    %c0_56 = arith.constant 0 : index
    %111 = vector.load %arg15[%c0_55, %c0_56] : memref<1x64xf32, #tpu.memory_space<vmem>>, vector<1x64xf32>
    %cst_57 = arith.constant dense<0.000000e+00> : vector<17xf32>
    %112 = vector.multi_reduction <add>, %109, %cst_57 [1] : vector<17x64xf32> to vector<17xf32>
    %113 = vector.shape_cast %112 : vector<17xf32> to vector<17x1xf32>
    %cst_58 = arith.constant 6.400000e+01 : f32
    %114 = vector.broadcast %cst_58 : f32 to vector<17x1xf32>
    %115 = arith.divf %113, %114 : vector<17x1xf32>
    %116 = vector.broadcast %115 : vector<17x1xf32> to vector<17x64xf32>
    %117 = arith.subf %109, %116 : vector<17x64xf32>
    %118 = arith.mulf %117, %117 : vector<17x64xf32>
    %cst_59 = arith.constant dense<0.000000e+00> : vector<17xf32>
    %119 = vector.multi_reduction <add>, %118, %cst_59 [1] : vector<17x64xf32> to vector<17xf32>
    %120 = vector.shape_cast %119 : vector<17xf32> to vector<17x1xf32>
    %cst_60 = arith.constant 6.400000e+01 : f32
    %121 = vector.broadcast %cst_60 : f32 to vector<17x1xf32>
    %122 = arith.divf %120, %121 : vector<17x1xf32>
    %cst_61 = arith.constant 9.99999974E-6 : f32
    %123 = vector.broadcast %cst_61 : f32 to vector<17x1xf32>
    %124 = arith.addf %122, %123 : vector<17x1xf32>
    %125 = math.rsqrt %124 : vector<17x1xf32>
    %126 = vector.broadcast %125 : vector<17x1xf32> to vector<17x64xf32>
    %127 = arith.mulf %117, %126 : vector<17x64xf32>
    %128 = vector.broadcast %110 : vector<1x64xf32> to vector<17x64xf32>
    %129 = arith.mulf %127, %128 : vector<17x64xf32>
    %130 = vector.broadcast %111 : vector<1x64xf32> to vector<17x64xf32>
    %131 = arith.addf %129, %130 : vector<17x64xf32>
    %132 = vector.extract_strided_slice %131 {offsets = [0, 0], sizes = [1, 64], strides = [1, 1]} : vector<17x64xf32> to vector<1x64xf32>
    %133 = vector.extract_strided_slice %131 {offsets = [1, 0], sizes = [16, 64], strides = [1, 1]} : vector<17x64xf32> to vector<16x64xf32>
    %cst_62 = arith.constant dense<0.000000e+00> : vector<64xf32>
    %134 = vector.multi_reduction <add>, %133, %cst_62 [0] : vector<16x64xf32> to vector<64xf32>
    %135 = vector.shape_cast %134 : vector<64xf32> to vector<1x64xf32>
    %cst_63 = arith.constant 1.600000e+01 : f32
    %136 = vector.broadcast %cst_63 : f32 to vector<1x64xf32>
    %137 = arith.divf %135, %136 : vector<1x64xf32>
    %c0_64 = arith.constant 0 : index
    %c0_65 = arith.constant 0 : index
    %138 = vector.load %arg20[%c0_64, %c0_65] : memref<2x128xf32, #tpu.memory_space<vmem>>, vector<1x64xf32>
    tpu.vector_store %arg20[%c0_64, %c0_65], %132 {strides = array<i32>} : memref<2x128xf32, #tpu.memory_space<vmem>>, vector<1x64xf32>,
    %c0_66 = arith.constant 0 : index
    %c64 = arith.constant 64 : index
    %139 = vector.load %arg20[%c0_66, %c64] : memref<2x128xf32, #tpu.memory_space<vmem>>, vector<1x64xf32>
    tpu.vector_store %arg20[%c0_66, %c64], %137 {strides = array<i32>} : memref<2x128xf32, #tpu.memory_space<vmem>>, vector<1x64xf32>,
    %c1 = arith.constant 1 : index
    %c0_67 = arith.constant 0 : index
    %c0_68 = arith.constant 0 : index
    %140 = vector.load %arg1[%c1, %c0_67, %c0_68] : memref<2x17x64xf32, #tpu.memory_space<vmem>>, vector<1x17x64xf32>
    %141 = vector.shape_cast %140 : vector<1x17x64xf32> to vector<17x64xf32>
    %c0_69 = arith.constant 0 : index
    %c0_70 = arith.constant 0 : index
    %142 = vector.load %arg2[%c0_69, %c0_70] : memref<1x64xf32, #tpu.memory_space<vmem>>, vector<1x64xf32>
    %c0_71 = arith.constant 0 : index
    %c0_72 = arith.constant 0 : index
    %143 = vector.load %arg3[%c0_71, %c0_72] : memref<1x64xf32, #tpu.memory_space<vmem>>, vector<1x64xf32>
    %cst_73 = arith.constant dense<0.000000e+00> : vector<17xf32>
    %144 = vector.multi_reduction <add>, %141, %cst_73 [1] : vector<17x64xf32> to vector<17xf32>
    %145 = vector.shape_cast %144 : vector<17xf32> to vector<17x1xf32>
    %cst_74 = arith.constant 6.400000e+01 : f32
    %146 = vector.broadcast %cst_74 : f32 to vector<17x1xf32>
    %147 = arith.divf %145, %146 : vector<17x1xf32>
    %148 = vector.broadcast %147 : vector<17x1xf32> to vector<17x64xf32>
    %149 = arith.subf %141, %148 : vector<17x64xf32>
    %150 = arith.mulf %149, %149 : vector<17x64xf32>
    %cst_75 = arith.constant dense<0.000000e+00> : vector<17xf32>
    %151 = vector.multi_reduction <add>, %150, %cst_75 [1] : vector<17x64xf32> to vector<17xf32>
    %152 = vector.shape_cast %151 : vector<17xf32> to vector<17x1xf32>
    %cst_76 = arith.constant 6.400000e+01 : f32
    %153 = vector.broadcast %cst_76 : f32 to vector<17x1xf32>
    %154 = arith.divf %152, %153 : vector<17x1xf32>
    %cst_77 = arith.constant 9.99999974E-6 : f32
    %155 = vector.broadcast %cst_77 : f32 to vector<17x1xf32>
    %156 = arith.addf %154, %155 : vector<17x1xf32>
    %157 = math.rsqrt %156 : vector<17x1xf32>
    %158 = vector.broadcast %157 : vector<17x1xf32> to vector<17x64xf32>
    %159 = arith.mulf %149, %158 : vector<17x64xf32>
    %160 = vector.broadcast %142 : vector<1x64xf32> to vector<17x64xf32>
    %161 = arith.mulf %159, %160 : vector<17x64xf32>
    %162 = vector.broadcast %143 : vector<1x64xf32> to vector<17x64xf32>
    %163 = arith.addf %161, %162 : vector<17x64xf32>
    %164 = arith.truncf %163 : vector<17x64xf32> to vector<17x64xbf16>
    %c0_78 = arith.constant 0 : index
    %c0_79 = arith.constant 0 : index
    %165 = vector.load %arg4[%c0_78, %c0_79] : memref<64x192xbf16, #tpu.memory_space<vmem>>, vector<64x192xbf16>
    %cst_80 = arith.constant dense<0.000000e+00> : vector<17x192xf32>
    %166 = tpu.matmul %164, %165, %cst_80 {dimension_numbers = #tpu.dot_dimension_numbers<[1], [0], [0], [1], [0, 0, 1, 1], [], []>} : vector<17x64xbf16>, vector<64x192xbf16>, vector<17x192xf32> -> vector<17x192xf32>
    %c0_81 = arith.constant 0 : index
    %c0_82 = arith.constant 0 : index
    %167 = vector.load %arg5[%c0_81, %c0_82] : memref<1x192xf32, #tpu.memory_space<vmem>>, vector<1x192xf32>
    %168 = vector.broadcast %167 : vector<1x192xf32> to vector<17x192xf32>
    %169 = arith.addf %166, %168 : vector<17x192xf32>
    %170 = arith.truncf %169 : vector<17x192xf32> to vector<17x192xbf16>
    %171 = vector.extract_strided_slice %170 {offsets = [0, 0], sizes = [17, 32], strides = [1, 1]} : vector<17x192xbf16> to vector<17x32xbf16>
    %172 = vector.extract_strided_slice %170 {offsets = [0, 64], sizes = [17, 32], strides = [1, 1]} : vector<17x192xbf16> to vector<17x32xbf16>
    %173 = vector.extract_strided_slice %170 {offsets = [0, 128], sizes = [17, 32], strides = [1, 1]} : vector<17x192xbf16> to vector<17x32xbf16>
    %cst_83 = arith.constant dense<0.000000e+00> : vector<17x17xf32>
    %174 = tpu.matmul %171, %172, %cst_83 {dimension_numbers = #tpu.dot_dimension_numbers<[1], [1], [0], [0], [0, 0, 1, 0], [], []>} : vector<17x32xbf16>, vector<17x32xbf16>, vector<17x17xf32> -> vector<17x17xf32>
    %cst_84 = arith.constant dense<0xFF800000> : vector<17xf32>
    %175 = vector.multi_reduction <maximumf>, %174, %cst_84 [1] : vector<17x17xf32> to vector<17xf32>
    %176 = vector.shape_cast %175 : vector<17xf32> to vector<17x1xf32>
    %177 = vector.broadcast %176 : vector<17x1xf32> to vector<17x17xf32>
    %178 = arith.subf %174, %177 : vector<17x17xf32>
    %179 = math.exp %178 : vector<17x17xf32>
    %cst_85 = arith.constant dense<0.000000e+00> : vector<17xf32>
    %180 = vector.multi_reduction <add>, %179, %cst_85 [1] : vector<17x17xf32> to vector<17xf32>
    %181 = vector.shape_cast %180 : vector<17xf32> to vector<17x1xf32>
    %182 = tpu.reciprocal %181 {approx = true} : vector<17x1xf32> -> vector<17x1xf32>
    %183 = vector.broadcast %182 : vector<17x1xf32> to vector<17x17xf32>
    %184 = arith.mulf %179, %183 : vector<17x17xf32>
    %185 = arith.truncf %184 : vector<17x17xf32> to vector<17x17xbf16>
    %cst_86 = arith.constant dense<0.000000e+00> : vector<17x32xf32>
    %186 = tpu.matmul %185, %173, %cst_86 {dimension_numbers = #tpu.dot_dimension_numbers<[1], [0], [0], [1], [0, 0, 1, 1], [], []>} : vector<17x17xbf16>, vector<17x32xbf16>, vector<17x32xf32> -> vector<17x32xf32>
    %c0_87 = arith.constant 0 : index
    %c0_88 = arith.constant 0 : index
    %187 = vector.load %arg19[%c0_87, %c0_88] : memref<17x64xf32, #tpu.memory_space<vmem>>, vector<17x32xf32>
    tpu.vector_store %arg19[%c0_87, %c0_88], %186 {strides = array<i32>} : memref<17x64xf32, #tpu.memory_space<vmem>>, vector<17x32xf32>,
    %188 = vector.extract_strided_slice %170 {offsets = [0, 32], sizes = [17, 32], strides = [1, 1]} : vector<17x192xbf16> to vector<17x32xbf16>
    %189 = vector.extract_strided_slice %170 {offsets = [0, 96], sizes = [17, 32], strides = [1, 1]} : vector<17x192xbf16> to vector<17x32xbf16>
    %190 = vector.extract_strided_slice %170 {offsets = [0, 160], sizes = [17, 32], strides = [1, 1]} : vector<17x192xbf16> to vector<17x32xbf16>
    %cst_89 = arith.constant dense<0.000000e+00> : vector<17x17xf32>
    %191 = tpu.matmul %188, %189, %cst_89 {dimension_numbers = #tpu.dot_dimension_numbers<[1], [1], [0], [0], [0, 0, 1, 0], [], []>} : vector<17x32xbf16>, vector<17x32xbf16>, vector<17x17xf32> -> vector<17x17xf32>
    %cst_90 = arith.constant dense<0xFF800000> : vector<17xf32>
    %192 = vector.multi_reduction <maximumf>, %191, %cst_90 [1] : vector<17x17xf32> to vector<17xf32>
    %193 = vector.shape_cast %192 : vector<17xf32> to vector<17x1xf32>
    %194 = vector.broadcast %193 : vector<17x1xf32> to vector<17x17xf32>
    %195 = arith.subf %191, %194 : vector<17x17xf32>
    %196 = math.exp %195 : vector<17x17xf32>
    %cst_91 = arith.constant dense<0.000000e+00> : vector<17xf32>
    %197 = vector.multi_reduction <add>, %196, %cst_91 [1] : vector<17x17xf32> to vector<17xf32>
    %198 = vector.shape_cast %197 : vector<17xf32> to vector<17x1xf32>
    %199 = tpu.reciprocal %198 {approx = true} : vector<17x1xf32> -> vector<17x1xf32>
    %200 = vector.broadcast %199 : vector<17x1xf32> to vector<17x17xf32>
    %201 = arith.mulf %196, %200 : vector<17x17xf32>
    %202 = arith.truncf %201 : vector<17x17xf32> to vector<17x17xbf16>
    %cst_92 = arith.constant dense<0.000000e+00> : vector<17x32xf32>
    %203 = tpu.matmul %202, %190, %cst_92 {dimension_numbers = #tpu.dot_dimension_numbers<[1], [0], [0], [1], [0, 0, 1, 1], [], []>} : vector<17x17xbf16>, vector<17x32xbf16>, vector<17x32xf32> -> vector<17x32xf32>
    %c0_93 = arith.constant 0 : index
    %c32_94 = arith.constant 32 : index
    %204 = vector.load %arg19[%c0_93, %c32_94] : memref<17x64xf32, #tpu.memory_space<vmem>>, vector<17x32xf32>
    tpu.vector_store %arg19[%c0_93, %c32_94], %203 {strides = array<i32>} : memref<17x64xf32, #tpu.memory_space<vmem>>, vector<17x32xf32>,
    %c0_95 = arith.constant 0 : index
    %c0_96 = arith.constant 0 : index
    %205 = vector.load %arg19[%c0_95, %c0_96] : memref<17x64xf32, #tpu.memory_space<vmem>>, vector<17x64xf32>
    %206 = arith.truncf %205 : vector<17x64xf32> to vector<17x64xbf16>
    %c0_97 = arith.constant 0 : index
    %c0_98 = arith.constant 0 : index
    %207 = vector.load %arg6[%c0_97, %c0_98] : memref<64x64xbf16, #tpu.memory_space<vmem>>, vector<64x64xbf16>
    %cst_99 = arith.constant dense<0.000000e+00> : vector<17x64xf32>
    %208 = tpu.matmul %206, %207, %cst_99 {dimension_numbers = #tpu.dot_dimension_numbers<[1], [0], [0], [1], [0, 0, 1, 1], [], []>} : vector<17x64xbf16>, vector<64x64xbf16>, vector<17x64xf32> -> vector<17x64xf32>
    %c0_100 = arith.constant 0 : index
    %c0_101 = arith.constant 0 : index
    %209 = vector.load %arg7[%c0_100, %c0_101] : memref<1x64xf32, #tpu.memory_space<vmem>>, vector<1x64xf32>
    %210 = vector.broadcast %209 : vector<1x64xf32> to vector<17x64xf32>
    %211 = arith.addf %208, %210 : vector<17x64xf32>
    %212 = arith.addf %163, %211 : vector<17x64xf32>
    %c0_102 = arith.constant 0 : index
    %c0_103 = arith.constant 0 : index
    %213 = vector.load %arg8[%c0_102, %c0_103] : memref<1x64xf32, #tpu.memory_space<vmem>>, vector<1x64xf32>
    %c0_104 = arith.constant 0 : index
    %c0_105 = arith.constant 0 : index
    %214 = vector.load %arg9[%c0_104, %c0_105] : memref<1x64xf32, #tpu.memory_space<vmem>>, vector<1x64xf32>
    %cst_106 = arith.constant dense<0.000000e+00> : vector<17xf32>
    %215 = vector.multi_reduction <add>, %212, %cst_106 [1] : vector<17x64xf32> to vector<17xf32>
    %216 = vector.shape_cast %215 : vector<17xf32> to vector<17x1xf32>
    %cst_107 = arith.constant 6.400000e+01 : f32
    %217 = vector.broadcast %cst_107 : f32 to vector<17x1xf32>
    %218 = arith.divf %216, %217 : vector<17x1xf32>
    %219 = vector.broadcast %218 : vector<17x1xf32> to vector<17x64xf32>
    %220 = arith.subf %212, %219 : vector<17x64xf32>
    %221 = arith.mulf %220, %220 : vector<17x64xf32>
    %cst_108 = arith.constant dense<0.000000e+00> : vector<17xf32>
    %222 = vector.multi_reduction <add>, %221, %cst_108 [1] : vector<17x64xf32> to vector<17xf32>
    %223 = vector.shape_cast %222 : vector<17xf32> to vector<17x1xf32>
    %cst_109 = arith.constant 6.400000e+01 : f32
    %224 = vector.broadcast %cst_109 : f32 to vector<17x1xf32>
    %225 = arith.divf %223, %224 : vector<17x1xf32>
    %cst_110 = arith.constant 9.99999974E-6 : f32
    %226 = vector.broadcast %cst_110 : f32 to vector<17x1xf32>
    %227 = arith.addf %225, %226 : vector<17x1xf32>
    %228 = math.rsqrt %227 : vector<17x1xf32>
    %229 = vector.broadcast %228 : vector<17x1xf32> to vector<17x64xf32>
    %230 = arith.mulf %220, %229 : vector<17x64xf32>
    %231 = vector.broadcast %213 : vector<1x64xf32> to vector<17x64xf32>
    %232 = arith.mulf %230, %231 : vector<17x64xf32>
    %233 = vector.broadcast %214 : vector<1x64xf32> to vector<17x64xf32>
    %234 = arith.addf %232, %233 : vector<17x64xf32>
    %235 = arith.truncf %234 : vector<17x64xf32> to vector<17x64xbf16>
    %c0_111 = arith.constant 0 : index
    %c0_112 = arith.constant 0 : index
    %236 = vector.load %arg10[%c0_111, %c0_112] : memref<64x128xbf16, #tpu.memory_space<vmem>>, vector<64x128xbf16>
    %cst_113 = arith.constant dense<0.000000e+00> : vector<17x128xf32>
    %237 = tpu.matmul %235, %236, %cst_113 {dimension_numbers = #tpu.dot_dimension_numbers<[1], [0], [0], [1], [0, 0, 1, 1], [], []>} : vector<17x64xbf16>, vector<64x128xbf16>, vector<17x128xf32> -> vector<17x128xf32>
    %c0_114 = arith.constant 0 : index
    %c0_115 = arith.constant 0 : index
    %238 = vector.load %arg11[%c0_114, %c0_115] : memref<1x128xf32, #tpu.memory_space<vmem>>, vector<1x128xf32>
    %239 = vector.broadcast %238 : vector<1x128xf32> to vector<17x128xf32>
    %240 = arith.addf %237, %239 : vector<17x128xf32>
    %cst_116 = arith.constant 0.000000e+00 : f32
    %241 = vector.broadcast %cst_116 : f32 to vector<17x128xf32>
    %242 = arith.maximumf %240, %241 : vector<17x128xf32>
    %243 = arith.truncf %242 : vector<17x128xf32> to vector<17x128xbf16>
    %c0_117 = arith.constant 0 : index
    %c0_118 = arith.constant 0 : index
    %244 = vector.load %arg12[%c0_117, %c0_118] : memref<128x64xbf16, #tpu.memory_space<vmem>>, vector<128x64xbf16>
    %cst_119 = arith.constant dense<0.000000e+00> : vector<17x64xf32>
    %245 = tpu.matmul %243, %244, %cst_119 {dimension_numbers = #tpu.dot_dimension_numbers<[1], [0], [0], [1], [0, 0, 1, 1], [], []>} : vector<17x128xbf16>, vector<128x64xbf16>, vector<17x64xf32> -> vector<17x64xf32>
    %c0_120 = arith.constant 0 : index
    %c0_121 = arith.constant 0 : index
    %246 = vector.load %arg13[%c0_120, %c0_121] : memref<1x64xf32, #tpu.memory_space<vmem>>, vector<1x64xf32>
    %247 = vector.broadcast %246 : vector<1x64xf32> to vector<17x64xf32>
    %248 = arith.addf %245, %247 : vector<17x64xf32>
    %249 = arith.addf %234, %248 : vector<17x64xf32>
    %c0_122 = arith.constant 0 : index
    %c0_123 = arith.constant 0 : index
    %250 = vector.load %arg14[%c0_122, %c0_123] : memref<1x64xf32, #tpu.memory_space<vmem>>, vector<1x64xf32>
    %c0_124 = arith.constant 0 : index
    %c0_125 = arith.constant 0 : index
    %251 = vector.load %arg15[%c0_124, %c0_125] : memref<1x64xf32, #tpu.memory_space<vmem>>, vector<1x64xf32>
    %cst_126 = arith.constant dense<0.000000e+00> : vector<17xf32>
    %252 = vector.multi_reduction <add>, %249, %cst_126 [1] : vector<17x64xf32> to vector<17xf32>
    %253 = vector.shape_cast %252 : vector<17xf32> to vector<17x1xf32>
    %cst_127 = arith.constant 6.400000e+01 : f32
    %254 = vector.broadcast %cst_127 : f32 to vector<17x1xf32>
    %255 = arith.divf %253, %254 : vector<17x1xf32>
    %256 = vector.broadcast %255 : vector<17x1xf32> to vector<17x64xf32>
    %257 = arith.subf %249, %256 : vector<17x64xf32>
    %258 = arith.mulf %257, %257 : vector<17x64xf32>
    %cst_128 = arith.constant dense<0.000000e+00> : vector<17xf32>
    %259 = vector.multi_reduction <add>, %258, %cst_128 [1] : vector<17x64xf32> to vector<17xf32>
    %260 = vector.shape_cast %259 : vector<17xf32> to vector<17x1xf32>
    %cst_129 = arith.constant 6.400000e+01 : f32
    %261 = vector.broadcast %cst_129 : f32 to vector<17x1xf32>
    %262 = arith.divf %260, %261 : vector<17x1xf32>
    %cst_130 = arith.constant 9.99999974E-6 : f32
    %263 = vector.broadcast %cst_130 : f32 to vector<17x1xf32>
    %264 = arith.addf %262, %263 : vector<17x1xf32>
    %265 = math.rsqrt %264 : vector<17x1xf32>
    %266 = vector.broadcast %265 : vector<17x1xf32> to vector<17x64xf32>
    %267 = arith.mulf %257, %266 : vector<17x64xf32>
    %268 = vector.broadcast %250 : vector<1x64xf32> to vector<17x64xf32>
    %269 = arith.mulf %267, %268 : vector<17x64xf32>
    %270 = vector.broadcast %251 : vector<1x64xf32> to vector<17x64xf32>
    %271 = arith.addf %269, %270 : vector<17x64xf32>
    %272 = vector.extract_strided_slice %271 {offsets = [0, 0], sizes = [1, 64], strides = [1, 1]} : vector<17x64xf32> to vector<1x64xf32>
    %273 = vector.extract_strided_slice %271 {offsets = [1, 0], sizes = [16, 64], strides = [1, 1]} : vector<17x64xf32> to vector<16x64xf32>
    %cst_131 = arith.constant dense<0.000000e+00> : vector<64xf32>
    %274 = vector.multi_reduction <add>, %273, %cst_131 [0] : vector<16x64xf32> to vector<64xf32>
    %275 = vector.shape_cast %274 : vector<64xf32> to vector<1x64xf32>
    %cst_132 = arith.constant 1.600000e+01 : f32
    %276 = vector.broadcast %cst_132 : f32 to vector<1x64xf32>
    %277 = arith.divf %275, %276 : vector<1x64xf32>
    %c1_133 = arith.constant 1 : index
    %c0_134 = arith.constant 0 : index
    %278 = vector.load %arg20[%c1_133, %c0_134] : memref<2x128xf32, #tpu.memory_space<vmem>>, vector<1x64xf32>
    tpu.vector_store %arg20[%c1_133, %c0_134], %272 {strides = array<i32>} : memref<2x128xf32, #tpu.memory_space<vmem>>, vector<1x64xf32>,
    %c1_135 = arith.constant 1 : index
    %c64_136 = arith.constant 64 : index
    %279 = vector.load %arg20[%c1_135, %c64_136] : memref<2x128xf32, #tpu.memory_space<vmem>>, vector<1x64xf32>
    tpu.vector_store %arg20[%c1_135, %c64_136], %277 {strides = array<i32>} : memref<2x128xf32, #tpu.memory_space<vmem>>, vector<1x64xf32>,
    %c0_137 = arith.constant 0 : index
    %c0_138 = arith.constant 0 : index
    %280 = vector.load %arg20[%c0_137, %c0_138] : memref<2x128xf32, #tpu.memory_space<vmem>>, vector<2x128xf32>
    %281 = arith.truncf %280 : vector<2x128xf32> to vector<2x128xbf16>
    %c0_139 = arith.constant 0 : index
    %c0_140 = arith.constant 0 : index
    %282 = vector.load %arg16[%c0_139, %c0_140] : memref<128x32xbf16, #tpu.memory_space<vmem>>, vector<128x32xbf16>
    %cst_141 = arith.constant dense<0.000000e+00> : vector<2x32xf32>
    %283 = tpu.matmul %281, %282, %cst_141 {dimension_numbers = #tpu.dot_dimension_numbers<[1], [0], [0], [1], [0, 0, 1, 1], [], []>} : vector<2x128xbf16>, vector<128x32xbf16>, vector<2x32xf32> -> vector<2x32xf32>
    %c0_142 = arith.constant 0 : index
    %c0_143 = arith.constant 0 : index
    %284 = vector.load %arg17[%c0_142, %c0_143] : memref<1x32xf32, #tpu.memory_space<vmem>>, vector<1x32xf32>
    %285 = vector.broadcast %284 : vector<1x32xf32> to vector<2x32xf32>
    %286 = arith.addf %283, %285 : vector<2x32xf32>
    %cst_144 = arith.constant 0.000000e+00 : f32
    %287 = vector.broadcast %cst_144 : f32 to vector<2x32xf32>
    %288 = arith.maximumf %286, %287 : vector<2x32xf32>
    %289 = vector.extract_strided_slice %288 {offsets = [0, 0], sizes = [1, 32], strides = [1, 1]} : vector<2x32xf32> to vector<1x32xf32>
    %c0_145 = arith.constant 0 : index
    %c0_146 = arith.constant 0 : index
    %c0_147 = arith.constant 0 : index
    %290 = vector.load %arg18[%c0_145, %c0_146, %c0_147] : memref<2x1x32xf32, #tpu.memory_space<vmem>>, vector<1x1x32xf32>
    %291 = vector.shape_cast %290 : vector<1x1x32xf32> to vector<1x32xf32>
    %292 = vector.shape_cast %289 : vector<1x32xf32> to vector<1x1x32xf32>
    tpu.vector_store %arg18[%c0_145, %c0_146, %c0_147], %292 {strides = array<i32>} : memref<2x1x32xf32, #tpu.memory_space<vmem>>, vector<1x1x32xf32>,
    %293 = vector.extract_strided_slice %288 {offsets = [1, 0], sizes = [1, 32], strides = [1, 1]} : vector<2x32xf32> to vector<1x32xf32>
    %c1_148 = arith.constant 1 : index
    %c0_149 = arith.constant 0 : index
    %c0_150 = arith.constant 0 : index
    %294 = vector.load %arg18[%c1_148, %c0_149, %c0_150] : memref<2x1x32xf32, #tpu.memory_space<vmem>>, vector<1x1x32xf32>
    %295 = vector.shape_cast %294 : vector<1x1x32xf32> to vector<1x32xf32>
    %296 = vector.shape_cast %293 : vector<1x32xf32> to vector<1x1x32xf32>
    tpu.vector_store %arg18[%c1_148, %c0_149, %c0_150], %296 {strides = array<i32>} : memref<2x1x32xf32, #tpu.memory_space<vmem>>, vector<1x1x32xf32>,
    return
  }
  func.func @transform_0(%arg0: i32) -> (i32, i32, i32) {
    %c0_i32 = arith.constant 0 : i32
    %c0_i32_0 = arith.constant 0 : i32
    %c0_i32_1 = arith.constant 0 : i32
    return %arg0, %c0_i32, %c0_i32_0 : i32, i32, i32
  }
  func.func @transform_1(%arg0: i32) -> (i32, i32) {
    %c0_i32 = arith.constant 0 : i32
    %c0_i32_0 = arith.constant 0 : i32
    %c0_i32_1 = arith.constant 0 : i32
    return %c0_i32, %c0_i32_0 : i32, i32
  }
  func.func @transform_2(%arg0: i32) -> (i32, i32) {
    %c0_i32 = arith.constant 0 : i32
    %c0_i32_0 = arith.constant 0 : i32
    %c0_i32_1 = arith.constant 0 : i32
    return %c0_i32, %c0_i32_0 : i32, i32
  }
  func.func @transform_3(%arg0: i32) -> (i32, i32) {
    %c0_i32 = arith.constant 0 : i32
    %c0_i32_0 = arith.constant 0 : i32
    %c0_i32_1 = arith.constant 0 : i32
    return %c0_i32, %c0_i32_0 : i32, i32
  }
  func.func @transform_4(%arg0: i32) -> (i32, i32) {
    %c0_i32 = arith.constant 0 : i32
    %c0_i32_0 = arith.constant 0 : i32
    %c0_i32_1 = arith.constant 0 : i32
    return %c0_i32, %c0_i32_0 : i32, i32
  }
  func.func @transform_5(%arg0: i32) -> (i32, i32) {
    %c0_i32 = arith.constant 0 : i32
    %c0_i32_0 = arith.constant 0 : i32
    %c0_i32_1 = arith.constant 0 : i32
    return %c0_i32, %c0_i32_0 : i32, i32
  }
  func.func @transform_6(%arg0: i32) -> (i32, i32) {
    %c0_i32 = arith.constant 0 : i32
    %c0_i32_0 = arith.constant 0 : i32
    %c0_i32_1 = arith.constant 0 : i32
    return %c0_i32, %c0_i32_0 : i32, i32
  }
  func.func @transform_7(%arg0: i32) -> (i32, i32) {
    %c0_i32 = arith.constant 0 : i32
    %c0_i32_0 = arith.constant 0 : i32
    %c0_i32_1 = arith.constant 0 : i32
    return %c0_i32, %c0_i32_0 : i32, i32
  }
  func.func @transform_8(%arg0: i32) -> (i32, i32) {
    %c0_i32 = arith.constant 0 : i32
    %c0_i32_0 = arith.constant 0 : i32
    %c0_i32_1 = arith.constant 0 : i32
    return %c0_i32, %c0_i32_0 : i32, i32
  }
  func.func @transform_9(%arg0: i32) -> (i32, i32) {
    %c0_i32 = arith.constant 0 : i32
    %c0_i32_0 = arith.constant 0 : i32
    %c0_i32_1 = arith.constant 0 : i32
    return %c0_i32, %c0_i32_0 : i32, i32
  }
  func.func @transform_10(%arg0: i32) -> (i32, i32) {
    %c0_i32 = arith.constant 0 : i32
    %c0_i32_0 = arith.constant 0 : i32
    %c0_i32_1 = arith.constant 0 : i32
    return %c0_i32, %c0_i32_0 : i32, i32
  }
  func.func @transform_11(%arg0: i32) -> (i32, i32) {
    %c0_i32 = arith.constant 0 : i32
    %c0_i32_0 = arith.constant 0 : i32
    %c0_i32_1 = arith.constant 0 : i32
    return %c0_i32, %c0_i32_0 : i32, i32
  }
  func.func @transform_12(%arg0: i32) -> (i32, i32) {
    %c0_i32 = arith.constant 0 : i32
    %c0_i32_0 = arith.constant 0 : i32
    %c0_i32_1 = arith.constant 0 : i32
    return %c0_i32, %c0_i32_0 : i32, i32
  }
  func.func @transform_13(%arg0: i32) -> (i32, i32) {
    %c0_i32 = arith.constant 0 : i32
    %c0_i32_0 = arith.constant 0 : i32
    %c0_i32_1 = arith.constant 0 : i32
    return %c0_i32, %c0_i32_0 : i32, i32
  }
  func.func @transform_14(%arg0: i32) -> (i32, i32) {
    %c0_i32 = arith.constant 0 : i32
    %c0_i32_0 = arith.constant 0 : i32
    %c0_i32_1 = arith.constant 0 : i32
    return %c0_i32, %c0_i32_0 : i32, i32
  }
  func.func @transform_15(%arg0: i32) -> (i32, i32) {
    %c0_i32 = arith.constant 0 : i32
    %c0_i32_0 = arith.constant 0 : i32
    %c0_i32_1 = arith.constant 0 : i32
    return %c0_i32, %c0_i32_0 : i32, i32
  }
  func.func @transform_16(%arg0: i32) -> (i32, i32) {
    %c0_i32 = arith.constant 0 : i32
    %c0_i32_0 = arith.constant 0 : i32
    %c0_i32_1 = arith.constant 0 : i32
    return %c0_i32, %c0_i32_0 : i32, i32
  }
  func.func @transform_17(%arg0: i32) -> (i32, i32, i32) {
    %c0_i32 = arith.constant 0 : i32
    %c0_i32_0 = arith.constant 0 : i32
    %c0_i32_1 = arith.constant 0 : i32
    return %arg0, %c0_i32, %c0_i32_0 : i32, i32, i32
  }
}

</mosaic_0001>

<bundles_post_ra>
// kernel: _lambda_.5
= control target key start
LH: loop header
LB: loop body
LE: loop exit
PB: predicated region body
PF: predicated region fallthrough
CT: control target
= control target key end

     0   :  { %v1168_v0 = vmov 0.0   ;;  %vm1169_vm0 = vmmov 0   ;;  %vm141_vm1 = vcmask 523264   ;;  %vm784_vm2 = vcmask 257024   ;;  %s1766_s1 = inlined_call_operand.vmem [shape: bf16[64,32], index: 1, kind: input, shape index: {}]   ;;  %s1767_s0 = inlined_call_operand.vmem [shape: f32[464,64], index: 0, kind: input, shape index: {}]   ;;  %s1768_s2 = inlined_call_operand.vmem [shape: f32[1,32], index: 2, kind: input, shape index: {}]   ;;  %s1769_s3 = inlined_call_operand.vmem [shape: bf16[464,32], index: 3, kind: output, shape index: {}]  }
   0x1   :  { %1030 = vmatprep.subr.bf16.mxu0 %v1168_v0  ;;  %v1164_v1 = vld [vmem:[%s1766_s1 + $0x18] sm:$0xff]   ;;  %1154 = vmatprep.subr.bf16.mxu1 %v1168_v0  ;;  %v1165_v2 = vld [vmem:[%s1766_s1 + $0x10] sm:$0xff]   ;;  %v1166_v3 = vld [vmem:[%s1766_s1 + $0x8] sm:$0xff]  }
   0x2   :  { %1038 = vmatprep.mubr.msk.bf16.mxu0 %vm1169_vm0, %v1168_v0  ;;  %1098 = vmatprep.mubr.msk.bf16.mxu1 %vm1169_vm0, %v1168_v0  ;;  %v1167_v4 = vld [vmem:[%s1766_s1] sm:$0xff]   ;;  %v16_v6 = vld [vmem:[%s1767_s0 + $0x8] sm:$0xff]  ;;  %v45_v7 = vld [vmem:[%s1767_s0 + $0xf0] sm:$0xff] }
   0x3   :  { %1031 = vmatpush3.bf16.msra.mxu0 %v1164_v1  ;;  %1158 = vmatpush3.bf16.msra.mxu1 %v1164_v1  ;;  %v15_v5 = vld [vmem:[%s1767_s0] sm:$0xff]  ;;  %v46_v8 = vld [vmem:[%s1767_s0 + $0xf8] sm:$0xff]  ;;  %v17_v11 = vld [vmem:[%s1767_s0 + $0x10] sm:$0xff] }
   0x4   :  { %1032 = vmatprep.subr.bf16.mxu0 %v1168_v0  ;;  %1155 = vmatprep.subr.bf16.mxu1 %v1168_v0  ;;  %v82_v9 = vpack.c.bf16 %v16_v6, %v15_v5  ;;  %v97_v10 = vpack.c.bf16 %v46_v8, %v45_v7  ;;  %v18_v12 = vld [vmem:[%s1767_s0 + $0x18] sm:$0xff]  ;;  %v47_v13 = vld [vmem:[%s1767_s0 + $0x100] sm:$0xff]  ;;  %v48_v14 = vld [vmem:[%s1767_s0 + $0x108] sm:$0xff] }
   0x5   :  { %v83_v15 = vpack.c.bf16 %v18_v12, %v17_v11  ;;  %v98_v16 = vpack.c.bf16 %v48_v14, %v47_v13  ;;  %v19_v17 = vld [vmem:[%s1767_s0 + $0x20] sm:$0xff]  ;;  %v20_v18 = vld [vmem:[%s1767_s0 + $0x28] sm:$0xff]  ;;  %v49_v19 = vld [vmem:[%s1767_s0 + $0x110] sm:$0xff] }
   0x6   :  { %v50_v20 = vld [vmem:[%s1767_s0 + $0x118] sm:$0xff]  ;;  %v84_v21 = vpack.c.bf16 %v20_v18, %v19_v17  ;;  %v21_v23 = vld [vmem:[%s1767_s0 + $0x30] sm:$0xff]  ;;  %v51_v25 = vld [vmem:[%s1767_s0 + $0x120] sm:$0xff] }
   0x7   :  { %1033 = vmatpush3.bf16.msra.mxu0 %v1165_v2  ;;  %1159 = vmatpush3.bf16.msra.mxu1 %v1165_v2  ;;  %v99_v22 = vpack.c.bf16 %v50_v20, %v49_v19  ;;  %v22_v24 = vld [vmem:[%s1767_s0 + $0x38] sm:$0xff]  ;;  %v52_v26 = vld [vmem:[%s1767_s0 + $0x128] sm:$0xff]  ;;  %v23_v29 = vld [vmem:[%s1767_s0 + $0x40] sm:$0xff] }
   0x8   :  { %1034 = vmatprep.subr.bf16.mxu0 %v1168_v0  ;;  %1156 = vmatprep.subr.bf16.mxu1 %v1168_v0  ;;  %v85_v27 = vpack.c.bf16 %v22_v24, %v21_v23  ;;  %v100_v28 = vpack.c.bf16 %v52_v26, %v51_v25  ;;  %v24_v30 = vld [vmem:[%s1767_s0 + $0x48] sm:$0xff]  ;;  %v53_v31 = vld [vmem:[%s1767_s0 + $0x130] sm:$0xff]  ;;  %v54_v32 = vld [vmem:[%s1767_s0 + $0x138] sm:$0xff] }
   0x9   :  { %v86_v33 = vpack.c.bf16 %v24_v30, %v23_v29  ;;  %v101_v34 = vpack.c.bf16 %v54_v32, %v53_v31  ;;  %v25_v35 = vld [vmem:[%s1767_s0 + $0x50] sm:$0xff]  ;;  %v26_v36 = vld [vmem:[%s1767_s0 + $0x58] sm:$0xff]  ;;  %v55_v37 = vld [vmem:[%s1767_s0 + $0x140] sm:$0xff] }
   0xa   :  { %v56_v38 = vld [vmem:[%s1767_s0 + $0x148] sm:$0xff]  ;;  %v87_v39 = vpack.c.bf16 %v26_v36, %v25_v35  ;;  %v27_v41 = vld [vmem:[%s1767_s0 + $0x60] sm:$0xff]  ;;  %v57_v43 = vld [vmem:[%s1767_s0 + $0x150] sm:$0xff] }
   0xb   :  { %1035 = vmatpush3.bf16.msra.mxu0 %v1166_v3  ;;  %1160 = vmatpush3.bf16.msra.mxu1 %v1166_v3  ;;  %v102_v40 = vpack.c.bf16 %v56_v38, %v55_v37  ;;  %v28_v42 = vld [vmem:[%s1767_s0 + $0x68] sm:$0xff]  ;;  %v58_v44 = vld [vmem:[%s1767_s0 + $0x158] sm:$0xff]  ;;  %v29_v47 = vld [vmem:[%s1767_s0 + $0x70] sm:$0xff] }
   0xc   :  { %1036 = vmatprep.subr.bf16.mxu0 %v1168_v0  ;;  %1157 = vmatprep.subr.bf16.mxu1 %v1168_v0  ;;  %v88_v45 = vpack.c.bf16 %v28_v42, %v27_v41  ;;  %v103_v46 = vpack.c.bf16 %v58_v44, %v57_v43  ;;  %v30_v48 = vld [vmem:[%s1767_s0 + $0x78] sm:$0xff]  ;;  %v59_v49 = vld [vmem:[%s1767_s0 + $0x160] sm:$0xff]  ;;  %v60_v50 = vld [vmem:[%s1767_s0 + $0x168] sm:$0xff] }
   0xd   :  { %v89_v51 = vpack.c.bf16 %v30_v48, %v29_v47  ;;  %v104_v52 = vpack.c.bf16 %v60_v50, %v59_v49  ;;  %v31_v53 = vld [vmem:[%s1767_s0 + $0x80] sm:$0xff]  ;;  %v32_v54 = vld [vmem:[%s1767_s0 + $0x88] sm:$0xff]  ;;  %v61_v55 = vld [vmem:[%s1767_s0 + $0x170] sm:$0xff] }
   0xe   :  { %v62_v56 = vld [vmem:[%s1767_s0 + $0x178] sm:$0xff]  ;;  %v90_v57 = vpack.c.bf16 %v32_v54, %v31_v53  ;;  %v33_v59 = vld [vmem:[%s1767_s0 + $0x90] sm:$0xff]  ;;  %v63_v61 = vld [vmem:[%s1767_s0 + $0x180] sm:$0xff] }
   0xf   :  { %1037 = vmatpush3.bf16.msra.mxu0 %v1167_v4  ;;  %1161 = vmatpush3.bf16.msra.mxu1 %v1167_v4  ;;  %v105_v58 = vpack.c.bf16 %v62_v56, %v61_v55  ;;  %v34_v60 = vld [vmem:[%s1767_s0 + $0x98] sm:$0xff]  ;;  %v64_v62 = vld [vmem:[%s1767_s0 + $0x188] sm:$0xff]  ;;  %v35_v2 = vld [vmem:[%s1767_s0 + $0xa0] sm:$0xff] }
  0x10   :  { %v91_v63 = vpack.c.bf16 %v34_v60, %v33_v59  ;;  %v106_v1 = vpack.c.bf16 %v64_v62, %v63_v61  ;;  %v36_v3 = vld [vmem:[%s1767_s0 + $0xa8] sm:$0xff]  ;;  %v65_v4 = vld [vmem:[%s1767_s0 + $0x190] sm:$0xff]  ;;  %v66_v5 = vld [vmem:[%s1767_s0 + $0x198] sm:$0xff] }
  0x11   :  { %v92_v6 = vpack.c.bf16 %v36_v3, %v35_v2  ;;  %v107_v7 = vpack.c.bf16 %v66_v5, %v65_v4  ;;  %v37_v8 = vld [vmem:[%s1767_s0 + $0xb0] sm:$0xff]  ;;  %v68_v11 = vld [vmem:[%s1767_s0 + $0x1a8] sm:$0xff]  ;;  %v39_v14 = vld [vmem:[%s1767_s0 + $0xc0] sm:$0xff] }
  0x12   :  { %1039 = vmatmul.mubr.msk.bf16.vlgmr.msra.gmra.mxu0 %vm141_vm1, %v82_v9  ;;  %1099 = vmatmul.mubr.msk.bf16.vlgmr.msra.gmra.mxu1 %vm141_vm1, %v97_v10  ;;  %v38_v9 = vld [vmem:[%s1767_s0 + $0xb8] sm:$0xff]  ;;  %v67_v10 = vld [vmem:[%s1767_s0 + $0x1a0] sm:$0xff]  ;;  %v41_v20 = vld [vmem:[%s1767_s0 + $0xd0] sm:$0xff] }
  0x13   :  { %1042 = vmatprep.mubr.msk.bf16.mxu0 %vm1169_vm0, %v1168_v0  ;;  %1102 = vmatprep.mubr.msk.bf16.mxu1 %vm1169_vm0, %v1168_v0  ;;  %v93_v12 = vpack.c.bf16 %v38_v9, %v37_v8  ;;  %v108_v13 = vpack.c.bf16 %v68_v11, %v67_v10  ;;  %v70_v17 = vld [vmem:[%s1767_s0 + $0x1b8] sm:$0xff]  ;;  %v72_v23 = vld [vmem:[%s1767_s0 + $0x1c8] sm:$0xff]  ;;  %v43_v26 = vld [vmem:[%s1767_s0 + $0xe0] sm:$0xff] }
  0x14   :  { %v1474_v29 = vld [vmem:[%s1768_s2] ss:$0 sm:$0xff] }
  0x1a   :  { %1043 = vmatmul.mubr.msk.bf16.gmra.mxu0 %vm141_vm1, %v83_v15  ;;  %1103 = vmatmul.mubr.msk.bf16.gmra.mxu1 %vm141_vm1, %v98_v16  ;;  %v40_v15 = vld [vmem:[%s1767_s0 + $0xc8] sm:$0xff]  ;;  %v69_v16 = vld [vmem:[%s1767_s0 + $0x1b0] sm:$0xff] }
  0x1b   :  { %1046 = vmatprep.mubr.msk.bf16.mxu0 %vm1169_vm0, %v1168_v0  ;;  %1106 = vmatprep.mubr.msk.bf16.mxu1 %vm1169_vm0, %v1168_v0  ;;  %v94_v18 = vpack.c.bf16 %v40_v15, %v39_v14  ;;  %v109_v19 = vpack.c.bf16 %v70_v17, %v69_v16 }
  0x22   :  { %1047 = vmatmul.mubr.msk.bf16.gmra.mxu0 %vm141_vm1, %v84_v21  ;;  %1107 = vmatmul.mubr.msk.bf16.gmra.mxu1 %vm141_vm1, %v99_v22  ;;  %v42_v21 = vld [vmem:[%s1767_s0 + $0xd8] sm:$0xff]  ;;  %v71_v22 = vld [vmem:[%s1767_s0 + $0x1c0] sm:$0xff] }
  0x23   :  { %1050 = vmatprep.mubr.msk.bf16.mxu0 %vm1169_vm0, %v1168_v0  ;;  %1110 = vmatprep.mubr.msk.bf16.mxu1 %vm1169_vm0, %v1168_v0  ;;  %v95_v24 = vpack.c.bf16 %v42_v21, %v41_v20  ;;  %v110_v25 = vpack.c.bf16 %v72_v23, %v71_v22 }
  0x2a   :  { %1051 = vmatmul.mubr.msk.bf16.gmra.mxu0 %vm141_vm1, %v85_v27  ;;  %1111 = vmatmul.mubr.msk.bf16.gmra.mxu1 %vm141_vm1, %v100_v28  ;;  %v44_v27 = vld [vmem:[%s1767_s0 + $0xe8] sm:$0xff] }
  0x2b   :  { %1054 = vmatprep.mubr.msk.bf16.mxu0 %vm1169_vm0, %v1168_v0  ;;  %1114 = vmatprep.mubr.msk.bf16.mxu1 %vm1169_vm0, %v1168_v0  ;;  %v96_v28 = vpack.c.bf16 %v44_v27, %v43_v26 }
  0x32   :  { %1055 = vmatmul.mubr.msk.bf16.gmra.mxu0 %vm141_vm1, %v86_v33  ;;  %1115 = vmatmul.mubr.msk.bf16.gmra.mxu1 %vm141_vm1, %v101_v34 }
  0x33   :  { %1058 = vmatprep.mubr.msk.bf16.mxu0 %vm1169_vm0, %v1168_v0  ;;  %1118 = vmatprep.mubr.msk.bf16.mxu1 %vm1169_vm0, %v1168_v0 }
  0x3a   :  { %1059 = vmatmul.mubr.msk.bf16.gmra.mxu0 %vm141_vm1, %v87_v39  ;;  %1119 = vmatmul.mubr.msk.bf16.gmra.mxu1 %vm141_vm1, %v102_v40 }
  0x3b   :  { %1062 = vmatprep.mubr.msk.bf16.mxu0 %vm1169_vm0, %v1168_v0  ;;  %1122 = vmatprep.mubr.msk.bf16.mxu1 %vm1169_vm0, %v1168_v0 }
  0x42   :  { %1063 = vmatmul.mubr.msk.bf16.gmra.mxu0 %vm141_vm1, %v88_v45  ;;  %1123 = vmatmul.mubr.msk.bf16.gmra.mxu1 %vm141_vm1, %v103_v46 }
  0x43   :  { %1066 = vmatprep.mubr.msk.bf16.mxu0 %vm1169_vm0, %v1168_v0  ;;  %1126 = vmatprep.mubr.msk.bf16.mxu1 %vm1169_vm0, %v1168_v0 }
  0x4a   :  { %1067 = vmatmul.mubr.msk.bf16.gmra.mxu0 %vm141_vm1, %v89_v51  ;;  %1127 = vmatmul.mubr.msk.bf16.gmra.mxu1 %vm141_vm1, %v104_v52 }
  0x4b   :  { %1070 = vmatprep.mubr.msk.bf16.mxu0 %vm1169_vm0, %v1168_v0  ;;  %1130 = vmatprep.mubr.msk.bf16.mxu1 %vm1169_vm0, %v1168_v0 }
  0x52   :  { %1071 = vmatmul.mubr.msk.bf16.gmra.mxu0 %vm141_vm1, %v90_v57  ;;  %1131 = vmatmul.mubr.msk.bf16.gmra.mxu1 %vm141_vm1, %v105_v58 }
  0x53   :  { %1074 = vmatprep.mubr.msk.bf16.mxu0 %vm1169_vm0, %v1168_v0  ;;  %1134 = vmatprep.mubr.msk.bf16.mxu1 %vm1169_vm0, %v1168_v0 }
  0x5a   :  { %1075 = vmatmul.mubr.msk.bf16.gmra.mxu0 %vm141_vm1, %v91_v63  ;;  %1135 = vmatmul.mubr.msk.bf16.gmra.mxu1 %vm141_vm1, %v106_v1 }
  0x5b   :  { %1078 = vmatprep.mubr.msk.bf16.mxu0 %vm1169_vm0, %v1168_v0  ;;  %1138 = vmatprep.mubr.msk.bf16.mxu1 %vm1169_vm0, %v1168_v0 }
  0x62   :  { %1079 = vmatmul.mubr.msk.bf16.gmra.mxu0 %vm141_vm1, %v92_v6  ;;  %1139 = vmatmul.mubr.msk.bf16.gmra.mxu1 %vm141_vm1, %v107_v7 }
  0x63   :  { %1082 = vmatprep.mubr.msk.bf16.mxu0 %vm1169_vm0, %v1168_v0  ;;  %1142 = vmatprep.mubr.msk.bf16.mxu1 %vm1169_vm0, %v1168_v0 }
  0x6a   :  { %1083 = vmatmul.mubr.msk.bf16.gmra.mxu0 %vm141_vm1, %v93_v12  ;;  %1143 = vmatmul.mubr.msk.bf16.gmra.mxu1 %vm141_vm1, %v108_v13 }
  0x6b   :  { %1086 = vmatprep.mubr.msk.bf16.mxu0 %vm1169_vm0, %v1168_v0  ;;  %1146 = vmatprep.mubr.msk.bf16.mxu1 %vm1169_vm0, %v1168_v0 }
  0x72   :  { %1087 = vmatmul.mubr.msk.bf16.gmra.mxu0 %vm141_vm1, %v94_v18  ;;  %1147 = vmatmul.mubr.msk.bf16.gmra.mxu1 %vm141_vm1, %v109_v19 }
  0x73   :  { %1090 = vmatprep.mubr.msk.bf16.mxu0 %vm1169_vm0, %v1168_v0  ;;  %1150 = vmatprep.mubr.msk.bf16.mxu1 %vm1169_vm0, %v1168_v0 }
  0x7a   :  { %1091 = vmatmul.mubr.msk.bf16.gmra.mxu0 %vm141_vm1, %v95_v24  ;;  %1151 = vmatmul.mubr.msk.bf16.gmra.mxu1 %vm141_vm1, %v110_v25 }
  0x7b   :  { %1094 = vmatprep.mubr.msk.bf16.mxu0 %vm1169_vm0, %v1168_v0 }
  0x82   :  { %1095 = vmatmul.mubr.msk.bf16.gmra.mxu0 %vm141_vm1, %v96_v28 }
  0xd2   :  { %v263_v30 = vpop.f32.mrf.mxu0  ;;  %v383_v31 = vpop.f32.mrf.mxu1 }
  0xd3   :  { %v264_v0 = vadd.f32 %v1474_v29, %v263_v30  ;;  %v384_v32 = vadd.f32 %v1474_v29, %v383_v31 }
  0xd4   :  { %v1040_v33 = vpop.f32.mrf.mxu0  ;;  %v1100_v34 = vpop.f32.mrf.mxu1 }
  0xd5   :  { %v494_v35 = vmax.f32 %v264_v0, 0.0  ;;  %v524_v36 = vmax.f32 %v384_v32, 0.0 }
  0xd6   :  { %v266_v37 = vpop.f32.mrf.mxu0  ;;  %v386_v38 = vpop.f32.mrf.mxu1 }
  0xd7   :  { %v939_v39 = vpack.c.bf16 %v494_v35, %v494_v35  ;;  %v969_v40 = vpack.c.bf16 %v524_v36, %v524_v36  ;;  %v267_v41 = vadd.f32 %v1474_v29, %v266_v37  ;;  %v387_v42 = vadd.f32 %v1474_v29, %v386_v38 }
  0xd8   :  { %v1041_v43 = vpop.f32.mrf.mxu0  ;;  %v1101_v44 = vpop.f32.mrf.mxu1 }
  0xd9   :  { %785 = vst.msk [vmem:[%s1769_s3] sm:$0xf] %vm784_vm2, %v939_v39  ;;  %815 = vst.msk [vmem:[%s1769_s3 + $0x78] sm:$0xf] %vm784_vm2, %v969_v40  ;;  %v495_v45 = vmax.f32 %v267_v41, 0.0  ;;  %v525_v46 = vmax.f32 %v387_v42, 0.0 }
  0xda   :  { %v271_v47 = vpop.f32.mrf.mxu0  ;;  %v391_v48 = vpop.f32.mrf.mxu1 }
  0xdb   :  { %v940_v49 = vpack.c.bf16 %v495_v45, %v495_v45  ;;  %v970_v50 = vpack.c.bf16 %v525_v46, %v525_v46  ;;  %v272_v51 = vadd.f32 %v1474_v29, %v271_v47  ;;  %v392_v52 = vadd.f32 %v1474_v29, %v391_v48 }
  0xdc   :  { %v1044_v53 = vpop.f32.mrf.mxu0  ;;  %v1104_v54 = vpop.f32.mrf.mxu1 }
  0xdd   :  { %786 = vst.msk [vmem:[%s1769_s3 + $0x4] sm:$0xf] %vm784_vm2, %v940_v49  ;;  %816 = vst.msk [vmem:[%s1769_s3 + $0x7c] sm:$0xf] %vm784_vm2, %v970_v50  ;;  %v496_v55 = vmax.f32 %v272_v51, 0.0  ;;  %v526_v56 = vmax.f32 %v392_v52, 0.0 }
  0xde   :  { %v274_v57 = vpop.f32.mrf.mxu0  ;;  %v394_v58 = vpop.f32.mrf.mxu1 }
  0xdf   :  { %v941_v59 = vpack.c.bf16 %v496_v55, %v496_v55  ;;  %v971_v60 = vpack.c.bf16 %v526_v56, %v526_v56  ;;  %v275_v61 = vadd.f32 %v1474_v29, %v274_v57  ;;  %v395_v62 = vadd.f32 %v1474_v29, %v394_v58 }
  0xe0   :  { %v1045_v63 = vpop.f32.mrf.mxu0  ;;  %v1105_v1 = vpop.f32.mrf.mxu1 }
  0xe1   :  { %787 = vst.msk [vmem:[%s1769_s3 + $0x8] sm:$0xf] %vm784_vm2, %v941_v59  ;;  %817 = vst.msk [vmem:[%s1769_s3 + $0x80] sm:$0xf] %vm784_vm2, %v971_v60  ;;  %v497_v2 = vmax.f32 %v275_v61, 0.0  ;;  %v527_v3 = vmax.f32 %v395_v62, 0.0 }
  0xe2   :  { %v279_v4 = vpop.f32.mrf.mxu0  ;;  %v399_v5 = vpop.f32.mrf.mxu1 }
  0xe3   :  { %v942_v6 = vpack.c.bf16 %v497_v2, %v497_v2  ;;  %v972_v7 = vpack.c.bf16 %v527_v3, %v527_v3  ;;  %v280_v8 = vadd.f32 %v1474_v29, %v279_v4  ;;  %v400_v9 = vadd.f32 %v1474_v29, %v399_v5 }
  0xe4   :  { %v1048_v10 = vpop.f32.mrf.mxu0  ;;  %v1108_v11 = vpop.f32.mrf.mxu1 }
  0xe5   :  { %788 = vst.msk [vmem:[%s1769_s3 + $0xc] sm:$0xf] %vm784_vm2, %v942_v6  ;;  %818 = vst.msk [vmem:[%s1769_s3 + $0x84] sm:$0xf] %vm784_vm2, %v972_v7  ;;  %v498_v12 = vmax.f32 %v280_v8, 0.0  ;;  %v528_v13 = vmax.f32 %v400_v9, 0.0 }
  0xe6   :  { %v282_v14 = vpop.f32.mrf.mxu0  ;;  %v402_v15 = vpop.f32.mrf.mxu1 }
  0xe7   :  { %v943_v16 = vpack.c.bf16 %v498_v12, %v498_v12  ;;  %v973_v17 = vpack.c.bf16 %v528_v13, %v528_v13  ;;  %v283_v18 = vadd.f32 %v1474_v29, %v282_v14  ;;  %v403_v19 = vadd.f32 %v1474_v29, %v402_v15 }
  0xe8   :  { %v1049_v20 = vpop.f32.mrf.mxu0  ;;  %v1109_v21 = vpop.f32.mrf.mxu1 }
  0xe9   :  { %789 = vst.msk [vmem:[%s1769_s3 + $0x10] sm:$0xf] %vm784_vm2, %v943_v16  ;;  %819 = vst.msk [vmem:[%s1769_s3 + $0x88] sm:$0xf] %vm784_vm2, %v973_v17  ;;  %v499_v22 = vmax.f32 %v283_v18, 0.0  ;;  %v529_v23 = vmax.f32 %v403_v19, 0.0 }
  0xea   :  { %v287_v24 = vpop.f32.mrf.mxu0  ;;  %v407_v25 = vpop.f32.mrf.mxu1 }
  0xeb   :  { %v944_v26 = vpack.c.bf16 %v499_v22, %v499_v22  ;;  %v974_v27 = vpack.c.bf16 %v529_v23, %v529_v23  ;;  %v288_v28 = vadd.f32 %v1474_v29, %v287_v24  ;;  %v408_v30 = vadd.f32 %v1474_v29, %v407_v25 }
  0xec   :  { %v1052_v31 = vpop.f32.mrf.mxu0  ;;  %v1112_v0 = vpop.f32.mrf.mxu1 }
  0xed   :  { %790 = vst.msk [vmem:[%s1769_s3 + $0x14] sm:$0xf] %vm784_vm2, %v944_v26  ;;  %820 = vst.msk [vmem:[%s1769_s3 + $0x8c] sm:$0xf] %vm784_vm2, %v974_v27  ;;  %v500_v32 = vmax.f32 %v288_v28, 0.0  ;;  %v530_v33 = vmax.f32 %v408_v30, 0.0 }
  0xee   :  { %v290_v34 = vpop.f32.mrf.mxu0  ;;  %v410_v35 = vpop.f32.mrf.mxu1 }
  0xef   :  { %v945_v36 = vpack.c.bf16 %v500_v32, %v500_v32  ;;  %v975_v37 = vpack.c.bf16 %v530_v33, %v530_v33  ;;  %v291_v38 = vadd.f32 %v1474_v29, %v290_v34  ;;  %v411_v39 = vadd.f32 %v1474_v29, %v410_v35 }
  0xf0   :  { %v1053_v40 = vpop.f32.mrf.mxu0  ;;  %v1113_v41 = vpop.f32.mrf.mxu1 }
  0xf1   :  { %791 = vst.msk [vmem:[%s1769_s3 + $0x18] sm:$0xf] %vm784_vm2, %v945_v36  ;;  %821 = vst.msk [vmem:[%s1769_s3 + $0x90] sm:$0xf] %vm784_vm2, %v975_v37  ;;  %v501_v42 = vmax.f32 %v291_v38, 0.0  ;;  %v531_v43 = vmax.f32 %v411_v39, 0.0 }
  0xf2   :  { %v295_v44 = vpop.f32.mrf.mxu0  ;;  %v415_v45 = vpop.f32.mrf.mxu1 }
  0xf3   :  { %v946_v46 = vpack.c.bf16 %v501_v42, %v501_v42  ;;  %v976_v47 = vpack.c.bf16 %v531_v43, %v531_v43  ;;  %v296_v48 = vadd.f32 %v1474_v29, %v295_v44  ;;  %v416_v49 = vadd.f32 %v1474_v29, %v415_v45 }
  0xf4   :  { %v1056_v50 = vpop.f32.mrf.mxu0  ;;  %v1116_v51 = vpop.f32.mrf.mxu1 }
  0xf5   :  { %792 = vst.msk [vmem:[%s1769_s3 + $0x1c] sm:$0xf] %vm784_vm2, %v946_v46  ;;  %822 = vst.msk [vmem:[%s1769_s3 + $0x94] sm:$0xf] %vm784_vm2, %v976_v47  ;;  %v502_v52 = vmax.f32 %v296_v48, 0.0  ;;  %v532_v53 = vmax.f32 %v416_v49, 0.0 }
  0xf6   :  { %v298_v54 = vpop.f32.mrf.mxu0  ;;  %v418_v55 = vpop.f32.mrf.mxu1 }
  0xf7   :  { %v947_v56 = vpack.c.bf16 %v502_v52, %v502_v52  ;;  %v977_v57 = vpack.c.bf16 %v532_v53, %v532_v53  ;;  %v299_v58 = vadd.f32 %v1474_v29, %v298_v54  ;;  %v419_v59 = vadd.f32 %v1474_v29, %v418_v55 }
  0xf8   :  { %v1057_v60 = vpop.f32.mrf.mxu0  ;;  %v1117_v61 = vpop.f32.mrf.mxu1 }
  0xf9   :  { %793 = vst.msk [vmem:[%s1769_s3 + $0x20] sm:$0xf] %vm784_vm2, %v947_v56  ;;  %823 = vst.msk [vmem:[%s1769_s3 + $0x98] sm:$0xf] %vm784_vm2, %v977_v57  ;;  %v503_v62 = vmax.f32 %v299_v58, 0.0  ;;  %v533_v63 = vmax.f32 %v419_v59, 0.0 }
  0xfa   :  { %v303_v1 = vpop.f32.mrf.mxu0  ;;  %v423_v2 = vpop.f32.mrf.mxu1 }
  0xfb   :  { %v948_v3 = vpack.c.bf16 %v503_v62, %v503_v62  ;;  %v978_v4 = vpack.c.bf16 %v533_v63, %v533_v63  ;;  %v304_v5 = vadd.f32 %v1474_v29, %v303_v1  ;;  %v424_v6 = vadd.f32 %v1474_v29, %v423_v2 }
  0xfc   :  { %v1060_v7 = vpop.f32.mrf.mxu0  ;;  %v1120_v8 = vpop.f32.mrf.mxu1 }
  0xfd   :  { %794 = vst.msk [vmem:[%s1769_s3 + $0x24] sm:$0xf] %vm784_vm2, %v948_v3  ;;  %824 = vst.msk [vmem:[%s1769_s3 + $0x9c] sm:$0xf] %vm784_vm2, %v978_v4  ;;  %v504_v9 = vmax.f32 %v304_v5, 0.0  ;;  %v534_v10 = vmax.f32 %v424_v6, 0.0 }
  0xfe   :  { %v306_v11 = vpop.f32.mrf.mxu0  ;;  %v426_v12 = vpop.f32.mrf.mxu1 }
  0xff   :  { %v949_v13 = vpack.c.bf16 %v504_v9, %v504_v9  ;;  %v979_v14 = vpack.c.bf16 %v534_v10, %v534_v10  ;;  %v307_v15 = vadd.f32 %v1474_v29, %v306_v11  ;;  %v427_v16 = vadd.f32 %v1474_v29, %v426_v12 }
 0x100   :  { %v1061_v17 = vpop.f32.mrf.mxu0  ;;  %v1121_v18 = vpop.f32.mrf.mxu1 }
 0x101   :  { %795 = vst.msk [vmem:[%s1769_s3 + $0x28] sm:$0xf] %vm784_vm2, %v949_v13  ;;  %825 = vst.msk [vmem:[%s1769_s3 + $0xa0] sm:$0xf] %vm784_vm2, %v979_v14  ;;  %v505_v19 = vmax.f32 %v307_v15, 0.0  ;;  %v535_v20 = vmax.f32 %v427_v16, 0.0 }
 0x102   :  { %v311_v21 = vpop.f32.mrf.mxu0  ;;  %v431_v22 = vpop.f32.mrf.mxu1 }
 0x103   :  { %v950_v23 = vpack.c.bf16 %v505_v19, %v505_v19  ;;  %v980_v24 = vpack.c.bf16 %v535_v20, %v535_v20  ;;  %v312_v25 = vadd.f32 %v1474_v29, %v311_v21  ;;  %v432_v26 = vadd.f32 %v1474_v29, %v431_v22 }
 0x104   :  { %v1064_v27 = vpop.f32.mrf.mxu0  ;;  %v1124_v28 = vpop.f32.mrf.mxu1 }
 0x105   :  { %796 = vst.msk [vmem:[%s1769_s3 + $0x2c] sm:$0xf] %vm784_vm2, %v950_v23  ;;  %826 = vst.msk [vmem:[%s1769_s3 + $0xa4] sm:$0xf] %vm784_vm2, %v980_v24  ;;  %v506_v30 = vmax.f32 %v312_v25, 0.0  ;;  %v536_v31 = vmax.f32 %v432_v26, 0.0 }
 0x106   :  { %v314_v0 = vpop.f32.mrf.mxu0  ;;  %v434_v32 = vpop.f32.mrf.mxu1 }
 0x107   :  { %v951_v33 = vpack.c.bf16 %v506_v30, %v506_v30  ;;  %v981_v34 = vpack.c.bf16 %v536_v31, %v536_v31  ;;  %v315_v35 = vadd.f32 %v1474_v29, %v314_v0  ;;  %v435_v36 = vadd.f32 %v1474_v29, %v434_v32 }
 0x108   :  { %v1065_v37 = vpop.f32.mrf.mxu0  ;;  %v1125_v38 = vpop.f32.mrf.mxu1 }
 0x109   :  { %797 = vst.msk [vmem:[%s1769_s3 + $0x30] sm:$0xf] %vm784_vm2, %v951_v33  ;;  %827 = vst.msk [vmem:[%s1769_s3 + $0xa8] sm:$0xf] %vm784_vm2, %v981_v34  ;;  %v507_v39 = vmax.f32 %v315_v35, 0.0  ;;  %v537_v40 = vmax.f32 %v435_v36, 0.0 }
 0x10a   :  { %v319_v41 = vpop.f32.mrf.mxu0  ;;  %v439_v42 = vpop.f32.mrf.mxu1 }
 0x10b   :  { %v952_v43 = vpack.c.bf16 %v507_v39, %v507_v39  ;;  %v982_v44 = vpack.c.bf16 %v537_v40, %v537_v40  ;;  %v320_v45 = vadd.f32 %v1474_v29, %v319_v41  ;;  %v440_v46 = vadd.f32 %v1474_v29, %v439_v42 }
 0x10c   :  { %v1068_v47 = vpop.f32.mrf.mxu0  ;;  %v1128_v48 = vpop.f32.mrf.mxu1 }
 0x10d   :  { %798 = vst.msk [vmem:[%s1769_s3 + $0x34] sm:$0xf] %vm784_vm2, %v952_v43  ;;  %828 = vst.msk [vmem:[%s1769_s3 + $0xac] sm:$0xf] %vm784_vm2, %v982_v44  ;;  %v508_v49 = vmax.f32 %v320_v45, 0.0  ;;  %v538_v50 = vmax.f32 %v440_v46, 0.0 }
 0x10e   :  { %v322_v51 = vpop.f32.mrf.mxu0  ;;  %v442_v52 = vpop.f32.mrf.mxu1 }
 0x10f   :  { %v953_v53 = vpack.c.bf16 %v508_v49, %v508_v49  ;;  %v983_v54 = vpack.c.bf16 %v538_v50, %v538_v50  ;;  %v323_v55 = vadd.f32 %v1474_v29, %v322_v51  ;;  %v443_v56 = vadd.f32 %v1474_v29, %v442_v52 }
 0x110   :  { %v1069_v57 = vpop.f32.mrf.mxu0  ;;  %v1129_v58 = vpop.f32.mrf.mxu1 }
 0x111   :  { %799 = vst.msk [vmem:[%s1769_s3 + $0x38] sm:$0xf] %vm784_vm2, %v953_v53  ;;  %829 = vst.msk [vmem:[%s1769_s3 + $0xb0] sm:$0xf] %vm784_vm2, %v983_v54  ;;  %v509_v59 = vmax.f32 %v323_v55, 0.0  ;;  %v539_v60 = vmax.f32 %v443_v56, 0.0 }
 0x112   :  { %v327_v61 = vpop.f32.mrf.mxu0  ;;  %v447_v62 = vpop.f32.mrf.mxu1 }
 0x113   :  { %v954_v63 = vpack.c.bf16 %v509_v59, %v509_v59  ;;  %v984_v1 = vpack.c.bf16 %v539_v60, %v539_v60  ;;  %v328_v2 = vadd.f32 %v1474_v29, %v327_v61  ;;  %v448_v3 = vadd.f32 %v1474_v29, %v447_v62 }
 0x114   :  { %v1072_v4 = vpop.f32.mrf.mxu0  ;;  %v1132_v5 = vpop.f32.mrf.mxu1 }
 0x115   :  { %800 = vst.msk [vmem:[%s1769_s3 + $0x3c] sm:$0xf] %vm784_vm2, %v954_v63  ;;  %830 = vst.msk [vmem:[%s1769_s3 + $0xb4] sm:$0xf] %vm784_vm2, %v984_v1  ;;  %v510_v6 = vmax.f32 %v328_v2, 0.0  ;;  %v540_v7 = vmax.f32 %v448_v3, 0.0 }
 0x116   :  { %v330_v8 = vpop.f32.mrf.mxu0  ;;  %v450_v9 = vpop.f32.mrf.mxu1 }
 0x117   :  { %v955_v10 = vpack.c.bf16 %v510_v6, %v510_v6  ;;  %v985_v11 = vpack.c.bf16 %v540_v7, %v540_v7  ;;  %v331_v12 = vadd.f32 %v1474_v29, %v330_v8  ;;  %v451_v13 = vadd.f32 %v1474_v29, %v450_v9 }
 0x118   :  { %v1073_v14 = vpop.f32.mrf.mxu0  ;;  %v1133_v15 = vpop.f32.mrf.mxu1 }
 0x119   :  { %801 = vst.msk [vmem:[%s1769_s3 + $0x40] sm:$0xf] %vm784_vm2, %v955_v10  ;;  %831 = vst.msk [vmem:[%s1769_s3 + $0xb8] sm:$0xf] %vm784_vm2, %v985_v11  ;;  %v511_v16 = vmax.f32 %v331_v12, 0.0  ;;  %v541_v17 = vmax.f32 %v451_v13, 0.0 }
 0x11a   :  { %v335_v18 = vpop.f32.mrf.mxu0  ;;  %v455_v19 = vpop.f32.mrf.mxu1 }
 0x11b   :  { %v956_v20 = vpack.c.bf16 %v511_v16, %v511_v16  ;;  %v986_v21 = vpack.c.bf16 %v541_v17, %v541_v17  ;;  %v336_v22 = vadd.f32 %v1474_v29, %v335_v18  ;;  %v456_v23 = vadd.f32 %v1474_v29, %v455_v19 }
 0x11c   :  { %v1076_v24 = vpop.f32.mrf.mxu0  ;;  %v1136_v25 = vpop.f32.mrf.mxu1 }
 0x11d   :  { %802 = vst.msk [vmem:[%s1769_s3 + $0x44] sm:$0xf] %vm784_vm2, %v956_v20  ;;  %832 = vst.msk [vmem:[%s1769_s3 + $0xbc] sm:$0xf] %vm784_vm2, %v986_v21  ;;  %v512_v26 = vmax.f32 %v336_v22, 0.0  ;;  %v542_v27 = vmax.f32 %v456_v23, 0.0 }
 0x11e   :  { %v338_v28 = vpop.f32.mrf.mxu0  ;;  %v458_v30 = vpop.f32.mrf.mxu1 }
 0x11f   :  { %v957_v31 = vpack.c.bf16 %v512_v26, %v512_v26  ;;  %v987_v0 = vpack.c.bf16 %v542_v27, %v542_v27  ;;  %v339_v32 = vadd.f32 %v1474_v29, %v338_v28  ;;  %v459_v33 = vadd.f32 %v1474_v29, %v458_v30 }
 0x120   :  { %v1077_v34 = vpop.f32.mrf.mxu0  ;;  %v1137_v35 = vpop.f32.mrf.mxu1 }
 0x121   :  { %803 = vst.msk [vmem:[%s1769_s3 + $0x48] sm:$0xf] %vm784_vm2, %v957_v31  ;;  %833 = vst.msk [vmem:[%s1769_s3 + $0xc0] sm:$0xf] %vm784_vm2, %v987_v0  ;;  %v513_v36 = vmax.f32 %v339_v32, 0.0  ;;  %v543_v37 = vmax.f32 %v459_v33, 0.0 }
 0x122   :  { %v343_v38 = vpop.f32.mrf.mxu0  ;;  %v463_v39 = vpop.f32.mrf.mxu1 }
 0x123   :  { %v958_v40 = vpack.c.bf16 %v513_v36, %v513_v36  ;;  %v988_v41 = vpack.c.bf16 %v543_v37, %v543_v37  ;;  %v344_v42 = vadd.f32 %v1474_v29, %v343_v38  ;;  %v464_v43 = vadd.f32 %v1474_v29, %v463_v39 }
 0x124   :  { %v1080_v44 = vpop.f32.mrf.mxu0  ;;  %v1140_v45 = vpop.f32.mrf.mxu1 }
 0x125   :  { %804 = vst.msk [vmem:[%s1769_s3 + $0x4c] sm:$0xf] %vm784_vm2, %v958_v40  ;;  %834 = vst.msk [vmem:[%s1769_s3 + $0xc4] sm:$0xf] %vm784_vm2, %v988_v41  ;;  %v514_v46 = vmax.f32 %v344_v42, 0.0  ;;  %v544_v47 = vmax.f32 %v464_v43, 0.0 }
 0x126   :  { %v346_v48 = vpop.f32.mrf.mxu0  ;;  %v466_v49 = vpop.f32.mrf.mxu1 }
 0x127   :  { %v959_v50 = vpack.c.bf16 %v514_v46, %v514_v46  ;;  %v989_v51 = vpack.c.bf16 %v544_v47, %v544_v47  ;;  %v347_v52 = vadd.f32 %v1474_v29, %v346_v48  ;;  %v467_v53 = vadd.f32 %v1474_v29, %v466_v49 }
 0x128   :  { %v1081_v54 = vpop.f32.mrf.mxu0  ;;  %v1141_v55 = vpop.f32.mrf.mxu1 }
 0x129   :  { %805 = vst.msk [vmem:[%s1769_s3 + $0x50] sm:$0xf] %vm784_vm2, %v959_v50  ;;  %835 = vst.msk [vmem:[%s1769_s3 + $0xc8] sm:$0xf] %vm784_vm2, %v989_v51  ;;  %v515_v56 = vmax.f32 %v347_v52, 0.0  ;;  %v545_v57 = vmax.f32 %v467_v53, 0.0 }
 0x12a   :  { %v351_v58 = vpop.f32.mrf.mxu0  ;;  %v471_v59 = vpop.f32.mrf.mxu1 }
 0x12b   :  { %v960_v60 = vpack.c.bf16 %v515_v56, %v515_v56  ;;  %v990_v61 = vpack.c.bf16 %v545_v57, %v545_v57  ;;  %v352_v62 = vadd.f32 %v1474_v29, %v351_v58  ;;  %v472_v63 = vadd.f32 %v1474_v29, %v471_v59 }
 0x12c   :  { %v1084_v1 = vpop.f32.mrf.mxu0  ;;  %v1144_v2 = vpop.f32.mrf.mxu1 }
 0x12d   :  { %806 = vst.msk [vmem:[%s1769_s3 + $0x54] sm:$0xf] %vm784_vm2, %v960_v60  ;;  %836 = vst.msk [vmem:[%s1769_s3 + $0xcc] sm:$0xf] %vm784_vm2, %v990_v61  ;;  %v516_v3 = vmax.f32 %v352_v62, 0.0  ;;  %v546_v4 = vmax.f32 %v472_v63, 0.0 }
 0x12e   :  { %v354_v5 = vpop.f32.mrf.mxu0  ;;  %v474_v6 = vpop.f32.mrf.mxu1 }
 0x12f   :  { %v961_v7 = vpack.c.bf16 %v516_v3, %v516_v3  ;;  %v991_v8 = vpack.c.bf16 %v546_v4, %v546_v4  ;;  %v355_v9 = vadd.f32 %v1474_v29, %v354_v5  ;;  %v475_v10 = vadd.f32 %v1474_v29, %v474_v6 }
 0x130   :  { %v1085_v11 = vpop.f32.mrf.mxu0  ;;  %v1145_v12 = vpop.f32.mrf.mxu1 }
 0x131   :  { %807 = vst.msk [vmem:[%s1769_s3 + $0x58] sm:$0xf] %vm784_vm2, %v961_v7  ;;  %837 = vst.msk [vmem:[%s1769_s3 + $0xd0] sm:$0xf] %vm784_vm2, %v991_v8  ;;  %v517_v13 = vmax.f32 %v355_v9, 0.0  ;;  %v547_v14 = vmax.f32 %v475_v10, 0.0 }
 0x132   :  { %v359_v15 = vpop.f32.mrf.mxu0  ;;  %v479_v16 = vpop.f32.mrf.mxu1 }
 0x133   :  { %v962_v17 = vpack.c.bf16 %v517_v13, %v517_v13  ;;  %v992_v18 = vpack.c.bf16 %v547_v14, %v547_v14  ;;  %v360_v19 = vadd.f32 %v1474_v29, %v359_v15  ;;  %v480_v20 = vadd.f32 %v1474_v29, %v479_v16 }
 0x134   :  { %v1088_v21 = vpop.f32.mrf.mxu0  ;;  %v1148_v22 = vpop.f32.mrf.mxu1 }
 0x135   :  { %808 = vst.msk [vmem:[%s1769_s3 + $0x5c] sm:$0xf] %vm784_vm2, %v962_v17  ;;  %838 = vst.msk [vmem:[%s1769_s3 + $0xd4] sm:$0xf] %vm784_vm2, %v992_v18  ;;  %v518_v23 = vmax.f32 %v360_v19, 0.0  ;;  %v548_v24 = vmax.f32 %v480_v20, 0.0 }
 0x136   :  { %v362_v25 = vpop.f32.mrf.mxu0  ;;  %v482_v26 = vpop.f32.mrf.mxu1 }
 0x137   :  { %v963_v27 = vpack.c.bf16 %v518_v23, %v518_v23  ;;  %v993_v28 = vpack.c.bf16 %v548_v24, %v548_v24  ;;  %v363_v30 = vadd.f32 %v1474_v29, %v362_v25  ;;  %v483_v31 = vadd.f32 %v1474_v29, %v482_v26 }
 0x138   :  { %v1089_v0 = vpop.f32.mrf.mxu0  ;;  %v1149_v32 = vpop.f32.mrf.mxu1 }
 0x139   :  { %809 = vst.msk [vmem:[%s1769_s3 + $0x60] sm:$0xf] %vm784_vm2, %v963_v27  ;;  %839 = vst.msk [vmem:[%s1769_s3 + $0xd8] sm:$0xf] %vm784_vm2, %v993_v28  ;;  %v519_v33 = vmax.f32 %v363_v30, 0.0  ;;  %v549_v34 = vmax.f32 %v483_v31, 0.0 }
 0x13a   :  { %v367_v35 = vpop.f32.mrf.mxu0  ;;  %v487_v36 = vpop.f32.mrf.mxu1 }
 0x13b   :  { %v964_v37 = vpack.c.bf16 %v519_v33, %v519_v33  ;;  %v994_v38 = vpack.c.bf16 %v549_v34, %v549_v34  ;;  %v368_v39 = vadd.f32 %v1474_v29, %v367_v35  ;;  %v488_v40 = vadd.f32 %v1474_v29, %v487_v36 }
 0x13c   :  { %v1092_v41 = vpop.f32.mrf.mxu0  ;;  %v1152_v42 = vpop.f32.mrf.mxu1 }
 0x13d   :  { %810 = vst.msk [vmem:[%s1769_s3 + $0x64] sm:$0xf] %vm784_vm2, %v964_v37  ;;  %840 = vst.msk [vmem:[%s1769_s3 + $0xdc] sm:$0xf] %vm784_vm2, %v994_v38  ;;  %v520_v43 = vmax.f32 %v368_v39, 0.0  ;;  %v550_v44 = vmax.f32 %v488_v40, 0.0 }
 0x13e   :  { %v370_v45 = vpop.f32.mrf.mxu0  ;;  %v490_v46 = vpop.f32.mrf.mxu1 }
 0x13f   :  { %v965_v47 = vpack.c.bf16 %v520_v43, %v520_v43  ;;  %v995_v48 = vpack.c.bf16 %v550_v44, %v550_v44  ;;  %v371_v49 = vadd.f32 %v1474_v29, %v370_v45  ;;  %v491_v50 = vadd.f32 %v1474_v29, %v490_v46 }
 0x140   :  { %v1093_v51 = vpop.f32.mrf.mxu0  ;;  %v1153_v52 = vpop.f32.mrf.mxu1 }
 0x141   :  { %811 = vst.msk [vmem:[%s1769_s3 + $0x68] sm:$0xf] %vm784_vm2, %v965_v47  ;;  %841 = vst.msk [vmem:[%s1769_s3 + $0xe0] sm:$0xf] %vm784_vm2, %v995_v48  ;;  %v521_v53 = vmax.f32 %v371_v49, 0.0  ;;  %v551_v54 = vmax.f32 %v491_v50, 0.0 }
 0x142   :  { %v375_v55 = vpop.f32.mrf.mxu0 }
 0x143   :  { %v966_v56 = vpack.c.bf16 %v521_v53, %v521_v53  ;;  %v996_v57 = vpack.c.bf16 %v551_v54, %v551_v54  ;;  %v376_v58 = vadd.f32 %v1474_v29, %v375_v55 }
 0x144   :  { %v1096_v59 = vpop.f32.mrf.mxu0 }
 0x145   :  { %812 = vst.msk [vmem:[%s1769_s3 + $0x6c] sm:$0xf] %vm784_vm2, %v966_v56  ;;  %842 = vst.msk [vmem:[%s1769_s3 + $0xe4] sm:$0xf] %vm784_vm2, %v996_v57  ;;  %v522_v60 = vmax.f32 %v376_v58, 0.0 }
 0x146   :  { %v378_v61 = vpop.f32.mrf.mxu0 }
 0x147   :  { %v967_v62 = vpack.c.bf16 %v522_v60, %v522_v60  ;;  %v379_v63 = vadd.f32 %v1474_v29, %v378_v61 }
 0x148   :  { %v1097_v1 = vpop.f32.mrf.mxu0 }
 0x149   :  { %813 = vst.msk [vmem:[%s1769_s3 + $0x70] sm:$0xf] %vm784_vm2, %v967_v62  ;;  %v523_v2 = vmax.f32 %v379_v63, 0.0 }
 0x14b   :  { %v968_v3 = vpack.c.bf16 %v523_v2, %v523_v2 }
 0x14d   :  { %814 = vst.msk [vmem:[%s1769_s3 + $0x74] sm:$0xf] %vm784_vm2, %v968_v3 }

// kernel: _lambda_.6
= control target key start
LH: loop header
LB: loop body
LE: loop exit
PB: predicated region body
PF: predicated region fallthrough
CT: control target
= control target key end

     0   :  { %vm594_vm0 = vcmask 519168   ;;  %s1067_s1 = inlined_call_operand.vmem [shape: bf16[512,64], index: 1, kind: input, shape index: {}]   ;;  %s1068_s0 = inlined_call_operand.vmem [shape: bf16[80,512], index: 0, kind: input, shape index: {}]   ;;  %s1069_s2 = inlined_call_operand.vmem [shape: f32[1,64], index: 2, kind: input, shape index: {}]   ;;  %s1070_s3 = inlined_call_operand.vmem [shape: bf16[80,64], index: 3, kind: output, shape index: {}]  }
   0x1   :  { %v774_v0 = vld [vmem:[%s1067_s1 + $0x78] sm:$0xff]   ;;  %v778_v4 = vld [vmem:[%s1067_s1 + $0x70] sm:$0xff]   ;;  %v782_v8 = vld [vmem:[%s1067_s1 + $0x68] sm:$0xff]  }
   0x2   :  { %v775_v1 = vld [vmem:[%s1067_s1 + $0xf8] sm:$0xff]   ;;  %682 = vmatprep.subr.bf16.mxu0 %v774_v0  ;;  %v779_v5 = vld [vmem:[%s1067_s1 + $0xf0] sm:$0xff]   ;;  %v783_v9 = vld [vmem:[%s1067_s1 + $0xe8] sm:$0xff]  }
   0x3   :  { %v776_v2 = vld [vmem:[%s1067_s1 + $0x38] sm:$0xff]   ;;  %728 = vmatprep.subr.bf16.mxu1 %v775_v1  ;;  %v780_v6 = vld [vmem:[%s1067_s1 + $0x30] sm:$0xff]   ;;  %v784_v10 = vld [vmem:[%s1067_s1 + $0x28] sm:$0xff]  }
   0x4   :  { %v777_v3 = vld [vmem:[%s1067_s1 + $0xb8] sm:$0xff]   ;;  %683 = vmatpush3.bf16.msra.mxu0 %v776_v2  ;;  %v781_v7 = vld [vmem:[%s1067_s1 + $0xb0] sm:$0xff]   ;;  %v785_v11 = vld [vmem:[%s1067_s1 + $0xa8] sm:$0xff]  }
   0x5   :  { %729 = vmatpush3.bf16.msra.mxu1 %v777_v3  ;;  %684 = vmatprep.subr.bf16.mxu0 %v778_v4  ;;  %v786_v12 = vld [vmem:[%s1067_s1 + $0x60] sm:$0xff]   ;;  %v790_v16 = vld [vmem:[%s1067_s1 + $0x58] sm:$0xff]   ;;  %v794_v20 = vld [vmem:[%s1067_s1 + $0x50] sm:$0xff]  }
   0x6   :  { %730 = vmatprep.subr.bf16.mxu1 %v779_v5  ;;  %v787_v13 = vld [vmem:[%s1067_s1 + $0xe0] sm:$0xff]   ;;  %v791_v17 = vld [vmem:[%s1067_s1 + $0xd8] sm:$0xff]   ;;  %v795_v21 = vld [vmem:[%s1067_s1 + $0xd0] sm:$0xff]  }
   0x7   :  { %v788_v14 = vld [vmem:[%s1067_s1 + $0x20] sm:$0xff]   ;;  %v792_v18 = vld [vmem:[%s1067_s1 + $0x18] sm:$0xff]   ;;  %v796_v22 = vld [vmem:[%s1067_s1 + $0x10] sm:$0xff]  }
   0x8   :  { %685 = vmatpush3.bf16.msra.mxu0 %v780_v6  ;;  %v789_v15 = vld [vmem:[%s1067_s1 + $0xa0] sm:$0xff]   ;;  %v793_v19 = vld [vmem:[%s1067_s1 + $0x98] sm:$0xff]   ;;  %v797_v23 = vld [vmem:[%s1067_s1 + $0x90] sm:$0xff]  }
   0x9   :  { %731 = vmatpush3.bf16.msra.mxu1 %v781_v7  ;;  %686 = vmatprep.subr.bf16.mxu0 %v782_v8  ;;  %v798_v24 = vld [vmem:[%s1067_s1 + $0x48] sm:$0xff]   ;;  %v802_v28 = vld [vmem:[%s1067_s1 + $0x40] sm:$0xff]  }
   0xa   :  { %732 = vmatprep.subr.bf16.mxu1 %v783_v9  ;;  %v799_v25 = vld [vmem:[%s1067_s1 + $0xc8] sm:$0xff]   ;;  %v803_v29 = vld [vmem:[%s1067_s1 + $0xc0] sm:$0xff]  }
   0xb   :  { %v800_v26 = vld [vmem:[%s1067_s1 + $0x8] sm:$0xff]   ;;  %v804_v30 = vld [vmem:[%s1067_s1] sm:$0xff]  }
   0xc   :  { %687 = vmatpush3.bf16.msra.mxu0 %v784_v10  ;;  %v801_v27 = vld [vmem:[%s1067_s1 + $0x88] sm:$0xff]   ;;  %v805_v31 = vld [vmem:[%s1067_s1 + $0x80] sm:$0xff]  }
   0xd   :  { %733 = vmatpush3.bf16.msra.mxu1 %v785_v11  ;;  %688 = vmatprep.subr.bf16.mxu0 %v786_v12  ;;  %v806_v32 = vld [vmem:[%s1068_s0] ss:$16 sps:$4 sm:$0xff]   ;;  %v808_v33 = vld [vmem:[%s1068_s0 + $0x4] ss:$16 sps:$4 sm:$0xff]   ;;  %v809_v34 = vld [vmem:[%s1068_s0 + $0x8] ss:$16 sps:$4 sm:$0xff]  }
   0xe   :  { %734 = vmatprep.subr.bf16.mxu1 %v787_v13  ;;  %v811_v35 = vld [vmem:[%s1068_s0 + $0xc] ss:$16 sps:$4 sm:$0xff]   ;;  %430 = vmatprep.mubr.bf16.mxu0 %v808_v33  ;;  %v812_v36 = vld [vmem:[%s1068_s0 + $0x24] ss:$16 sps:$4 sm:$0xff]   ;;  %v816_v38 = vld [vmem:[%s1068_s0 + $0x20] ss:$16 sps:$4 sm:$0xff]  }
   0xf   :  { %503 = vmatprep.mubr.bf16.mxu1 %v811_v35  ;;  %v814_v37 = vld [vmem:[%s1068_s0 + $0x2c] ss:$16 sps:$4 sm:$0xff]   ;;  %v817_v39 = vld [vmem:[%s1068_s0 + $0x28] ss:$16 sps:$4 sm:$0xff]   ;;  %v818_v40 = vld [vmem:[%s1068_s0 + $0x44] ss:$16 sps:$4 sm:$0xff]  }
  0x10   :  { %689 = vmatpush3.bf16.msra.mxu0 %v788_v14  ;;  %v820_v41 = vld [vmem:[%s1068_s0 + $0x4c] ss:$16 sps:$4 sm:$0xff]   ;;  %v822_v42 = vld [vmem:[%s1068_s0 + $0x40] ss:$16 sps:$4 sm:$0xff]   ;;  %v823_v43 = vld [vmem:[%s1068_s0 + $0x48] ss:$16 sps:$4 sm:$0xff]  }
  0x11   :  { %735 = vmatpush3.bf16.msra.mxu1 %v789_v15  ;;  %690 = vmatprep.subr.bf16.mxu0 %v790_v16  ;;  %v824_v44 = vld [vmem:[%s1068_s0 + $0x64] ss:$16 sps:$4 sm:$0xff]   ;;  %v826_v45 = vld [vmem:[%s1068_s0 + $0x6c] ss:$16 sps:$4 sm:$0xff]   ;;  %v828_v46 = vld [vmem:[%s1068_s0 + $0x60] ss:$16 sps:$4 sm:$0xff]  }
  0x12   :  { %736 = vmatprep.subr.bf16.mxu1 %v791_v17  ;;  %v829_v47 = vld [vmem:[%s1068_s0 + $0x68] ss:$16 sps:$4 sm:$0xff]   ;;  %v830_v48 = vld [vmem:[%s1068_s0 + $0x84] ss:$16 sps:$4 sm:$0xff]   ;;  %v832_v49 = vld [vmem:[%s1068_s0 + $0x8c] ss:$16 sps:$4 sm:$0xff]  }
  0x13   :  { %v834_v50 = vld [vmem:[%s1068_s0 + $0x80] ss:$16 sps:$4 sm:$0xff]   ;;  %v835_v51 = vld [vmem:[%s1068_s0 + $0x88] ss:$16 sps:$4 sm:$0xff]  }
  0x14   :  { %691 = vmatpush3.bf16.msra.mxu0 %v792_v18  ;;  %v1015_v54 = vld [vmem:[%s1069_s2] ss:$0 sm:$0xff] }
  0x15   :  { %737 = vmatpush3.bf16.msra.mxu1 %v793_v19  ;;  %692 = vmatprep.subr.bf16.mxu0 %v794_v20 }
  0x16   :  { %738 = vmatprep.subr.bf16.mxu1 %v795_v21 }
  0x18   :  { %693 = vmatpush3.bf16.msra.mxu0 %v796_v22 }
  0x19   :  { %739 = vmatpush3.bf16.msra.mxu1 %v797_v23  ;;  %694 = vmatprep.subr.bf16.mxu0 %v798_v24 }
  0x1a   :  { %740 = vmatprep.subr.bf16.mxu1 %v799_v25 }
  0x1c   :  { %695 = vmatpush3.bf16.msra.mxu0 %v800_v26 }
  0x1d   :  { %741 = vmatpush3.bf16.msra.mxu1 %v801_v27  ;;  %696 = vmatprep.subr.bf16.mxu0 %v802_v28 }
  0x1e   :  { %742 = vmatprep.subr.bf16.mxu1 %v803_v29 }
  0x20   :  { %697 = vmatpush3.bf16.msra.mxu0 %v804_v30 }
  0x21   :  { %743 = vmatpush3.bf16.msra.mxu1 %v805_v31 }
  0x23   :  { %431 = vmatmul.mubr.bf16.vlgmr.msra.gmra.mxu0 %v806_v32 }
  0x24   :  { %504 = vmatmul.mubr.bf16.vlgmr.msra.gmra.mxu1 %v809_v34  ;;  %438 = vmatprep.mubr.bf16.mxu0 %v812_v36 }
  0x25   :  { %511 = vmatprep.mubr.bf16.mxu1 %v814_v37 }
  0x2b   :  { %439 = vmatmul.mubr.bf16.gmra.mxu0 %v816_v38 }
  0x2c   :  { %512 = vmatmul.mubr.bf16.gmra.mxu1 %v817_v39  ;;  %446 = vmatprep.mubr.bf16.mxu0 %v818_v40 }
  0x2d   :  { %519 = vmatprep.mubr.bf16.mxu1 %v820_v41 }
  0x33   :  { %447 = vmatmul.mubr.bf16.gmra.mxu0 %v822_v42 }
  0x34   :  { %520 = vmatmul.mubr.bf16.gmra.mxu1 %v823_v43  ;;  %454 = vmatprep.mubr.bf16.mxu0 %v824_v44 }
  0x35   :  { %527 = vmatprep.mubr.bf16.mxu1 %v826_v45 }
  0x3b   :  { %455 = vmatmul.mubr.bf16.gmra.mxu0 %v828_v46 }
  0x3c   :  { %528 = vmatmul.mubr.bf16.gmra.mxu1 %v829_v47  ;;  %462 = vmatprep.mubr.bf16.mxu0 %v830_v48 }
  0x3d   :  { %535 = vmatprep.mubr.bf16.mxu1 %v832_v49 }
  0x43   :  { %463 = vmatmul.mubr.bf16.gmra.mxu0 %v834_v50 }
  0x44   :  { %536 = vmatmul.mubr.bf16.gmra.mxu1 %v835_v51 }
  0xe3   :  { %v698_v52 = vpop.f32.mrf.mxu0 }
  0xe4   :  { %v744_v53 = vpop.f32.mrf.mxu1 }
  0xe5   :  { %v699_v55 = vpop.f32.mrf.mxu0 }
  0xe6   :  { %v700_v56 = vadd.f32 %v699_v55, %v698_v52  ;;  %v745_v57 = vpop.f32.mrf.mxu1 }
  0xe7   :  { %v701_v58 = vpop.f32.mrf.mxu0  ;;  %v746_v60 = vadd.f32 %v745_v57, %v744_v53 }
  0xe8   :  { %v433_v59 = vadd.f32 %v700_v56, %v1015_v54  ;;  %v747_v61 = vpop.f32.mrf.mxu1 }
  0xe9   :  { %v702_v62 = vpop.f32.mrf.mxu0 }
  0xea   :  { %v506_v63 = vadd.f32 %v746_v60, %v433_v59  ;;  %v703_v0 = vadd.f32 %v702_v62, %v701_v58  ;;  %v748_v1 = vpop.f32.mrf.mxu1 }
  0xeb   :  { %v704_v2 = vpop.f32.mrf.mxu0  ;;  %v749_v5 = vadd.f32 %v748_v1, %v747_v61 }
  0xec   :  { %v544_v3 = vmax.f32 %v506_v63, 0.0  ;;  %v436_v4 = vadd.f32 %v703_v0, %v1015_v54  ;;  %v750_v6 = vpop.f32.mrf.mxu1 }
  0xed   :  { %v705_v7 = vpop.f32.mrf.mxu0 }
  0xee   :  { %v672_v8 = vpack.c.bf16 %v544_v3, %v544_v3  ;;  %v509_v9 = vadd.f32 %v749_v5, %v436_v4  ;;  %v706_v10 = vadd.f32 %v705_v7, %v704_v2  ;;  %v751_v11 = vpop.f32.mrf.mxu1 }
  0xef   :  { %v707_v12 = vpop.f32.mrf.mxu0  ;;  %v752_v15 = vadd.f32 %v751_v11, %v750_v6 }
  0xf0   :  { %595 = vst.msk [vmem:[%s1070_s3] sm:$0xf] %vm594_vm0, %v672_v8  ;;  %v545_v13 = vmax.f32 %v509_v9, 0.0  ;;  %v441_v14 = vadd.f32 %v706_v10, %v1015_v54  ;;  %v753_v16 = vpop.f32.mrf.mxu1 }
  0xf1   :  { %v708_v17 = vpop.f32.mrf.mxu0 }
  0xf2   :  { %v673_v18 = vpack.c.bf16 %v545_v13, %v545_v13  ;;  %v514_v19 = vadd.f32 %v752_v15, %v441_v14  ;;  %v709_v20 = vadd.f32 %v708_v17, %v707_v12  ;;  %v754_v21 = vpop.f32.mrf.mxu1 }
  0xf3   :  { %v710_v22 = vpop.f32.mrf.mxu0  ;;  %v755_v25 = vadd.f32 %v754_v21, %v753_v16 }
  0xf4   :  { %596 = vst.msk [vmem:[%s1070_s3 + $0x4] sm:$0xf] %vm594_vm0, %v673_v18  ;;  %v546_v23 = vmax.f32 %v514_v19, 0.0  ;;  %v444_v24 = vadd.f32 %v709_v20, %v1015_v54  ;;  %v756_v26 = vpop.f32.mrf.mxu1 }
  0xf5   :  { %v711_v27 = vpop.f32.mrf.mxu0 }
  0xf6   :  { %v674_v28 = vpack.c.bf16 %v546_v23, %v546_v23  ;;  %v517_v29 = vadd.f32 %v755_v25, %v444_v24  ;;  %v712_v30 = vadd.f32 %v711_v27, %v710_v22  ;;  %v757_v31 = vpop.f32.mrf.mxu1 }
  0xf7   :  { %v713_v32 = vpop.f32.mrf.mxu0  ;;  %v758_v35 = vadd.f32 %v757_v31, %v756_v26 }
  0xf8   :  { %597 = vst.msk [vmem:[%s1070_s3 + $0x8] sm:$0xf] %vm594_vm0, %v674_v28  ;;  %v547_v33 = vmax.f32 %v517_v29, 0.0  ;;  %v449_v34 = vadd.f32 %v712_v30, %v1015_v54  ;;  %v759_v36 = vpop.f32.mrf.mxu1 }
  0xf9   :  { %v714_v37 = vpop.f32.mrf.mxu0 }
  0xfa   :  { %v675_v38 = vpack.c.bf16 %v547_v33, %v547_v33  ;;  %v522_v39 = vadd.f32 %v758_v35, %v449_v34  ;;  %v715_v40 = vadd.f32 %v714_v37, %v713_v32  ;;  %v760_v41 = vpop.f32.mrf.mxu1 }
  0xfb   :  { %v716_v42 = vpop.f32.mrf.mxu0  ;;  %v761_v45 = vadd.f32 %v760_v41, %v759_v36 }
  0xfc   :  { %598 = vst.msk [vmem:[%s1070_s3 + $0xc] sm:$0xf] %vm594_vm0, %v675_v38  ;;  %v548_v43 = vmax.f32 %v522_v39, 0.0  ;;  %v452_v44 = vadd.f32 %v715_v40, %v1015_v54  ;;  %v762_v46 = vpop.f32.mrf.mxu1 }
  0xfd   :  { %v717_v47 = vpop.f32.mrf.mxu0 }
  0xfe   :  { %v676_v48 = vpack.c.bf16 %v548_v43, %v548_v43  ;;  %v525_v49 = vadd.f32 %v761_v45, %v452_v44  ;;  %v718_v50 = vadd.f32 %v717_v47, %v716_v42  ;;  %v763_v51 = vpop.f32.mrf.mxu1 }
  0xff   :  { %v719_v52 = vpop.f32.mrf.mxu0  ;;  %v764_v56 = vadd.f32 %v763_v51, %v762_v46 }
 0x100   :  { %599 = vst.msk [vmem:[%s1070_s3 + $0x10] sm:$0xf] %vm594_vm0, %v676_v48  ;;  %v549_v53 = vmax.f32 %v525_v49, 0.0  ;;  %v457_v55 = vadd.f32 %v718_v50, %v1015_v54  ;;  %v765_v57 = vpop.f32.mrf.mxu1 }
 0x101   :  { %v720_v58 = vpop.f32.mrf.mxu0 }
 0x102   :  { %v677_v59 = vpack.c.bf16 %v549_v53, %v549_v53  ;;  %v530_v60 = vadd.f32 %v764_v56, %v457_v55  ;;  %v721_v61 = vadd.f32 %v720_v58, %v719_v52  ;;  %v766_v62 = vpop.f32.mrf.mxu1 }
 0x103   :  { %v722_v63 = vpop.f32.mrf.mxu0  ;;  %v767_v2 = vadd.f32 %v766_v62, %v765_v57 }
 0x104   :  { %600 = vst.msk [vmem:[%s1070_s3 + $0x14] sm:$0xf] %vm594_vm0, %v677_v59  ;;  %v550_v0 = vmax.f32 %v530_v60, 0.0  ;;  %v460_v1 = vadd.f32 %v721_v61, %v1015_v54  ;;  %v768_v3 = vpop.f32.mrf.mxu1 }
 0x105   :  { %v723_v4 = vpop.f32.mrf.mxu0 }
 0x106   :  { %v678_v5 = vpack.c.bf16 %v550_v0, %v550_v0  ;;  %v533_v6 = vadd.f32 %v767_v2, %v460_v1  ;;  %v724_v7 = vadd.f32 %v723_v4, %v722_v63  ;;  %v769_v8 = vpop.f32.mrf.mxu1 }
 0x107   :  { %v725_v9 = vpop.f32.mrf.mxu0  ;;  %v770_v12 = vadd.f32 %v769_v8, %v768_v3 }
 0x108   :  { %601 = vst.msk [vmem:[%s1070_s3 + $0x18] sm:$0xf] %vm594_vm0, %v678_v5  ;;  %v551_v10 = vmax.f32 %v533_v6, 0.0  ;;  %v465_v11 = vadd.f32 %v724_v7, %v1015_v54  ;;  %v771_v13 = vpop.f32.mrf.mxu1 }
 0x109   :  { %v726_v14 = vpop.f32.mrf.mxu0 }
 0x10a   :  { %v679_v15 = vpack.c.bf16 %v551_v10, %v551_v10  ;;  %v538_v16 = vadd.f32 %v770_v12, %v465_v11  ;;  %v727_v17 = vadd.f32 %v726_v14, %v725_v9  ;;  %v772_v18 = vpop.f32.mrf.mxu1 }
 0x10b   :  { %v773_v21 = vadd.f32 %v772_v18, %v771_v13 }
 0x10c   :  { %602 = vst.msk [vmem:[%s1070_s3 + $0x1c] sm:$0xf] %vm594_vm0, %v679_v15  ;;  %v552_v19 = vmax.f32 %v538_v16, 0.0  ;;  %v468_v20 = vadd.f32 %v727_v17, %v1015_v54 }
 0x10e   :  { %v680_v22 = vpack.c.bf16 %v552_v19, %v552_v19  ;;  %v541_v23 = vadd.f32 %v773_v21, %v468_v20 }
 0x110   :  { %603 = vst.msk [vmem:[%s1070_s3 + $0x20] sm:$0xf] %vm594_vm0, %v680_v22  ;;  %v553_v24 = vmax.f32 %v541_v23, 0.0 }
 0x112   :  { %v681_v25 = vpack.c.bf16 %v553_v24, %v553_v24 }
 0x114   :  { %604 = vst.msk [vmem:[%s1070_s3 + $0x24] sm:$0xf] %vm594_vm0, %v681_v25 }

// kernel: _lambda_.7
= control target key start
LH: loop header
LB: loop body
LE: loop exit
PB: predicated region body
PF: predicated region fallthrough
CT: control target
= control target key end

     0   :  { %vm378_vm0 = vcmask 523264   ;;  %vm632_vm1 = vcmask 261120   ;;  %s1045_s1 = inlined_call_operand.vmem [shape: bf16[576,64], index: 1, kind: input, shape index: {}]   ;;  %s1046_s0 = inlined_call_operand.vmem [shape: bf16[32,576], index: 0, kind: input, shape index: {}]   ;;  %s1047_s3 = inlined_call_operand.vmem [shape: bf16[64,32], index: 3, kind: input, shape index: {}]   ;;  %s1048_s2 = inlined_call_operand.vmem [shape: f32[1,64], index: 2, kind: input, shape index: {}]   ;;  %s1049_s4 = inlined_call_operand.vmem [shape: f32[1,32], index: 4, kind: input, shape index: {}]   ;;  %s1050_s5 = inlined_call_operand.vmem [shape: f32[32,32], index: 5, kind: output, shape index: {}]  }
   0x1   :  { %v789_v0 = vld [vmem:[%s1045_s1 + $0x78] sm:$0xff]   ;;  %v793_v4 = vld [vmem:[%s1045_s1 + $0x70] sm:$0xff]   ;;  %v797_v8 = vld [vmem:[%s1045_s1 + $0x68] sm:$0xff]  }
   0x2   :  { %v790_v1 = vld [vmem:[%s1045_s1 + $0xf8] sm:$0xff]   ;;  %697 = vmatprep.subr.bf16.mxu0 %v789_v0  ;;  %v794_v5 = vld [vmem:[%s1045_s1 + $0xf0] sm:$0xff]   ;;  %v798_v9 = vld [vmem:[%s1045_s1 + $0xe8] sm:$0xff]  }
   0x3   :  { %v791_v2 = vld [vmem:[%s1045_s1 + $0x38] sm:$0xff]   ;;  %725 = vmatprep.subr.bf16.mxu1 %v790_v1  ;;  %v795_v6 = vld [vmem:[%s1045_s1 + $0x30] sm:$0xff]   ;;  %v799_v10 = vld [vmem:[%s1045_s1 + $0x28] sm:$0xff]  }
   0x4   :  { %v792_v3 = vld [vmem:[%s1045_s1 + $0xb8] sm:$0xff]   ;;  %698 = vmatpush3.bf16.msra.mxu0 %v791_v2  ;;  %v796_v7 = vld [vmem:[%s1045_s1 + $0xb0] sm:$0xff]   ;;  %v800_v11 = vld [vmem:[%s1045_s1 + $0xa8] sm:$0xff]  }
   0x5   :  { %726 = vmatpush3.bf16.msra.mxu1 %v792_v3  ;;  %699 = vmatprep.subr.bf16.mxu0 %v793_v4  ;;  %v801_v12 = vld [vmem:[%s1045_s1 + $0x60] sm:$0xff]   ;;  %v805_v16 = vld [vmem:[%s1045_s1 + $0x58] sm:$0xff]   ;;  %v809_v20 = vld [vmem:[%s1045_s1 + $0x50] sm:$0xff]  }
   0x6   :  { %727 = vmatprep.subr.bf16.mxu1 %v794_v5  ;;  %v802_v13 = vld [vmem:[%s1045_s1 + $0xe0] sm:$0xff]   ;;  %v806_v17 = vld [vmem:[%s1045_s1 + $0xd8] sm:$0xff]   ;;  %v810_v21 = vld [vmem:[%s1045_s1 + $0xd0] sm:$0xff]  }
   0x7   :  { %v803_v14 = vld [vmem:[%s1045_s1 + $0x20] sm:$0xff]   ;;  %v807_v18 = vld [vmem:[%s1045_s1 + $0x18] sm:$0xff]   ;;  %v811_v22 = vld [vmem:[%s1045_s1 + $0x10] sm:$0xff]  }
   0x8   :  { %700 = vmatpush3.bf16.msra.mxu0 %v795_v6  ;;  %v804_v15 = vld [vmem:[%s1045_s1 + $0xa0] sm:$0xff]   ;;  %v808_v19 = vld [vmem:[%s1045_s1 + $0x98] sm:$0xff]   ;;  %v812_v23 = vld [vmem:[%s1045_s1 + $0x90] sm:$0xff]  }
   0x9   :  { %728 = vmatpush3.bf16.msra.mxu1 %v796_v7  ;;  %701 = vmatprep.subr.bf16.mxu0 %v797_v8  ;;  %v813_v24 = vld [vmem:[%s1045_s1 + $0x48] sm:$0xff]   ;;  %v817_v28 = vld [vmem:[%s1045_s1 + $0x40] sm:$0xff]   ;;  %v827_v36 = vld [vmem:[%s1045_s1 + $0x118] sm:$0xff]  }
   0xa   :  { %729 = vmatprep.subr.bf16.mxu1 %v798_v9  ;;  %v814_v25 = vld [vmem:[%s1045_s1 + $0xc8] sm:$0xff]   ;;  %v818_v29 = vld [vmem:[%s1045_s1 + $0xc0] sm:$0xff]   ;;  %v828_v37 = vld [vmem:[%s1045_s1 + $0x110] sm:$0xff]  }
   0xb   :  { %v815_v26 = vld [vmem:[%s1045_s1 + $0x8] sm:$0xff]   ;;  %v819_v30 = vld [vmem:[%s1045_s1] sm:$0xff]   ;;  %v839_v46 = vld [vmem:[%s1047_s3 + $0x18] sm:$0xff]  }
   0xc   :  { %702 = vmatpush3.bf16.msra.mxu0 %v799_v10  ;;  %v816_v27 = vld [vmem:[%s1045_s1 + $0x88] sm:$0xff]   ;;  %v820_v31 = vld [vmem:[%s1045_s1 + $0x80] sm:$0xff]   ;;  %v840_v47 = vld [vmem:[%s1047_s3 + $0x10] sm:$0xff]  }
   0xd   :  { %730 = vmatpush3.bf16.msra.mxu1 %v800_v11  ;;  %703 = vmatprep.subr.bf16.mxu0 %v801_v12  ;;  %v821_v32 = vld [vmem:[%s1046_s0] ss:$20 sps:$4 sm:$0xff]   ;;  %v823_v33 = vld [vmem:[%s1046_s0 + $0x4] ss:$20 sps:$4 sm:$0xff]   ;;  %v824_v34 = vld [vmem:[%s1046_s0 + $0x8] ss:$20 sps:$4 sm:$0xff]  }
   0xe   :  { %731 = vmatprep.subr.bf16.mxu1 %v802_v13  ;;  %v826_v35 = vld [vmem:[%s1046_s0 + $0xc] ss:$20 sps:$4 sm:$0xff]   ;;  %417 = vmatprep.mubr.bf16.mxu0 %v823_v33  ;;  %v831_v39 = vld [vmem:[%s1046_s0 + $0x34] ss:$20 sps:$4 sm:$0xff]   ;;  %v834_v42 = vld [vmem:[%s1046_s0 + $0x30] ss:$20 sps:$4 sm:$0xff]  }
   0xf   :  { %466 = vmatprep.mubr.bf16.mxu1 %v826_v35  ;;  %v829_v38 = vld [vmem:[%s1046_s0 + $0x2c] ss:$20 sps:$4 sm:$0xff]   ;;  %v833_v40 = vld [vmem:[%s1046_s0 + $0x28] ss:$20 sps:$4 sm:$0xff]   ;;  %v837_v43 = vld [vmem:[%s1046_s0 + $0x10] ss:$20 sps:$4 sm:$0xff]  }
  0x10   :  { %704 = vmatpush3.bf16.msra.mxu0 %v803_v14  ;;  %v835_v41 = vld [vmem:[%s1045_s1 + $0x108] sm:$0xff]   ;;  %v836_v44 = vld [vmem:[%s1045_s1 + $0x100] sm:$0xff]  }
  0x11   :  { %732 = vmatpush3.bf16.msra.mxu1 %v804_v15  ;;  %705 = vmatprep.subr.bf16.mxu0 %v805_v16  ;;  %v838_v45 = vld [vmem:[%s1046_s0 + $0x38] ss:$20 sps:$4 sm:$0xff]   ;;  %v842_v49 = vld [vmem:[%s1047_s3] sm:$0xff]  }
  0x12   :  { %733 = vmatprep.subr.bf16.mxu1 %v806_v17  ;;  %v841_v48 = vld [vmem:[%s1047_s3 + $0x8] sm:$0xff]   ;;  %v641_v1 = vld [vmem:[%s1048_s2] ss:$0 sm:$0xff] }
  0x13   :  { %v690_v33 = vld [vmem:[%s1049_s4] ss:$0 sm:$0xff] }
  0x14   :  { %706 = vmatpush3.bf16.msra.mxu0 %v807_v18 }
  0x15   :  { %734 = vmatpush3.bf16.msra.mxu1 %v808_v19  ;;  %707 = vmatprep.subr.bf16.mxu0 %v809_v20 }
  0x16   :  { %735 = vmatprep.subr.bf16.mxu1 %v810_v21 }
  0x18   :  { %708 = vmatpush3.bf16.msra.mxu0 %v811_v22 }
  0x19   :  { %736 = vmatpush3.bf16.msra.mxu1 %v812_v23  ;;  %709 = vmatprep.subr.bf16.mxu0 %v813_v24 }
  0x1a   :  { %737 = vmatprep.subr.bf16.mxu1 %v814_v25 }
  0x1c   :  { %710 = vmatpush3.bf16.msra.mxu0 %v815_v26 }
  0x1d   :  { %738 = vmatpush3.bf16.msra.mxu1 %v816_v27  ;;  %711 = vmatprep.subr.bf16.mxu0 %v817_v28 }
  0x1e   :  { %739 = vmatprep.subr.bf16.mxu1 %v818_v29 }
  0x20   :  { %712 = vmatpush3.bf16.msra.mxu0 %v819_v30 }
  0x21   :  { %740 = vmatpush3.bf16.msra.mxu1 %v820_v31  ;;  %765 = vmatprep.subr.bf16.mxu0 %v827_v36 }
  0x22   :  { %777 = vmatprep.subr.bf16.mxu1 %v839_v46 }
  0x23   :  { %418 = vmatmul.mubr.bf16.vlgmr.msra.gmra.mxu0 %v821_v32 }
  0x24   :  { %467 = vmatmul.mubr.bf16.vlgmr.msra.gmra.mxu1 %v824_v34  ;;  %766 = vmatpush3.bf16.msra.mxu0 %v827_v36 }
  0x25   :  { %767 = vmatprep.subr.bf16.mxu0 %v828_v37  ;;  %425 = vmatprep.mubr.bf16.mxu0 %v829_v38 }
  0x26   :  { %474 = vmatprep.mubr.bf16.mxu1 %v831_v39  ;;  %778 = vmatpush3.bf16.msra.mxu1 %v839_v46 }
  0x27   :  { %779 = vmatprep.subr.bf16.mxu1 %v840_v47 }
  0x28   :  { %768 = vmatpush3.bf16.msra.mxu0 %v828_v37 }
  0x29   :  { %769 = vmatprep.subr.bf16.mxu0 %v835_v41 }
  0x2a   :  { %780 = vmatpush3.bf16.msra.mxu1 %v840_v47 }
  0x2b   :  { %426 = vmatmul.mubr.bf16.gmra.mxu0 %v833_v40  ;;  %781 = vmatprep.subr.bf16.mxu1 %v841_v48 }
  0x2c   :  { %475 = vmatmul.mubr.bf16.gmra.mxu1 %v834_v42  ;;  %773 = vmatprep.mubr.msk.bf16.mxu0 %vm378_vm0, %v837_v43 }
  0x2d   :  { %770 = vmatpush3.bf16.msra.mxu0 %v835_v41 }
  0x2e   :  { %771 = vmatprep.subr.bf16.mxu0 %v836_v44  ;;  %782 = vmatpush3.bf16.msra.mxu1 %v841_v48 }
  0x2f   :  { %783 = vmatprep.subr.bf16.mxu1 %v842_v49 }
  0x31   :  { %772 = vmatpush3.bf16.msra.mxu0 %v836_v44 }
  0x32   :  { %784 = vmatpush3.bf16.msra.mxu1 %v842_v49 }
  0x34   :  { %774 = vmatmul.mubr.msk.bf16.vlgmr.msra.gmra.mxu0 %vm378_vm0, %v838_v45 }
  0xe3   :  { %v713_v50 = vpop.f32.mrf.mxu0 }
  0xe4   :  { %v741_v51 = vpop.f32.mrf.mxu1 }
  0xe5   :  { %v714_v52 = vpop.f32.mrf.mxu0 }
  0xe6   :  { %v742_v53 = vpop.f32.mrf.mxu1  ;;  %v715_v63 = vadd.f32 %v714_v52, %v713_v50 }
  0xe7   :  { %v716_v54 = vpop.f32.mrf.mxu0  ;;  %v743_v10 = vadd.f32 %v742_v53, %v741_v51 }
  0xe8   :  { %v744_v55 = vpop.f32.mrf.mxu1  ;;  %v420_v9 = vadd.f32 %v715_v63, %v641_v1 }
  0xe9   :  { %v717_v56 = vpop.f32.mrf.mxu0 }
  0xea   :  { %v745_v57 = vpop.f32.mrf.mxu1  ;;  %v718_v3 = vadd.f32 %v717_v56, %v716_v54  ;;  %v469_v19 = vadd.f32 %v743_v10, %v420_v9 }
  0xeb   :  { %v719_v58 = vpop.f32.mrf.mxu0  ;;  %v746_v18 = vadd.f32 %v745_v57, %v744_v55 }
  0xec   :  { %v747_v59 = vpop.f32.mrf.mxu1  ;;  %v423_v14 = vadd.f32 %v718_v3, %v641_v1 }
  0xed   :  { %v720_v60 = vpop.f32.mrf.mxu0 }
  0xee   :  { %v721_v61 = vadd.f32 %v720_v60, %v719_v58  ;;  %v748_v62 = vpop.f32.mrf.mxu1  ;;  %v472_v23 = vadd.f32 %v746_v18, %v423_v14 }
  0xef   :  { %v722_v0 = vpop.f32.mrf.mxu0  ;;  %v749_v6 = vadd.f32 %v748_v62, %v747_v59 }
  0xf0   :  { %v750_v2 = vpop.f32.mrf.mxu1  ;;  %v428_v5 = vadd.f32 %v721_v61, %v641_v1 }
  0xf1   :  { %v723_v4 = vpop.f32.mrf.mxu0 }
  0xf2   :  { %v724_v7 = vadd.f32 %v723_v4, %v722_v0  ;;  %v751_v8 = vpop.f32.mrf.mxu1  ;;  %v477_v15 = vadd.f32 %v749_v6, %v428_v5 }
  0xf3   :  { %v752_v12 = vadd.f32 %v751_v8, %v750_v2 }
  0xf4   :  { %v431_v11 = vadd.f32 %v724_v7, %v641_v1  ;;  %v775_v13 = vpop.f32.mrf.mxu0 }
  0xf5   :  { %v526_v24 = vadd.f32 %v775_v13, %v477_v15 }
  0xf6   :  { %v517_v16 = vpop.f32.mrf.mxu0  ;;  %v480_v17 = vadd.f32 %v752_v12, %v431_v11 }
  0xf7   :  { %v518_v21 = vadd.f32 %v517_v16, %v469_v19  ;;  %v534_v30 = vmax.f32 %v526_v24, 0.0 }
  0xf8   :  { %v776_v20 = vpop.f32.mrf.mxu0 }
  0xf9   :  { %v529_v22 = vadd.f32 %v776_v20, %v480_v17  ;;  %v532_v28 = vmax.f32 %v518_v21, 0.0 }
  0xfa   :  { %v520_v25 = vpop.f32.mrf.mxu0 }
  0xfb   :  { %v521_v26 = vadd.f32 %v520_v25, %v472_v23  ;;  %v535_v27 = vmax.f32 %v529_v22, 0.0 }
  0xfd   :  { %v533_v29 = vmax.f32 %v521_v26, 0.0  ;;  %v546_v32 = vpack.c.bf16 %v535_v27, %v534_v30 }
  0xff   :  { %v545_v31 = vpack.c.bf16 %v533_v29, %v532_v28 }
 0x101   :  { %785 = vmatprep.mubr.msk.bf16.mxu1 %vm378_vm0, %v545_v31 }
 0x102   :  { %786 = vmatmul.mubr.msk.bf16.vlgmr.msra.gmra.mxu1 %vm378_vm0, %v546_v32 }
 0x1c2   :  { %v787_v34 = vpop.f32.mrf.mxu1 }
 0x1c3   :  { %v626_v35 = vadd.f32 %v787_v34, %v690_v33 }
 0x1c4   :  { %v617_v36 = vpop.f32.mrf.mxu1 }
 0x1c5   :  { %635 = vst.msk [vmem:[%s1050_s5 + $0x10] sm:$0xff] %vm632_vm1, %v626_v35  ;;  %v618_v37 = vadd.f32 %v690_v33, %v617_v36 }
 0x1c6   :  { %v788_v38 = vpop.f32.mrf.mxu1 }
 0x1c7   :  { %633 = vst.msk [vmem:[%s1050_s5] sm:$0xff] %vm632_vm1, %v618_v37  ;;  %v629_v39 = vadd.f32 %v788_v38, %v690_v33 }
 0x1c8   :  { %v620_v40 = vpop.f32.mrf.mxu1 }
 0x1c9   :  { %636 = vst.msk [vmem:[%s1050_s5 + $0x18] sm:$0xff] %vm632_vm1, %v629_v39  ;;  %v621_v41 = vadd.f32 %v690_v33, %v620_v40 }
 0x1cb   :  { %634 = vst.msk [vmem:[%s1050_s5 + $0x8] sm:$0xff] %vm632_vm1, %v621_v41 }

// kernel: _lambda_.8
= control target key start
LH: loop header
LB: loop body
LE: loop exit
PB: predicated region body
PF: predicated region fallthrough
CT: control target
= control target key end

     0   :  { %v287_v0 = vmov 0.0   ;;  %vm288_vm0 = vmmov 0   ;;  %vm45_vm1 = vcmask 130048   ;;  %vm116_vm2 = vcmask 261120   ;;  %s369_s1 = inlined_call_operand.vmem [shape: bf16[16,32], index: 1, kind: input, shape index: {}]   ;;  %s370_s0 = inlined_call_operand.vmem [shape: f32[16,16], index: 0, kind: input, shape index: {}]   ;;  %s371_s3 = inlined_call_operand.vmem [shape: bf16[32,32], index: 3, kind: input, shape index: {}]   ;;  %s372_s2 = inlined_call_operand.vmem [shape: f32[1,32], index: 2, kind: input, shape index: {}]   ;;  %s373_s5 = inlined_call_operand.vmem [shape: bf16[32,32], index: 5, kind: input, shape index: {}]   ;;  %s374_s4 = inlined_call_operand.vmem [shape: f32[1,32], index: 4, kind: input, shape index: {}]   ;;  %s375_s6 = inlined_call_operand.vmem [shape: f32[1,32], index: 6, kind: input, shape index: {}]   ;;  %s376_s7 = inlined_call_operand.vmem [shape: f32[16,32], index: 7, kind: output, shape index: {}]  }
   0x1   :  { %258 = vmatprep.subr.bf16.mxu0 %v287_v0  ;;  %v282_v1 = vld [vmem:[%s369_s1] sm:$0xff]   ;;  %260 = vmatprep.mubr.msk.bf16.mxu0 %vm288_vm0, %v287_v0  ;;  %v28_v3 = vld [vmem:[%s370_s0 + $0x8] sm:$0xff] }
   0x2   :  { %v27_v2 = vld [vmem:[%s370_s0] sm:$0xff]  ;;  %264 = vmatprep.subr.bf16.mxu1 %v287_v0  ;;  %268 = vmatprep.mubr.msk.bf16.mxu1 %vm288_vm0, %v287_v0  ;;  %v283_v5 = vld [vmem:[%s371_s3 + $0x8] sm:$0xff]  }
   0x3   :  { %259 = vmatpush3.bf16.msra.mxu0 %v282_v1  ;;  %v32_v4 = vpack.c.bf16 %v28_v3, %v27_v2  ;;  %265 = vmatpush3.bf16.msra.mxu1 %v283_v5  ;;  %v284_v6 = vld [vmem:[%s371_s3] sm:$0xff]   ;;  %v285_v17 = vld [vmem:[%s373_s5 + $0x8] sm:$0xff]  }
   0x4   :  { %272 = vmatprep.subr.bf16.mxu0 %v287_v0  ;;  %266 = vmatprep.subr.bf16.mxu1 %v287_v0  ;;  %v239_v7 = vld [vmem:[%s372_s2] ss:$0 sm:$0xff] }
   0x5   :  { %v286_v18 = vld [vmem:[%s373_s5] sm:$0xff]  }
   0x6   :  { %261 = vmatmul.mubr.msk.bf16.vlgmr.msra.gmra.mxu0 %vm45_vm1, %v32_v4  ;;  %v242_v19 = vld [vmem:[%s374_s4] ss:$0 sm:$0xff] }
   0x7   :  { %276 = vmatprep.mubr.msk.bf16.mxu0 %vm288_vm0, %v287_v0  ;;  %267 = vmatpush3.bf16.msra.mxu1 %v284_v6  ;;  %v246_v29 = vld [vmem:[%s375_s6] ss:$0 sm:$0xff] }
   0x8   :  { %273 = vmatpush3.bf16.msra.mxu0 %v285_v17 }
   0x9   :  { %274 = vmatprep.subr.bf16.mxu0 %v287_v0 }
   0xc   :  { %275 = vmatpush3.bf16.msra.mxu0 %v286_v18 }
  0xc6   :  { %v83_v8 = vpop.f32.mrf.mxu0 }
  0xc7   :  { %v84_v10 = vadd.f32 %v239_v7, %v83_v8 }
  0xc8   :  { %v262_v9 = vpop.f32.mrf.mxu0 }
  0xc9   :  { %v90_v14 = vmax.f32 %v84_v10, 0.0 }
  0xca   :  { %v86_v11 = vpop.f32.mrf.mxu0 }
  0xcb   :  { %v87_v12 = vadd.f32 %v239_v7, %v86_v11 }
  0xcc   :  { %v263_v13 = vpop.f32.mrf.mxu0 }
  0xcd   :  { %v91_v15 = vmax.f32 %v87_v12, 0.0 }
  0xcf   :  { %v97_v16 = vpack.c.bf16 %v91_v15, %v90_v14 }
  0xd1   :  { %269 = vmatmul.mubr.msk.bf16.vlgmr.msra.gmra.mxu1 %vm116_vm2, %v97_v16 }
 0x191   :  { %v154_v20 = vpop.f32.mrf.mxu1 }
 0x192   :  { %v155_v22 = vadd.f32 %v242_v19, %v154_v20 }
 0x193   :  { %v270_v21 = vpop.f32.mrf.mxu1 }
 0x194   :  { %v161_v26 = vmax.f32 %v155_v22, 0.0 }
 0x195   :  { %v157_v23 = vpop.f32.mrf.mxu1 }
 0x196   :  { %v158_v24 = vadd.f32 %v242_v19, %v157_v23 }
 0x197   :  { %v271_v25 = vpop.f32.mrf.mxu1 }
 0x198   :  { %v162_v27 = vmax.f32 %v158_v24, 0.0 }
 0x19a   :  { %v168_v28 = vpack.c.bf16 %v162_v27, %v161_v26 }
 0x19c   :  { %277 = vmatmul.mubr.msk.bf16.vlgmr.msra.gmra.mxu0 %vm116_vm2, %v168_v28 }
 0x25c   :  { %v224_v30 = vpop.f32.mrf.mxu0 }
 0x25d   :  { %v225_v31 = vadd.f32 %v246_v29, %v224_v30 }
 0x25e   :  { %v278_v32 = vpop.f32.mrf.mxu0 }
 0x25f   :  { %v231_v33 = vmax.f32 %v225_v31, 0.0 }
 0x260   :  { %v227_v34 = vpop.f32.mrf.mxu0 }
 0x261   :  { %233 = vst.msk [vmem:[%s376_s7] sm:$0xff] %vm116_vm2, %v231_v33  ;;  %v228_v35 = vadd.f32 %v246_v29, %v227_v34 }
 0x262   :  { %v279_v36 = vpop.f32.mrf.mxu0 }
 0x263   :  { %v232_v37 = vmax.f32 %v228_v35, 0.0 }
 0x265   :  { %234 = vst.msk [vmem:[%s376_s7 + $0x8] sm:$0xff] %vm116_vm2, %v232_v37 }

// kernel: _lambda_.9
= control target key start
LH: loop header
LB: loop body
LE: loop exit
PB: predicated region body
PF: predicated region fallthrough
CT: control target
= control target key end

     0   :  { %s3449_s0 = inlined_call_operand.vmem [shape: f32[2,17,64], index: 0, kind: input, shape index: {}]   ;;  %s3450_s1 = inlined_call_operand.vmem [shape: f32[1,64], index: 1, kind: input, shape index: {}]   ;;  %s3451_s2 = inlined_call_operand.vmem [shape: f32[1,64], index: 2, kind: input, shape index: {}]   ;;  %s3452_s3 = inlined_call_operand.vmem [shape: bf16[64,192], index: 3, kind: input, shape index: {}]   ;;  %s3453_s4 = inlined_call_operand.vmem [shape: f32[1,192], index: 4, kind: input, shape index: {}]   ;;  %s3454_s5 = inlined_call_operand.vmem [shape: bf16[64,64], index: 5, kind: input, shape index: {}]   ;;  %s3455_s6 = inlined_call_operand.vmem [shape: f32[1,64], index: 6, kind: input, shape index: {}]   ;;  %s3456_s7 = inlined_call_operand.vmem [shape: f32[1,64], index: 7, kind: input, shape index: {}]   ;;  %s3457_s8 = inlined_call_operand.vmem [shape: f32[1,64], index: 8, kind: input, shape index: {}]   ;;  %s3458_s9 = inlined_call_operand.vmem [shape: bf16[64,128], index: 9, kind: input, shape index: {}]   ;;  %s3459_s10 = inlined_call_operand.vmem [shape: f32[1,128], index: 10, kind: input, shape index: {}]   ;;  %s3460_s11 = inlined_call_operand.vmem [shape: bf16[128,64], index: 11, kind: input, shape index: {}]   ;;  %s3461_s12 = inlined_call_operand.vmem [shape: f32[1,64], index: 12, kind: input, shape index: {}]   ;;  %s3462_s13 = inlined_call_operand.vmem [shape: f32[1,64], index: 13, kind: input, shape index: {}]   ;;  %s3463_s14 = inlined_call_operand.vmem [shape: f32[1,64], index: 14, kind: input, shape index: {}]   ;;  %s3464_s15 = inlined_call_operand.vmem [shape: bf16[128,32], index: 15, kind: input, shape index: {}]   ;;  %s3465_s16 = inlined_call_operand.vmem [shape: f32[1,32], index: 16, kind: input, shape index: {}]   ;;  %s3466_s17 = inlined_call_operand.hbm [shape: f32[2,1,32], index: 17, kind: output, shape index: {}]  }
   0x1   :  { %3468 = sst [smem:[#allocation7_spill]] %s3449_s0 }
   0x2   :  { %3469 = sst [smem:[#allocation8_spill]] %s3450_s1 }
   0x3   :  { %s3470_s26 = sld [smem:[#allocation7_spill]]  ;;  %vm63_vm0 = vcmask 523264   ;;  %vm70_vm1 = vcmask 516096  }
   0x9   :  { %v58_v0 = vld [vmem:[%s3470_s26] sm:$0xff]  ;;  %v60_v1 = vld [vmem:[%s3470_s26 + $0x10] sm:$0x1]  ;;  %v59_v2 = vld [vmem:[%s3470_s26 + $0x8] sm:$0xff] }
   0xa   :  { %v64_v3 = vsel %vm63_vm0, %v58_v0, 0.0  ;;  %v71_v4 = vsel %vm70_vm1, %v60_v1, 0.0  ;;  %v67_v5 = vsel %vm63_vm0, %v59_v2, 0.0 }
   0xb   :  { %65 = vadd.xlane.f32.xlu0 %v64_v3  ;;  %72 = vadd.xlane.f32.xlu1 %v71_v4 }
   0xf   :  { %68 = vadd.xlane.f32.xlu0 %v67_v5 }
  0x10   :  { %22 = vsyncpa [#allocation5], 0  ;;  %v2853_v21 = vld [vmem:[%s3452_s3 + $0x34] ss:$8 sps:$4 sm:$0xff]   ;;  %v2858_v22 = vld [vmem:[%s3452_s3 + $0x30] ss:$8 sps:$4 sm:$0xff]   ;;  %v135_v55 = vlaneseq }
  0x11   :  { %v2863_v23 = vld [vmem:[%s3452_s3 + $0x24] ss:$8 sps:$4 sm:$0xff]   ;;  %199 = vmatprep.subr.bf16.mxu0 %v2853_v21  ;;  %v2870_v24 = vld [vmem:[%s3452_s3 + $0x20] ss:$8 sps:$4 sm:$0xff]   ;;  %v2736_v25 = vmov 0   ;;  %s3471_s1 = sld [smem:[#allocation8_spill]] }
  0x12   :  { %200 = vmatpush1.bf16.msra.mxu0 %v2858_v22  ;;  %223 = vmatprep.mubr.bf16.mxu0 %v2736_v25  ;;  %v2877_v26 = vld [vmem:[%s3452_s3 + $0x14] ss:$8 sps:$4 sm:$0xff]   ;;  %v2883_v27 = vld [vmem:[%s3452_s3 + $0x10] ss:$8 sps:$4 sm:$0xff]   ;;  %v2889_v28 = vld [vmem:[%s3452_s3 + $0x4] ss:$8 sps:$4 sm:$0xff]  }
  0x13   :  { %201 = vmatprep.subr.bf16.mxu0 %v2863_v23  ;;  %v2895_v29 = vld [vmem:[%s3452_s3] ss:$8 sps:$4 sm:$0xff]   ;;  %v2928_v56 = vshrl.u32 %v135_v55, 7  ;;  %vm252_vm2 = vcmask 261120   ;;  %s2737_s23 = smov 64   ;;  %s2738_s24 = smov 32  }
  0x14   :  { %v2908_v46 = vld [vmem:[%s3451_s2] ss:$0 sm:$0xff]  ;;  %s2739_s25 = smov 96   ;;  %vm356_vm3 = vcmask 1040384   ;;  %vm313_vm4 = vcmask 138240   ;;  %vm320_vm5 = vcmask 131072  }
  0x15   :  { %v137_v57 = vsub.s32 0, %v2928_v56  ;;  %v133_v58 = vld [vmem:[%s3453_s4] sm:$0x3]  ;;  %v141_v59 = vsub.s32 1, %v2928_v56  ;;  %vm412_vm6 = vcmask 253952   ;;  %vm596_vm7 = vcmask 516352  }
  0x16   :  { %202 = vmatpush1.bf16.msra.mxu0 %v2870_v24  ;;  %vm593_vm8 = vcmask 523520   ;;  %vm1042_vm9 = vcmask 1046528   ;;  %vm1066_vm10 = vcmask 1040896   ;;  %vm2741_vm11 = vmmov 0  }
  0x17   :  { %203 = vmatprep.subr.bf16.mxu0 %v2877_v26  ;;  %v2902_v41 = vld [vmem:[%s3471_s1] ss:$0 sm:$0xff]  ;;  %v138_v61 = vrot.slane %v133_v58, %v137_v57  ;;  %v142_v63 = vrot.slane %v133_v58, %v141_v59  ;;  %vm2180_vm12 = vcmask 254977  }
  0x1a   :  { %204 = vmatpush1.bf16.msra.mxu0 %v2883_v27 }
  0x1b   :  { %205 = vmatprep.subr.bf16.mxu0 %v2889_v28 }
  0x1e   :  { %206 = vmatpush1.bf16.msra.mxu0 %v2895_v29 }
  0x94   :  { %v66_v6 = vpop.xlane.xlu0 %65  ;;  %v73_v7 = vpop.xlane.xlu1 %72 }
  0x95   :  { %v75_v8 = vmul.f32 0.015625, %v66_v6  ;;  %v77_v9 = vmul.f32 0.015625, %v73_v7 }
  0x97   :  { %v78_v10 = vsub.f32 %v58_v0, %v75_v8  ;;  %v80_v11 = vsub.f32 %v60_v1, %v77_v9 }
  0x98   :  { %v69_v12 = vpop.xlane.xlu0 %68 }
  0x99   :  { %v76_v13 = vmul.f32 0.015625, %v69_v12  ;;  %v81_v14 = vmul.f32 %v78_v10, %v78_v10  ;;  %v83_v15 = vmul.f32 %v80_v11, %v80_v11 }
  0x9b   :  { %v79_v16 = vsub.f32 %v59_v2, %v76_v13  ;;  %v84_v17 = vsel %vm63_vm0, %v81_v14, 0.0  ;;  %v90_v18 = vsel %vm70_vm1, %v83_v15, 0.0 }
  0x9c   :  { %85 = vadd.xlane.f32.xlu1 %v84_v17 }
  0x9d   :  { %v82_v19 = vmul.f32 %v79_v16, %v79_v16 }
  0x9f   :  { %v87_v20 = vsel %vm63_vm0, %v82_v19, 0.0 }
  0xa0   :  { %91 = vadd.xlane.f32.xlu1 %v90_v18  ;;  %88 = vadd.xlane.f32.xlu0 %v87_v20 }
 0x125   :  { %v86_v30 = vpop.xlane.xlu1 %85 }
 0x126   :  { %v93_v31 = vmul.f32 0.015625, %v86_v30 }
 0x128   :  { %v96_v32 = vadd.f32 1e-05, %v93_v31 }
 0x129   :  { %v92_v33 = vpop.xlane.xlu1 %91  ;;  %v89_v34 = vpop.xlane.xlu0 %88 }
 0x12a   :  { %2630 = vrsqrt.f32 %v96_v32  ;;  %v95_v35 = vmul.f32 0.015625, %v92_v33  ;;  %v94_v36 = vmul.f32 0.015625, %v89_v34  ;;  %v2958_v32 = vsel %vm356_vm3, 65535, %v2736_v25 }
 0x12c   :  { %v98_v37 = vadd.f32 1e-05, %v95_v35  ;;  %v97_v38 = vadd.f32 1e-05, %v94_v36 }
 0x12e   :  { %2632 = vrsqrt.f32 %v98_v37 }
 0x12f   :  { %2634 = vrsqrt.f32 %v97_v38 }
 0x137   :  { %v2631_v39 = vpop.eup %2630 }
 0x138   :  { %v102_v40 = vmul.f32 %v2631_v39, %v78_v10 }
 0x13a   :  { %v111_v45 = vmul.f32 %v2902_v41, %v102_v40 }
 0x13b   :  { %v2633_v42 = vpop.eup %2632 }
 0x13c   :  { %v2635_v43 = vpop.eup %2634  ;;  %v104_v48 = vmul.f32 %v2633_v42, %v80_v11  ;;  %v2912_v49 = vadd.f32 %v2908_v46, %v111_v45 }
 0x13d   :  { %v103_v44 = vmul.f32 %v2635_v43, %v79_v16 }
 0x13e   :  { %v113_v52 = vmul.f32 %v2902_v41, %v104_v48 }
 0x13f   :  { %v112_v47 = vmul.f32 %v2902_v41, %v103_v44 }
 0x140   :  { %v2923_v53 = vadd.f32 %v2908_v46, %v113_v52 }
 0x141   :  { %v2915_v50 = vadd.f32 %v2908_v46, %v112_v47 }
 0x142   :  { %v124_v54 = vpack.c.bf16 %v2923_v53, %v2923_v53 }
 0x143   :  { %v123_v51 = vpack.c.bf16 %v2915_v50, %v2912_v49 }
 0x145   :  { %2208 = vmatmul.mubr.msk.bf16.vlgmr.msra.gmra.mxu0 %vm63_vm0, %v123_v51 }
 0x146   :  { %233 = vmatprep.mubr.bf16.mxu0 %v2736_v25 }
 0x14d   :  { %2209 = vmatmul.mubr.msk.bf16.gmra.mxu0 %vm63_vm0, %v124_v54 }
 0x205   :  { %v225_v60 = vpop.f32.mrf.mxu0 }
 0x206   :  { %v226_v1 = vadd.f32 %v225_v60, %v138_v61 }
 0x207   :  { %v227_v62 = vpop.f32.mrf.mxu0 }
 0x208   :  { %v228_v4 = vadd.f32 %v227_v62, %v142_v63 }
 0x209   :  { %v229_v0 = vpop.f32.mrf.mxu0 }
 0x20a   :  { %v230_v2 = vadd.f32 %v229_v0, %v138_v61 }
 0x20b   :  { %v231_v3 = vpop.f32.mrf.mxu0 }
 0x20c   :  { %v242_v5 = vpack.c.bf16 %v230_v2, %v226_v1  ;;  %v232_v6 = vadd.f32 %v231_v3, %v142_v63 }
 0x20d   :  { %v235_v7 = vpop.f32.mrf.mxu0 }
 0x20e   :  { %v2939_v8 = vpack.c.bf16 %v232_v6, %v228_v4  ;;  %v236_v9 = vadd.f32 %v235_v7, %v138_v61  ;;  %248 = vrot.lane.b32.xlu1 %v242_v5, %s2737_s23  ;;  %2393 = vmatprep.mubr.msk.bf16.mxu1 %vm252_vm2, %v242_v5 }
 0x20f   :  { %v237_v10 = vpop.f32.mrf.mxu0 }
 0x210   :  { %v244_v11 = vpack.c.bf16 %v236_v9, %v236_v9  ;;  %v238_v17 = vadd.f32 %v237_v10, %v142_v63 }
 0x211   :  { %v239_v12 = vpop.f32.mrf.mxu0 }
 0x212   :  { %250 = vrot.lane.b32.xlu0 %v244_v11, %s2737_s23  ;;  %420 = vrot.lane.b32.xlu1 %v244_v11, %s2738_s24  ;;  %v2953_v31 = vpack.c.bf16 %v238_v17, %v238_v17 }
 0x213   :  { %v240_v13 = vpop.f32.mrf.mxu0 }
 0x214   :  { %v360_v33 = vand.u32 %v2958_v32, %v2953_v31 }
 0x216   :  { %414 = vrot.lane.b32.xlu0 %v242_v5, %s2739_s25  ;;  %418 = vrot.lane.b32.xlu1 %v242_v5, %s2738_s24 }
 0x21a   :  { %416 = vrot.lane.b32.xlu1 %v244_v11, %s2739_s25 }
 0x280   :  { %v249_v14 = vpop.permute.xlu1 %248 }
 0x281   :  { %v260_v35 = vsel %vm252_vm2, %v249_v14, 0 }
 0x284   :  { %v251_v15 = vpop.permute.xlu0 %250  ;;  %v421_v16 = vpop.permute.xlu1 %420 }
 0x285   :  { %v432_v18 = vsel %vm252_vm2, %v421_v16, 0  ;;  %2561 = vmatprep.subr.msk.bf16.mxu1 %vm252_vm2, %v251_v15  ;;  %2563 = vmatprep.subr.msk.bf16.mxu0 %vm252_vm2, %v421_v16  ;;  %v263_v19 = vsel %vm252_vm2, %v251_v15, 0 }
 0x286   :  { %2390 = vmatpush3.bf16.xpose.msra.mxu1 %v263_v19  ;;  %2406 = vmatpush3.bf16.xpose.msra.mxu0 %v432_v18 }
 0x287   :  { %2562 = vmatprep.subr.msk.bf16.mxu1 %vm252_vm2, %v249_v14 }
 0x288   :  { %v415_v20 = vpop.permute.xlu0 %414  ;;  %v419_v30 = vpop.permute.xlu1 %418 }
 0x289   :  { %2564 = vmatprep.subr.msk.bf16.mxu0 %vm252_vm2, %v419_v30  ;;  %2409 = vmatprep.mubr.msk.bf16.mxu0 %vm252_vm2, %v415_v20  ;;  %v429_v34 = vsel %vm252_vm2, %v419_v30, 0 }
 0x28c   :  { %v417_v36 = vpop.permute.xlu1 %416 }
 0x28e   :  { %2392 = vmatpush3.bf16.xpose.msra.mxu1 %v260_v35  ;;  %2408 = vmatpush3.bf16.xpose.msra.mxu0 %v429_v34 }
 0x28f   :  { %2397 = vmatprep.subr.bf16.mxu1 %v360_v33 }
 0x295   :  { %2394 = vmatmul.mubr.msk.bf16.vlgmr.msra.gmra.mxu1 %vm252_vm2, %v244_v11  ;;  %2410 = vmatmul.mubr.msk.bf16.vlgmr.msra.gmra.mxu0 %vm252_vm2, %v417_v36 }
 0x296   :  { %2398 = vmatpush3.bf16.msra.mxu1 %v360_v33 }
 0x297   :  { %2399 = vmatprep.subr.bf16.mxu1 %v2939_v8 }
 0x29a   :  { %2400 = vmatpush3.bf16.msra.mxu1 %v2939_v8 }
 0x355   :  { %v2395_v37 = vpop.f32.mrf.mxu1  ;;  %v2411_v38 = vpop.f32.mrf.mxu0 }
 0x356   :  { %v321_v47 = vsel %vm320_vm5, %v2395_v37, -inf  ;;  %v488_v52 = vsel %vm320_vm5, %v2411_v38, -inf }
 0x357   :  { %v299_v39 = vpop.f32.mrf.mxu1  ;;  %v468_v40 = vpop.f32.mrf.mxu0 }
 0x358   :  { %v314_v42 = vsel %vm313_vm4, %v299_v39, -inf  ;;  %v482_v51 = vsel %vm313_vm4, %v468_v40, -inf }
 0x359   :  { %v2412_v43 = vpop.f32.mrf.mxu0  ;;  %315 = vmax.xlane.f32.xlu0 %v314_v42  ;;  %v2396_v44 = vpop.f32.mrf.mxu1 }
 0x35b   :  { %v302_v45 = vpop.f32.mrf.mxu1  ;;  %v471_v54 = vpop.f32.mrf.mxu0 }
 0x35c   :  { %v317_v48 = vsel %vm313_vm4, %v302_v45, -inf  ;;  %v485_v55 = vsel %vm313_vm4, %v471_v54, -inf }
 0x35d   :  { %322 = vmax.xlane.f32.xlu0 %v321_v47  ;;  %318 = vmax.xlane.f32.xlu1 %v317_v48 }
 0x361   :  { %483 = vmax.xlane.f32.xlu0 %v482_v51  ;;  %489 = vmax.xlane.f32.xlu1 %v488_v52 }
 0x365   :  { %486 = vmax.xlane.f32.xlu0 %v485_v55 }
 0x3e2   :  { %v316_v58 = vpop.xlane.xlu0 %315 }
 0x3e3   :  { %v324_v60 = vsub.f32 %v299_v39, %v316_v58 }
 0x3e5   :  { %v327_v0 = vmul.f32 1.442695, %v324_v60 }
 0x3e6   :  { %v323_v61 = vpop.xlane.xlu0 %322  ;;  %v319_v62 = vpop.xlane.xlu1 %318 }
 0x3e7   :  { %v326_v63 = vsub.f32 %v2395_v37, %v323_v61  ;;  %v325_v7 = vsub.f32 %v302_v45, %v319_v62 }
 0x3e9   :  { %v331_v1 = vmul.f32 1.442695, %v326_v63  ;;  %v329_v13 = vmul.f32 1.442695, %v325_v7 }
 0x3ea   :  { %v484_v2 = vpop.xlane.xlu0 %483  ;;  %v490_v3 = vpop.xlane.xlu1 %489 }
 0x3eb   :  { %2636 = vpow2.f32 %v331_v1  ;;  %v491_v4 = vsub.f32 %v468_v40, %v484_v2  ;;  %v493_v5 = vsub.f32 %v2411_v38, %v490_v3 }
 0x3ec   :  { %2638 = vpow2.f32 %v327_v0 }
 0x3ed   :  { %v498_v6 = vmul.f32 1.442695, %v493_v5  ;;  %v494_v9 = vmul.f32 1.442695, %v491_v4  ;;  %v2590_v4 = vld [vmem:[%s3454_s5 + $0x18] sm:$0xff]   ;;  %v2591_v5 = vld [vmem:[%s3454_s5 + $0x10] sm:$0xff]  }
 0x3ee   :  { %v487_v10 = vpop.xlane.xlu0 %486  ;;  %2421 = vmatprep.subr.bf16.mxu0 %v2590_v4 }
 0x3ef   :  { %v492_v11 = vsub.f32 %v471_v54, %v487_v10  ;;  %2640 = vpow2.f32 %v498_v6  ;;  %2422 = vmatpush3.bf16.msra.mxu0 %v2590_v4 }
 0x3f0   :  { %2642 = vpow2.f32 %v494_v9  ;;  %2423 = vmatprep.subr.bf16.mxu0 %v2591_v5  ;;  %v2592_v9 = vld [vmem:[%s3454_s5 + $0x8] sm:$0xff]  }
 0x3f1   :  { %v496_v12 = vmul.f32 1.442695, %v492_v11  ;;  %v2593_v11 = vld [vmem:[%s3454_s5] sm:$0xff]  }
 0x3f3   :  { %2644 = vpow2.f32 %v496_v12  ;;  %2424 = vmatpush3.bf16.msra.mxu0 %v2591_v5 }
 0x3f4   :  { %2646 = vpow2.f32 %v329_v13  ;;  %2425 = vmatprep.subr.bf16.mxu0 %v2592_v9 }
 0x3f7   :  { %2426 = vmatpush3.bf16.msra.mxu0 %v2592_v9 }
 0x3f8   :  { %v2637_v14 = vpop.eup %2636  ;;  %2427 = vmatprep.subr.bf16.mxu0 %v2593_v11 }
 0x3f9   :  { %v339_v15 = vsel %vm320_vm5, %v2637_v14, 0.0  ;;  %v2639_v16 = vpop.eup %2638 }
 0x3fa   :  { %340 = vadd.xlane.f32.xlu0 %v339_v15  ;;  %v333_v18 = vsel %vm313_vm4, %v2639_v16, 0.0 }
 0x3fb   :  { %2428 = vmatpush3.bf16.msra.mxu0 %v2593_v11 }
 0x3fc   :  { %v2641_v17 = vpop.eup %2640 }
 0x3fd   :  { %v506_v19 = vsel %vm320_vm5, %v2641_v17, 0.0  ;;  %v2643_v20 = vpop.eup %2642 }
 0x3fe   :  { %334 = vadd.xlane.f32.xlu0 %v333_v18  ;;  %507 = vadd.xlane.f32.xlu1 %v506_v19  ;;  %v500_v34 = vsel %vm313_vm4, %v2643_v20, 0.0 }
 0x400   :  { %v2645_v30 = vpop.eup %2644 }
 0x401   :  { %v503_v33 = vsel %vm313_vm4, %v2645_v30, 0.0  ;;  %v2647_v35 = vpop.eup %2646 }
 0x402   :  { %504 = vadd.xlane.f32.xlu0 %v503_v33  ;;  %501 = vadd.xlane.f32.xlu1 %v500_v34  ;;  %v336_v36 = vsel %vm313_vm4, %v2647_v35, 0.0 }
 0x406   :  { %337 = vadd.xlane.f32.xlu1 %v336_v36 }
 0x417   :  { %519 = vrot.lane.b32.xlu1 %v2939_v8, %s2739_s25 }
 0x418   :  { %521 = vrot.lane.b32.xlu0 %v2953_v31, %s2739_s25 }
 0x483   :  { %v341_v37 = vpop.xlane.xlu0 %340 }
 0x484   :  { %2648 = vrcp.f32 %v341_v37  ;;  %v3015_v37 = vld [vmem:[%s3455_s6] ss:$0 sm:$0xff] }
 0x487   :  { %v335_v38 = vpop.xlane.xlu0 %334  ;;  %v508_v39 = vpop.xlane.xlu1 %507 }
 0x488   :  { %2650 = vrcp.f32 %v335_v38 }
 0x48b   :  { %v505_v40 = vpop.xlane.xlu0 %504  ;;  %v502_v42 = vpop.xlane.xlu1 %501 }
 0x48c   :  { %2652 = vrcp.f32 %v505_v40 }
 0x48d   :  { %2654 = vrcp.f32 %v502_v42 }
 0x48f   :  { %v522_v43 = vpop.permute.xlu0 %521  ;;  %v338_v45 = vpop.xlane.xlu1 %337 }
 0x490   :  { %v531_v44 = vand.u32 %v522_v43, %v2958_v32  ;;  %2656 = vrcp.f32 %v338_v45 }
 0x491   :  { %2658 = vrcp.f32 %v508_v39  ;;  %v2649_v8 = vpop.eup %2648 }
 0x492   :  { %2413 = vmatprep.subr.bf16.mxu1 %v531_v44  ;;  %v347_v52 = vmul.f32 %v2649_v8, %v2637_v14 }
 0x493   :  { %v520_v1 = vpop.permute.xlu1 %519 }
 0x494   :  { %v349_v62 = vpack.c.bf16 %v347_v52, %v347_v52  ;;  %v2245_v52 = vld [vmem:[%s3470_s26 + $0x18] sm:$0xff] }
 0x495   :  { %v2651_v47 = vpop.eup %2650 }
 0x496   :  { %v345_v54 = vmul.f32 %v2651_v47, %v2639_v16 }
 0x499   :  { %v2653_v48 = vpop.eup %2652 }
 0x49a   :  { %v2655_v31 = vpop.eup %2654  ;;  %v513_v60 = vmul.f32 %v2653_v48, %v2645_v30 }
 0x49b   :  { %v512_v58 = vmul.f32 %v2655_v31, %v2643_v20 }
 0x49d   :  { %v2657_v51 = vpop.eup %2656  ;;  %v515_v0 = vpack.c.bf16 %v513_v60, %v512_v58 }
 0x49e   :  { %v346_v55 = vmul.f32 %v2657_v51, %v2647_v35  ;;  %v2659_v63 = vpop.eup %2658 }
 0x49f   :  { %v514_v2 = vmul.f32 %v2659_v63, %v2641_v17 }
 0x4a0   :  { %v348_v61 = vpack.c.bf16 %v346_v55, %v345_v54  ;;  %v1074_v55 = vsel %vm63_vm0, %v2245_v52, 0.0 }
 0x4a1   :  { %v516_v3 = vpack.c.bf16 %v514_v2, %v514_v2 }
 0x4a2   :  { %2401 = vmatprep.mubr.msk.bf16.mxu1 %vm313_vm4, %v348_v61 }
 0x4a3   :  { %2402 = vmatmul.mubr.msk.bf16.vlgmr.msra.gmra.mxu1 %vm313_vm4, %v349_v62 }
 0x4a4   :  { %2414 = vmatpush3.bf16.msra.mxu1 %v531_v44  ;;  %2417 = vmatprep.mubr.msk.bf16.mxu1 %vm313_vm4, %v515_v0  ;;  %v2246_v44 = vld [vmem:[%s3470_s26 + $0x20] sm:$0xff] }
 0x4a5   :  { %2415 = vmatprep.subr.bf16.mxu1 %v520_v1  ;;  %v1077_v31 = vsel %vm63_vm0, %v2246_v44, 0.0 }
 0x4a8   :  { %2416 = vmatpush3.bf16.msra.mxu1 %v520_v1 }
 0x4ab   :  { %2418 = vmatmul.mubr.msk.bf16.vlgmr.msra.gmra.mxu1 %vm313_vm4, %v516_v3 }
 0x563   :  { %v2403_v6 = vpop.f32.mrf.mxu1 }
 0x564   :  { %413 = vst.msk [vmem:[#allocation2 + $0x10] sm:$0x1] %vm412_vm6, %v2403_v6 }
 0x565   :  { %v396_v7 = vpop.f32.mrf.mxu1 }
 0x566   :  { %410 = vst.msk [vmem:[#allocation2] sm:$0xff] %vm252_vm2, %v396_v7 }
 0x567   :  { %v2404_v10 = vpop.f32.mrf.mxu1 }
 0x569   :  { %v399_v12 = vpop.f32.mrf.mxu1 }
 0x56a   :  { %411 = vst.msk [vmem:[#allocation2 + $0x8] sm:$0xff] %vm252_vm2, %v399_v12 }
 0x56b   :  { %v2419_v13 = vpop.f32.mrf.mxu1 }
 0x56c   :  { %588 = vrot.lane.b32.xlu0 %v2419_v13, %s2738_s24 }
 0x56d   :  { %v567_v14 = vpop.f32.mrf.mxu1 }
 0x56e   :  { %584 = vrot.lane.b32.xlu1 %v567_v14, %s2738_s24 }
 0x56f   :  { %v2420_v15 = vpop.f32.mrf.mxu1 }
 0x571   :  { %v570_v16 = vpop.f32.mrf.mxu1 }
 0x572   :  { %586 = vrot.lane.b32.xlu1 %v570_v16, %s2738_s24 }
 0x5de   :  { %v589_v17 = vpop.permute.xlu0 %588 }
 0x5df   :  { %597 = vst.msk [vmem:[#allocation2 + $0x10] sm:$0x1] %vm596_vm7, %v589_v17 }
 0x5e0   :  { %v585_v18 = vpop.permute.xlu1 %584 }
 0x5e1   :  { %594 = vst.msk [vmem:[#allocation2] sm:$0xff] %vm593_vm8, %v585_v18 }
 0x5e4   :  { %v587_v19 = vpop.permute.xlu1 %586 }
 0x5e5   :  { %595 = vst.msk [vmem:[#allocation2 + $0x8] sm:$0xff] %vm593_vm8, %v587_v19 }
 0x5e6   :  { %v600_v20 = vld [vmem:[#allocation2 + $0x10] sm:$0x1] }
 0x5e7   :  { %v602_v35 = vpack.c.bf16 %v600_v20, %v600_v20 }
 0x5e8   :  { %v598_v30 = vld [vmem:[#allocation2] sm:$0xff] }
 0x5ec   :  { %v599_v33 = vld [vmem:[#allocation2 + $0x8] sm:$0xff] }
 0x5ed   :  { %v601_v34 = vpack.c.bf16 %v599_v33, %v598_v30 }
 0x5ef   :  { %2429 = vmatprep.mubr.msk.bf16.mxu0 %vm63_vm0, %v601_v34 }
 0x5f0   :  { %2430 = vmatmul.mubr.msk.bf16.vlgmr.msra.gmra.mxu0 %vm63_vm0, %v602_v35 }
 0x6b0   :  { %v2431_v36 = vpop.f32.mrf.mxu0 }
 0x6b1   :  { %v691_v45 = vadd.f32 %v2431_v36, %v3015_v37 }
 0x6b2   :  { %v682_v38 = vpop.f32.mrf.mxu0 }
 0x6b3   :  { %v683_v39 = vadd.f32 %v3015_v37, %v682_v38  ;;  %v2594_v38 = vld [vmem:[%s3458_s9 + $0x18] sm:$0xff]  }
 0x6b4   :  { %v2432_v40 = vpop.f32.mrf.mxu0  ;;  %2433 = vmatprep.subr.bf16.mxu1 %v2594_v38 }
 0x6b5   :  { %v696_v42 = vadd.f32 %v683_v39, %v2912_v49  ;;  %v698_v49 = vadd.f32 %v691_v45, %v2923_v53  ;;  %2434 = vmatpush3.bf16.msra.mxu1 %v2594_v38  ;;  %v2595_v39 = vld [vmem:[%s3458_s9 + $0x10] sm:$0xff]   ;;  %v2596_v40 = vld [vmem:[%s3458_s9 + $0x8] sm:$0xff]  }
 0x6b6   :  { %v685_v43 = vpop.f32.mrf.mxu0  ;;  %2435 = vmatprep.subr.bf16.mxu1 %v2595_v39  ;;  %v2600_v45 = vld [vmem:[%s3460_s11 + $0x28] sm:$0xff]  }
 0x6b7   :  { %v686_v8 = vadd.f32 %v3015_v37, %v685_v43  ;;  %v701_v47 = vsel %vm63_vm0, %v696_v42, 0.0  ;;  %v707_v54 = vsel %vm70_vm1, %v698_v49, 0.0  ;;  %v2598_v43 = vld [vmem:[%s3460_s11 + $0x38] sm:$0xff]  }
 0x6b8   :  { %702 = vadd.xlane.f32.xlu1 %v701_v47  ;;  %2445 = vmatprep.subr.bf16.mxu0 %v2598_v43 }
 0x6b9   :  { %v697_v48 = vadd.f32 %v686_v8, %v2915_v50  ;;  %v2247_v50 = vld [vmem:[%s3470_s26 + $0x28] sm:$0x1]  ;;  %2436 = vmatpush3.bf16.msra.mxu1 %v2595_v39  ;;  %2446 = vmatpush3.bf16.msra.mxu0 %v2598_v43  ;;  %v2602_v8 = vld [vmem:[%s3460_s11 + $0x18] sm:$0xff]  }
 0x6ba   :  { %v1080_v58 = vsel %vm70_vm1, %v2247_v50, 0.0  ;;  %2437 = vmatprep.subr.bf16.mxu1 %v2596_v40 }
 0x6bb   :  { %v704_v51 = vsel %vm63_vm0, %v697_v48, 0.0 }
 0x6bc   :  { %705 = vadd.xlane.f32.xlu0 %v704_v51  ;;  %1078 = vadd.xlane.f32.xlu1 %v1077_v31 }
 0x6bd   :  { %2438 = vmatpush3.bf16.msra.mxu1 %v2596_v40 }
 0x6c0   :  { %708 = vadd.xlane.f32.xlu0 %v707_v54 }
 0x6c4   :  { %1075 = vadd.xlane.f32.xlu0 %v1074_v55 }
 0x6c8   :  { %1081 = vadd.xlane.f32.xlu0 %v1080_v58 }
 0x741   :  { %v703_v53 = vpop.xlane.xlu1 %702 }
 0x742   :  { %v710_v60 = vmul.f32 0.015625, %v703_v53 }
 0x744   :  { %v3038_v61 = vsub.f32 %v696_v42, %v710_v60  ;;  %v2597_v42 = vld [vmem:[%s3458_s9] sm:$0xff]  }
 0x745   :  { %v706_v62 = vpop.xlane.xlu0 %705  ;;  %v1079_v63 = vpop.xlane.xlu1 %1078  ;;  %2439 = vmatprep.subr.bf16.mxu1 %v2597_v42 }
 0x746   :  { %v711_v0 = vmul.f32 0.015625, %v706_v62  ;;  %v716_v1 = vmul.f32 %v3038_v61, %v3038_v61  ;;  %v1084_v2 = vmul.f32 0.015625, %v1079_v63  ;;  %2440 = vmatpush3.bf16.msra.mxu1 %v2597_v42 }
 0x747   :  { %1207 = vmatprep.subr.bf16.mxu1 %v2853_v21  ;;  %v2601_v21 = vld [vmem:[%s3460_s11 + $0x20] sm:$0xff]  }
 0x748   :  { %v3042_v3 = vsub.f32 %v697_v48, %v711_v0  ;;  %v719_v4 = vsel %vm63_vm0, %v716_v1, 0.0  ;;  %v3047_v9 = vsub.f32 %v2246_v44, %v1084_v2  ;;  %v2599_v44 = vld [vmem:[%s3460_s11 + $0x30] sm:$0xff]  }
 0x749   :  { %v709_v5 = vpop.xlane.xlu0 %708  ;;  %720 = vadd.xlane.f32.xlu1 %v719_v4  ;;  %2447 = vmatprep.subr.bf16.mxu0 %v2599_v44 }
 0x74a   :  { %v712_v6 = vmul.f32 0.015625, %v709_v5  ;;  %v717_v7 = vmul.f32 %v3042_v3, %v3042_v3  ;;  %v1090_v15 = vmul.f32 %v3047_v9, %v3047_v9  ;;  %2448 = vmatpush3.bf16.msra.mxu0 %v2599_v44  ;;  %v3100_v5 = vld [vmem:[%s3456_s7] ss:$0 sm:$0xff] }
 0x74b   :  { %2449 = vmatprep.subr.bf16.mxu0 %v2600_v45 }
 0x74c   :  { %v3049_v10 = vsub.f32 %v698_v49, %v712_v6  ;;  %v722_v11 = vsel %vm63_vm0, %v717_v7, 0.0  ;;  %v1095_v30 = vsel %vm63_vm0, %v1090_v15, 0.0 }
 0x74d   :  { %723 = vadd.xlane.f32.xlu0 %v722_v11  ;;  %v1076_v12 = vpop.xlane.xlu0 %1075 }
 0x74e   :  { %v1083_v13 = vmul.f32 0.015625, %v1076_v12  ;;  %v718_v14 = vmul.f32 %v3049_v10, %v3049_v10  ;;  %2450 = vmatpush3.bf16.msra.mxu0 %v2600_v45 }
 0x74f   :  { %2451 = vmatprep.subr.bf16.mxu0 %v2601_v21 }
 0x750   :  { %v3056_v16 = vsub.f32 %v2245_v52, %v1083_v13  ;;  %v725_v17 = vsel %vm70_vm1, %v718_v14, 0.0  ;;  %v3107_v13 = vld [vmem:[%s3457_s8] ss:$0 sm:$0xff] }
 0x751   :  { %v1082_v18 = vpop.xlane.xlu0 %1081  ;;  %726 = vadd.xlane.f32.xlu1 %v725_v17 }
 0x752   :  { %v1085_v19 = vmul.f32 0.015625, %v1082_v18  ;;  %v1089_v20 = vmul.f32 %v3056_v16, %v3056_v16  ;;  %2452 = vmatpush3.bf16.msra.mxu0 %v2601_v21 }
 0x753   :  { %2453 = vmatprep.subr.bf16.mxu0 %v2602_v8 }
 0x754   :  { %v3062_v33 = vsub.f32 %v2247_v50, %v1085_v19  ;;  %v1092_v34 = vsel %vm63_vm0, %v1089_v20, 0.0 }
 0x755   :  { %1093 = vadd.xlane.f32.xlu0 %v1092_v34  ;;  %1096 = vadd.xlane.f32.xlu1 %v1095_v30 }
 0x756   :  { %v1091_v35 = vmul.f32 %v3062_v33, %v3062_v33  ;;  %2454 = vmatpush3.bf16.msra.mxu0 %v2602_v8 }
 0x758   :  { %v1098_v36 = vsel %vm70_vm1, %v1091_v35, 0.0 }
 0x759   :  { %1099 = vadd.xlane.f32.xlu0 %v1098_v36 }
 0x7d2   :  { %v721_v47 = vpop.xlane.xlu1 %720 }
 0x7d3   :  { %v728_v48 = vmul.f32 0.015625, %v721_v47 }
 0x7d5   :  { %v731_v31 = vadd.f32 1e-05, %v728_v48 }
 0x7d6   :  { %v724_v51 = vpop.xlane.xlu0 %723 }
 0x7d7   :  { %2660 = vrsqrt.f32 %v731_v31  ;;  %v729_v49 = vmul.f32 0.015625, %v724_v51 }
 0x7d9   :  { %v732_v52 = vadd.f32 1e-05, %v729_v49 }
 0x7da   :  { %v727_v54 = vpop.xlane.xlu1 %726 }
 0x7db   :  { %2662 = vrsqrt.f32 %v732_v52  ;;  %v730_v55 = vmul.f32 0.015625, %v727_v54  ;;  %v1141_v52 = vld [vmem:[%s3453_s4] sm:$0x3] }
 0x7dd   :  { %v733_v50 = vadd.f32 1e-05, %v730_v55  ;;  %v1146_v55 = vrot.slane %v1141_v52, %v137_v57 }
 0x7de   :  { %v1094_v58 = vpop.xlane.xlu0 %1093  ;;  %v1097_v53 = vpop.xlane.xlu1 %1096 }
 0x7df   :  { %2664 = vrsqrt.f32 %v733_v50  ;;  %v1101_v60 = vmul.f32 0.015625, %v1094_v58  ;;  %v1102_v62 = vmul.f32 0.015625, %v1097_v53 }
 0x7e1   :  { %v1104_v63 = vadd.f32 1e-05, %v1101_v60  ;;  %v1105_v0 = vadd.f32 1e-05, %v1102_v62 }
 0x7e2   :  { %v1100_v2 = vpop.xlane.xlu0 %1099 }
 0x7e3   :  { %2666 = vrsqrt.f32 %v1104_v63  ;;  %v1103_v6 = vmul.f32 0.015625, %v1100_v2 }
 0x7e4   :  { %v2661_v1 = vpop.eup %2660  ;;  %2668 = vrsqrt.f32 %v1105_v0 }
 0x7e5   :  { %v737_v4 = vmul.f32 %v2661_v1, %v3038_v61  ;;  %v1106_v14 = vadd.f32 1e-05, %v1103_v6  ;;  %v1150_v1 = vrot.slane %v1141_v52, %v141_v59 }
 0x7e7   :  { %v746_v12 = vmul.f32 %v3100_v5, %v737_v4  ;;  %2670 = vrsqrt.f32 %v1106_v14 }
 0x7e8   :  { %v2663_v7 = vpop.eup %2662 }
 0x7e9   :  { %v738_v11 = vmul.f32 %v2663_v7, %v3042_v3  ;;  %v3112_v18 = vadd.f32 %v3107_v13, %v746_v12 }
 0x7eb   :  { %v747_v61 = vmul.f32 %v3100_v5, %v738_v11 }
 0x7ec   :  { %v2665_v15 = vpop.eup %2664 }
 0x7ed   :  { %v739_v17 = vmul.f32 %v2665_v15, %v3049_v10  ;;  %v3115_v19 = vadd.f32 %v3107_v13, %v747_v61 }
 0x7ef   :  { %v758_v3 = vpack.c.bf16 %v3115_v19, %v3112_v18  ;;  %v748_v20 = vmul.f32 %v3100_v5, %v739_v17 }
 0x7f0   :  { %v2667_v34 = vpop.eup %2666 }
 0x7f1   :  { %2441 = vmatprep.mubr.msk.bf16.mxu1 %vm63_vm0, %v758_v3  ;;  %v3122_v30 = vadd.f32 %v3107_v13, %v748_v20  ;;  %v2669_v35 = vpop.eup %2668  ;;  %v1110_v36 = vmul.f32 %v2667_v34, %v3056_v16  ;;  %v3169_v16 = vld [vmem:[%s3459_s10] ss:$0 sm:$0xff] }
 0x7f2   :  { %v1111_v38 = vmul.f32 %v2669_v35, %v3047_v9 }
 0x7f3   :  { %v759_v10 = vpack.c.bf16 %v3122_v30, %v3122_v30  ;;  %v1119_v39 = vmul.f32 %v2902_v41, %v1110_v36 }
 0x7f4   :  { %v1120_v40 = vmul.f32 %v2902_v41, %v1111_v38  ;;  %v2671_v42 = vpop.eup %2670 }
 0x7f5   :  { %2442 = vmatmul.mubr.msk.bf16.vlgmr.msra.gmra.mxu1 %vm63_vm0, %v759_v10 }
 0x7f6   :  { %1208 = vmatpush1.bf16.msra.mxu1 %v2858_v22  ;;  %1231 = vmatprep.mubr.bf16.mxu1 %v2736_v25  ;;  %v3139_v22 = vadd.f32 %v2908_v46, %v1119_v39  ;;  %v3142_v9 = vadd.f32 %v2908_v46, %v1120_v40 }
 0x7f7   :  { %1209 = vmatprep.subr.bf16.mxu1 %v2863_v23  ;;  %v1112_v23 = vmul.f32 %v2671_v42, %v3062_v33 }
 0x7fa   :  { %1210 = vmatpush1.bf16.msra.mxu1 %v2870_v24  ;;  %v1131_v24 = vpack.c.bf16 %v3142_v9, %v3139_v22 }
 0x7fb   :  { %1211 = vmatprep.subr.bf16.mxu1 %v2877_v26  ;;  %v1121_v26 = vmul.f32 %v2902_v41, %v1112_v23  ;;  %v2604_v41 = vld [vmem:[%s3460_s11 + $0x8] sm:$0xff]  }
 0x7fe   :  { %1212 = vmatpush1.bf16.msra.mxu1 %v2883_v27  ;;  %v3152_v27 = vadd.f32 %v2908_v46, %v1121_v26 }
 0x7ff   :  { %1213 = vmatprep.subr.bf16.mxu1 %v2889_v28 }
 0x800   :  { %v1132_v28 = vpack.c.bf16 %v3152_v27, %v3152_v27 }
 0x802   :  { %1214 = vmatpush1.bf16.msra.mxu1 %v2895_v29  ;;  %v2603_v29 = vld [vmem:[%s3460_s11 + $0x10] sm:$0xff]  }
 0x803   :  { %2455 = vmatprep.subr.bf16.mxu0 %v2603_v29 }
 0x804   :  { %2456 = vmatpush3.bf16.msra.mxu0 %v2603_v29 }
 0x805   :  { %2258 = vmatmul.mubr.msk.bf16.vlgmr.msra.gmra.mxu1 %vm63_vm0, %v1131_v24  ;;  %2457 = vmatprep.subr.bf16.mxu0 %v2604_v41 }
 0x806   :  { %1241 = vmatprep.mubr.bf16.mxu1 %v2736_v25  ;;  %v2605_v25 = vld [vmem:[%s3460_s11] sm:$0xff]  }
 0x808   :  { %2458 = vmatpush3.bf16.msra.mxu0 %v2604_v41 }
 0x809   :  { %2459 = vmatprep.subr.bf16.mxu0 %v2605_v25 }
 0x80c   :  { %2460 = vmatpush3.bf16.msra.mxu0 %v2605_v25 }
 0x80d   :  { %2259 = vmatmul.mubr.msk.bf16.gmra.mxu1 %vm63_vm0, %v1132_v28 }
 0x8b5   :  { %v2443_v46 = vpop.f32.mrf.mxu1 }
 0x8b6   :  { %v848_v43 = vadd.f32 %v2443_v46, %v3169_v16 }
 0x8b7   :  { %v839_v33 = vpop.f32.mrf.mxu1 }
 0x8b8   :  { %v840_v45 = vadd.f32 %v3169_v16, %v839_v33  ;;  %v855_v47 = vmax.f32 %v848_v43, 0.0 }
 0x8b9   :  { %v2444_v44 = vpop.f32.mrf.mxu1 }
 0x8ba   :  { %v853_v48 = vmax.f32 %v840_v45, 0.0  ;;  %v857_v49 = vpack.c.bf16 %v855_v47, %v855_v47 }
 0x8bb   :  { %v842_v21 = vpop.f32.mrf.mxu1 }
 0x8bc   :  { %v843_v8 = vadd.f32 %v3169_v16, %v842_v21 }
 0x8be   :  { %v854_v31 = vmax.f32 %v843_v8, 0.0 }
 0x8c0   :  { %v856_v51 = vpack.c.bf16 %v854_v31, %v853_v48 }
 0x8c2   :  { %2461 = vmatprep.mubr.bf16.mxu0 %v856_v51 }
 0x8c3   :  { %2462 = vmatmul.mubr.bf16.vlgmr.msra.gmra.mxu0 %v857_v49 }
 0x8c5   :  { %v1233_v54 = vpop.f32.mrf.mxu1 }
 0x8c6   :  { %v1234_v53 = vadd.f32 %v1233_v54, %v1146_v55 }
 0x8c7   :  { %v1235_v50 = vpop.f32.mrf.mxu1 }
 0x8c8   :  { %v1236_v61 = vadd.f32 %v1235_v50, %v1150_v1 }
 0x8c9   :  { %v1237_v58 = vpop.f32.mrf.mxu1 }
 0x8ca   :  { %v1238_v60 = vadd.f32 %v1237_v58, %v1146_v55 }
 0x8cb   :  { %v1239_v62 = vpop.f32.mrf.mxu1 }
 0x8cc   :  { %v1250_v63 = vpack.c.bf16 %v1238_v60, %v1234_v53  ;;  %v1240_v57 = vadd.f32 %v1239_v62, %v1150_v1 }
 0x8cd   :  { %v1243_v0 = vpop.f32.mrf.mxu1 }
 0x8ce   :  { %v1244_v2 = vadd.f32 %v1243_v0, %v1146_v55  ;;  %1256 = vrot.lane.b32.xlu0 %v1250_v63, %s2737_s23  ;;  %2469 = vmatprep.mubr.msk.bf16.mxu1 %vm252_vm2, %v1250_v63  ;;  %v3189_v59 = vpack.c.bf16 %v1240_v57, %v1236_v61 }
 0x8cf   :  { %v1245_v4 = vpop.f32.mrf.mxu1 }
 0x8d0   :  { %v1252_v6 = vpack.c.bf16 %v1244_v2, %v1244_v2  ;;  %v1246_v7 = vadd.f32 %v1245_v4, %v1150_v1 }
 0x8d1   :  { %v1247_v11 = vpop.f32.mrf.mxu1 }
 0x8d2   :  { %v3183_v12 = vpack.c.bf16 %v1246_v7, %v1246_v7  ;;  %1258 = vrot.lane.b32.xlu1 %v1252_v6, %s2737_s23  ;;  %1417 = vrot.lane.b32.xlu0 %v1252_v6, %s2739_s25 }
 0x8d3   :  { %v1248_v14 = vpop.f32.mrf.mxu1 }
 0x8d4   :  { %v1362_v56 = vand.u32 %v3183_v12, %v2958_v32 }
 0x8d6   :  { %2473 = vmatprep.subr.bf16.mxu0 %v1362_v56  ;;  %1421 = vrot.lane.b32.xlu1 %v1252_v6, %s2738_s24 }
 0x8d7   :  { %2474 = vmatpush3.bf16.msra.mxu0 %v1362_v56 }
 0x8d8   :  { %2475 = vmatprep.subr.bf16.mxu0 %v3189_v59 }
 0x8da   :  { %1419 = vrot.lane.b32.xlu1 %v1250_v63, %s2738_s24 }
 0x8db   :  { %2476 = vmatpush3.bf16.msra.mxu0 %v3189_v59 }
 0x8de   :  { %1415 = vrot.lane.b32.xlu1 %v1250_v63, %s2739_s25 }
 0x940   :  { %v1257_v3 = vpop.permute.xlu0 %1256 }
 0x941   :  { %v1267_v34 = vsel %vm252_vm2, %v1257_v3, 0 }
 0x944   :  { %v1259_v15 = vpop.permute.xlu1 %1258  ;;  %v1418_v39 = vpop.permute.xlu0 %1417 }
 0x945   :  { %v1270_v17 = vsel %vm252_vm2, %v1259_v15, 0  ;;  %2565 = vmatprep.subr.msk.bf16.mxu1 %vm252_vm2, %v1259_v15 }
 0x946   :  { %2466 = vmatpush3.bf16.xpose.msra.mxu1 %v1270_v17 }
 0x947   :  { %2566 = vmatprep.subr.msk.bf16.mxu1 %vm252_vm2, %v1257_v3 }
 0x948   :  { %v1422_v20 = vpop.permute.xlu1 %1421 }
 0x949   :  { %v1433_v35 = vsel %vm252_vm2, %v1422_v20, 0 }
 0x94c   :  { %v1420_v10 = vpop.permute.xlu1 %1419 }
 0x94d   :  { %v1430_v38 = vsel %vm252_vm2, %v1420_v10, 0 }
 0x94e   :  { %2468 = vmatpush3.bf16.xpose.msra.mxu1 %v1267_v34 }
 0x94f   :  { %2567 = vmatprep.subr.msk.bf16.mxu1 %vm252_vm2, %v1422_v20 }
 0x950   :  { %v1416_v36 = vpop.permute.xlu1 %1415 }
 0x955   :  { %2470 = vmatmul.mubr.msk.bf16.vlgmr.msra.gmra.mxu1 %vm252_vm2, %v1252_v6 }
 0x956   :  { %2482 = vmatpush3.bf16.xpose.msra.mxu1 %v1433_v35  ;;  %2485 = vmatprep.mubr.msk.bf16.mxu1 %vm252_vm2, %v1416_v36 }
 0x957   :  { %2568 = vmatprep.subr.msk.bf16.mxu1 %vm252_vm2, %v1420_v10 }
 0x95e   :  { %2484 = vmatpush3.bf16.xpose.msra.mxu1 %v1430_v38 }
 0x965   :  { %2486 = vmatmul.mubr.msk.bf16.vlgmr.msra.gmra.mxu1 %vm252_vm2, %v1418_v39 }
 0x983   :  { %v3207_v40 = vpop.f32.mrf.mxu0 }
 0x985   :  { %v3209_v42 = vpop.f32.mrf.mxu0 }
 0x987   :  { %v2464_v23 = vpop.f32.mrf.mxu0 }
 0xa15   :  { %v2471_v24 = vpop.f32.mrf.mxu1 }
 0xa16   :  { %v1326_v46 = vsel %vm320_vm5, %v2471_v24, -inf }
 0xa17   :  { %v1306_v26 = vpop.f32.mrf.mxu1 }
 0xa18   :  { %v1320_v28 = vsel %vm313_vm4, %v1306_v26, -inf }
 0xa19   :  { %1321 = vmax.xlane.f32.xlu1 %v1320_v28  ;;  %v2472_v29 = vpop.f32.mrf.mxu1 }
 0xa1b   :  { %v1309_v41 = vpop.f32.mrf.mxu1 }
 0xa1c   :  { %v1323_v25 = vsel %vm313_vm4, %v1309_v41, -inf }
 0xa1d   :  { %1324 = vmax.xlane.f32.xlu0 %v1323_v25 }
 0xa21   :  { %1327 = vmax.xlane.f32.xlu0 %v1326_v46 }
 0xa25   :  { %v2487_v33 = vpop.f32.mrf.mxu1 }
 0xa26   :  { %v1489_v47 = vsel %vm320_vm5, %v2487_v33, -inf }
 0xa27   :  { %v1469_v43 = vpop.f32.mrf.mxu1 }
 0xa28   :  { %v1483_v44 = vsel %vm313_vm4, %v1469_v43, -inf }
 0xa29   :  { %v2488_v45 = vpop.f32.mrf.mxu1  ;;  %1484 = vmax.xlane.f32.xlu0 %v1483_v44 }
 0xa2b   :  { %v1472_v21 = vpop.f32.mrf.mxu1 }
 0xa2c   :  { %v1486_v8 = vsel %vm313_vm4, %v1472_v21, -inf }
 0xa2d   :  { %1487 = vmax.xlane.f32.xlu1 %v1486_v8  ;;  %1490 = vmax.xlane.f32.xlu0 %v1489_v47 }
 0xaa2   :  { %v1322_v48 = vpop.xlane.xlu1 %1321 }
 0xaa3   :  { %v1329_v49 = vsub.f32 %v1306_v26, %v1322_v48 }
 0xaa5   :  { %v1332_v50 = vmul.f32 1.442695, %v1329_v49  ;;  %v3232_v49 = vpop.f32.mrf.mxu0 }
 0xaa6   :  { %v1325_v31 = vpop.xlane.xlu0 %1324 }
 0xaa7   :  { %v1330_v51 = vsub.f32 %v1309_v41, %v1325_v31 }
 0xaa9   :  { %v1334_v52 = vmul.f32 1.442695, %v1330_v51 }
 0xaaa   :  { %v1328_v54 = vpop.xlane.xlu0 %1327 }
 0xaab   :  { %2672 = vpow2.f32 %v1334_v52  ;;  %v1331_v55 = vsub.f32 %v2471_v24, %v1328_v54 }
 0xaad   :  { %v1336_v58 = vmul.f32 1.442695, %v1331_v55  ;;  %v2606_v55 = vld [vmem:[%s3454_s5 + $0x18] sm:$0xff]  }
 0xaaf   :  { %2674 = vpow2.f32 %v1336_v58 }
 0xab0   :  { %2676 = vpow2.f32 %v1332_v50 }
 0xab2   :  { %v1485_v53 = vpop.xlane.xlu0 %1484 }
 0xab3   :  { %v1492_v60 = vsub.f32 %v1469_v43, %v1485_v53  ;;  %v2607_v53 = vld [vmem:[%s3454_s5 + $0x10] sm:$0xff]  }
 0xab5   :  { %v1495_v11 = vmul.f32 1.442695, %v1492_v60  ;;  %v2608_v60 = vld [vmem:[%s3454_s5 + $0x8] sm:$0xff]  }
 0xab6   :  { %v1488_v62 = vpop.xlane.xlu1 %1487  ;;  %v1491_v63 = vpop.xlane.xlu0 %1490 }
 0xab7   :  { %v1493_v0 = vsub.f32 %v1472_v21, %v1488_v62  ;;  %v1494_v1 = vsub.f32 %v2487_v33, %v1491_v63  ;;  %v2609_v62 = vld [vmem:[%s3454_s5] sm:$0xff]  }
 0xab8   :  { %v2673_v2 = vpop.eup %2672 }
 0xab9   :  { %v1497_v4 = vmul.f32 1.442695, %v1493_v0  ;;  %v1499_v6 = vmul.f32 1.442695, %v1494_v1  ;;  %v1341_v7 = vsel %vm313_vm4, %v2673_v2, 0.0 }
 0xaba   :  { %1342 = vadd.xlane.f32.xlu0 %v1341_v7 }
 0xabb   :  { %2678 = vpow2.f32 %v1497_v4 }
 0xabc   :  { %v2675_v57 = vpop.eup %2674  ;;  %2680 = vpow2.f32 %v1499_v6 }
 0xabd   :  { %v1344_v14 = vsel %vm320_vm5, %v2675_v57, 0.0  ;;  %v2677_v61 = vpop.eup %2676  ;;  %2682 = vpow2.f32 %v1495_v11 }
 0xabe   :  { %1345 = vadd.xlane.f32.xlu1 %v1344_v14  ;;  %v1338_v56 = vsel %vm313_vm4, %v2677_v61, 0.0 }
 0xac2   :  { %1339 = vadd.xlane.f32.xlu1 %v1338_v56 }
 0xac8   :  { %v2679_v15 = vpop.eup %2678 }
 0xac9   :  { %v2681_v17 = vpop.eup %2680  ;;  %v1504_v3 = vsel %vm313_vm4, %v2679_v15, 0.0 }
 0xaca   :  { %1505 = vadd.xlane.f32.xlu1 %v1504_v3  ;;  %v1507_v20 = vsel %vm320_vm5, %v2681_v17, 0.0  ;;  %v2683_v34 = vpop.eup %2682 }
 0xacb   :  { %1508 = vadd.xlane.f32.xlu0 %v1507_v20  ;;  %v1501_v10 = vsel %vm313_vm4, %v2683_v34, 0.0 }
 0xacf   :  { %1502 = vadd.xlane.f32.xlu0 %v1501_v10 }
 0xadb   :  { %1522 = vrot.lane.b32.xlu1 %v3183_v12, %s2739_s25 }
 0xae5   :  { %1520 = vrot.lane.b32.xlu0 %v3189_v59, %s2739_s25 }
 0xb43   :  { %v1343_v35 = vpop.xlane.xlu0 %1342 }
 0xb47   :  { %v1346_v36 = vpop.xlane.xlu1 %1345 }
 0xb48   :  { %2684 = vrcp.f32 %v1346_v36 }
 0xb49   :  { %2686 = vrcp.f32 %v1343_v35 }
 0xb4b   :  { %v1340_v38 = vpop.xlane.xlu1 %1339 }
 0xb4c   :  { %2688 = vrcp.f32 %v1340_v38 }
 0xb53   :  { %v1506_v39 = vpop.xlane.xlu1 %1505 }
 0xb54   :  { %v1509_v23 = vpop.xlane.xlu0 %1508 }
 0xb55   :  { %v2685_v24 = vpop.eup %2684  ;;  %2690 = vrcp.f32 %v1509_v23 }
 0xb56   :  { %v2687_v26 = vpop.eup %2686  ;;  %2692 = vrcp.f32 %v1506_v39  ;;  %v1352_v25 = vmul.f32 %v2685_v24, %v2675_v57 }
 0xb57   :  { %v1523_v28 = vpop.permute.xlu1 %1522  ;;  %v1351_v46 = vmul.f32 %v2687_v26, %v2673_v2 }
 0xb58   :  { %v1532_v29 = vand.u32 %v1523_v28, %v2958_v32  ;;  %v1503_v41 = vpop.xlane.xlu0 %1502  ;;  %v1354_v43 = vpack.c.bf16 %v1352_v25, %v1352_v25 }
 0xb59   :  { %v2689_v12 = vpop.eup %2688  ;;  %2694 = vrcp.f32 %v1503_v41 }
 0xb5a   :  { %2489 = vmatprep.subr.bf16.mxu0 %v1532_v29  ;;  %v1350_v59 = vmul.f32 %v2689_v12, %v2677_v61 }
 0xb5c   :  { %v1353_v33 = vpack.c.bf16 %v1351_v46, %v1350_v59  ;;  %v1521_v44 = vpop.permute.xlu0 %1520 }
 0xb5e   :  { %2477 = vmatprep.mubr.msk.bf16.mxu0 %vm313_vm4, %v1353_v33 }
 0xb5f   :  { %2478 = vmatmul.mubr.msk.bf16.vlgmr.msra.gmra.mxu0 %vm313_vm4, %v1354_v43 }
 0xb60   :  { %2490 = vmatpush3.bf16.msra.mxu0 %v1532_v29 }
 0xb61   :  { %2491 = vmatprep.subr.bf16.mxu0 %v1521_v44 }
 0xb62   :  { %v2691_v45 = vpop.eup %2690 }
 0xb63   :  { %v2693_v21 = vpop.eup %2692  ;;  %v1515_v8 = vmul.f32 %v2691_v45, %v2681_v17 }
 0xb64   :  { %2492 = vmatpush3.bf16.msra.mxu0 %v1521_v44  ;;  %v1514_v48 = vmul.f32 %v2693_v21, %v2679_v15 }
 0xb65   :  { %v1517_v51 = vpack.c.bf16 %v1515_v8, %v1515_v8  ;;  %2497 = vmatprep.subr.bf16.mxu0 %v2606_v55 }
 0xb66   :  { %v2695_v32 = vpop.eup %2694 }
 0xb67   :  { %v1513_v47 = vmul.f32 %v2695_v32, %v2683_v34 }
 0xb69   :  { %v1516_v31 = vpack.c.bf16 %v1514_v48, %v1513_v47 }
 0xb6b   :  { %2493 = vmatprep.mubr.msk.bf16.mxu0 %vm313_vm4, %v1516_v31 }
 0xb6c   :  { %2494 = vmatmul.mubr.msk.bf16.vlgmr.msra.gmra.mxu0 %vm313_vm4, %v1517_v51 }
 0xb6d   :  { %2498 = vmatpush3.bf16.msra.mxu0 %v2606_v55  ;;  %v2615_v55 = vld [vmem:[%s3460_s11 + $0x30] sm:$0xff]  }
 0xb6e   :  { %2499 = vmatprep.subr.bf16.mxu0 %v2607_v53 }
 0xb71   :  { %2500 = vmatpush3.bf16.msra.mxu0 %v2607_v53  ;;  %v2618_v53 = vld [vmem:[%s3460_s11 + $0x18] sm:$0xff]  }
 0xb72   :  { %2501 = vmatprep.subr.bf16.mxu0 %v2608_v60 }
 0xb75   :  { %2502 = vmatpush3.bf16.msra.mxu0 %v2608_v60 }
 0xb76   :  { %2503 = vmatprep.subr.bf16.mxu0 %v2609_v62 }
 0xb79   :  { %2504 = vmatpush3.bf16.msra.mxu0 %v2609_v62 }
 0xc1f   :  { %v2479_v52 = vpop.f32.mrf.mxu0 }
 0xc20   :  { %1414 = vst.msk [vmem:[#allocation2 + $0x10] sm:$0x1] %vm412_vm6, %v2479_v52  ;;  %v2613_v52 = vld [vmem:[%s3458_s9] sm:$0xff]  }
 0xc21   :  { %v1398_v54 = vpop.f32.mrf.mxu0 }
 0xc22   :  { %1412 = vst.msk [vmem:[#allocation2] sm:$0xff] %vm252_vm2, %v1398_v54  ;;  %v2614_v54 = vld [vmem:[%s3460_s11 + $0x38] sm:$0xff]  }
 0xc23   :  { %v2480_v50 = vpop.f32.mrf.mxu0  ;;  %2521 = vmatprep.subr.bf16.mxu0 %v2614_v54 }
 0xc24   :  { %v2616_v50 = vld [vmem:[%s3460_s11 + $0x28] sm:$0xff]  }
 0xc25   :  { %v1401_v58 = vpop.f32.mrf.mxu0 }
 0xc26   :  { %1413 = vst.msk [vmem:[#allocation2 + $0x8] sm:$0xff] %vm252_vm2, %v1401_v58  ;;  %v2617_v58 = vld [vmem:[%s3460_s11 + $0x20] sm:$0xff]  }
 0xc2c   :  { %v2495_v63 = vpop.f32.mrf.mxu0 }
 0xc2e   :  { %v1568_v0 = vpop.f32.mrf.mxu0 }
 0xc2f   :  { %1585 = vrot.lane.b32.xlu1 %v1568_v0, %s2738_s24 }
 0xc30   :  { %v2496_v1 = vpop.f32.mrf.mxu0 }
 0xc32   :  { %v1571_v2 = vpop.f32.mrf.mxu0 }
 0xc33   :  { %1587 = vrot.lane.b32.xlu1 %v1571_v2, %s2738_s24 }
 0xc37   :  { %1589 = vrot.lane.b32.xlu1 %v2495_v63, %s2738_s24 }
 0xca1   :  { %v1586_v4 = vpop.permute.xlu1 %1585 }
 0xca2   :  { %1594 = vst.msk [vmem:[#allocation2] sm:$0xff] %vm593_vm8, %v1586_v4 }
 0xca5   :  { %v1588_v6 = vpop.permute.xlu1 %1587 }
 0xca6   :  { %1595 = vst.msk [vmem:[#allocation2 + $0x8] sm:$0xff] %vm593_vm8, %v1588_v6 }
 0xca9   :  { %v1590_v7 = vpop.permute.xlu1 %1589  ;;  %v1597_v11 = vld [vmem:[#allocation2] sm:$0xff] }
 0xcaa   :  { %1596 = vst.msk [vmem:[#allocation2 + $0x10] sm:$0x1] %vm596_vm7, %v1590_v7 }
 0xcad   :  { %v1598_v57 = vld [vmem:[#allocation2 + $0x8] sm:$0xff] }
 0xcae   :  { %v1600_v14 = vpack.c.bf16 %v1598_v57, %v1597_v11 }
 0xcb0   :  { %2505 = vmatprep.mubr.msk.bf16.mxu0 %vm63_vm0, %v1600_v14 }
 0xcb1   :  { %v1599_v61 = vld [vmem:[#allocation2 + $0x10] sm:$0x1] }
 0xcb2   :  { %v1601_v56 = vpack.c.bf16 %v1599_v61, %v1599_v61 }
 0xcb4   :  { %2506 = vmatmul.mubr.msk.bf16.vlgmr.msra.gmra.mxu0 %vm63_vm0, %v1601_v56 }
 0xcb5   :  { %2522 = vmatpush3.bf16.msra.mxu0 %v2614_v54 }
 0xcb6   :  { %2523 = vmatprep.subr.bf16.mxu0 %v2615_v55 }
 0xcb9   :  { %2524 = vmatpush3.bf16.msra.mxu0 %v2615_v55 }
 0xcba   :  { %2525 = vmatprep.subr.bf16.mxu0 %v2616_v50 }
 0xcbd   :  { %2526 = vmatpush3.bf16.msra.mxu0 %v2616_v50 }
 0xcbe   :  { %2527 = vmatprep.subr.bf16.mxu0 %v2617_v58 }
 0xcc1   :  { %2528 = vmatpush3.bf16.msra.mxu0 %v2617_v58 }
 0xcc2   :  { %2529 = vmatprep.subr.bf16.mxu0 %v2618_v53 }
 0xcc5   :  { %2530 = vmatpush3.bf16.msra.mxu0 %v2618_v53 }
 0xd74   :  { %v2507_v15 = vpop.f32.mrf.mxu0 }
 0xd75   :  { %v1690_v3 = vadd.f32 %v2507_v15, %v3015_v37 }
 0xd76   :  { %v1681_v17 = vpop.f32.mrf.mxu0 }
 0xd77   :  { %v1682_v20 = vadd.f32 %v3015_v37, %v1681_v17  ;;  %v1697_v39 = vadd.f32 %v1690_v3, %v3152_v27 }
 0xd78   :  { %v2508_v34 = vpop.f32.mrf.mxu0 }
 0xd79   :  { %v1695_v10 = vadd.f32 %v1682_v20, %v3139_v22  ;;  %v1706_v26 = vsel %vm70_vm1, %v1697_v39, 0.0 }
 0xd7a   :  { %v1684_v35 = vpop.f32.mrf.mxu0 }
 0xd7b   :  { %v1685_v36 = vadd.f32 %v3015_v37, %v1684_v35  ;;  %v1700_v38 = vsel %vm63_vm0, %v1695_v10, 0.0  ;;  %v3271_v37 = vld [vmem:[%s3461_s12] ss:$0 sm:$0xff] }
 0xd7c   :  { %1701 = vadd.xlane.f32.xlu0 %v1700_v38  ;;  %v964_v59 = vadd.f32 %v3271_v37, %v3209_v42  ;;  %v967_v46 = vadd.f32 %v3271_v37, %v3232_v49  ;;  %v972_v32 = vadd.f32 %v3207_v40, %v3271_v37  ;;  %v2611_v49 = vld [vmem:[%s3458_s9 + $0x10] sm:$0xff]  }
 0xd7d   :  { %v1696_v23 = vadd.f32 %v1685_v36, %v3142_v9 }
 0xd7e   :  { %v3289_v47 = vadd.f32 %v964_v59, %v3112_v18  ;;  %v3292_v48 = vadd.f32 %v967_v46, %v3115_v19  ;;  %v3299_v40 = vadd.f32 %v972_v32, %v3122_v30  ;;  %v2610_v19 = vld [vmem:[%s3458_s9 + $0x18] sm:$0xff]   ;;  %v2612_v30 = vld [vmem:[%s3458_s9 + $0x8] sm:$0xff]  }
 0xd7f   :  { %v1703_v24 = vsel %vm63_vm0, %v1696_v23, 0.0  ;;  %2509 = vmatprep.subr.bf16.mxu1 %v2610_v19 }
 0xd80   :  { %1704 = vadd.xlane.f32.xlu1 %v1703_v24  ;;  %1707 = vadd.xlane.f32.xlu0 %v1706_v26  ;;  %v982_v31 = vsel %vm63_vm0, %v3289_v47, 0.0  ;;  %v985_v51 = vsel %vm63_vm0, %v3292_v48, 0.0  ;;  %v988_v18 = vsel %vm70_vm1, %v3299_v40, 0.0 }
 0xd81   :  { %2510 = vmatpush3.bf16.msra.mxu1 %v2610_v19 }
 0xd82   :  { %2511 = vmatprep.subr.bf16.mxu1 %v2611_v49 }
 0xd85   :  { %2512 = vmatpush3.bf16.msra.mxu1 %v2611_v49 }
 0xd86   :  { %2513 = vmatprep.subr.bf16.mxu1 %v2612_v30 }
 0xd89   :  { %2514 = vmatpush3.bf16.msra.mxu1 %v2612_v30 }
 0xd8a   :  { %2515 = vmatprep.subr.bf16.mxu1 %v2613_v52 }
 0xd8d   :  { %2516 = vmatpush3.bf16.msra.mxu1 %v2613_v52 }
 0xe05   :  { %v1702_v28 = vpop.xlane.xlu0 %1701 }
 0xe06   :  { %v1709_v29 = vmul.f32 0.015625, %v1702_v28 }
 0xe08   :  { %v3266_v41 = vsub.f32 %v1695_v10, %v1709_v29 }
 0xe09   :  { %v1705_v22 = vpop.xlane.xlu1 %1704  ;;  %v1708_v12 = vpop.xlane.xlu0 %1707 }
 0xe0a   :  { %v1710_v27 = vmul.f32 0.015625, %v1705_v22  ;;  %v1711_v25 = vmul.f32 0.015625, %v1708_v12  ;;  %v1715_v9 = vmul.f32 %v3266_v41, %v3266_v41 }
 0xe0c   :  { %v3279_v33 = vsub.f32 %v1696_v23, %v1710_v27  ;;  %v1714_v43 = vsub.f32 %v1697_v39, %v1711_v25  ;;  %v1718_v44 = vsel %vm63_vm0, %v1715_v9, 0.0  ;;  %v2619_v39 = vld [vmem:[%s3460_s11 + $0x10] sm:$0xff]  }
 0xe0d   :  { %1719 = vadd.xlane.f32.xlu0 %v1718_v44  ;;  %2531 = vmatprep.subr.bf16.mxu0 %v2619_v39 }
 0xe0e   :  { %v1716_v45 = vmul.f32 %v3279_v33, %v3279_v33  ;;  %v1717_v21 = vmul.f32 %v1714_v43, %v1714_v43  ;;  %2532 = vmatpush3.bf16.msra.mxu0 %v2619_v39 }
 0xe10   :  { %v1721_v8 = vsel %vm63_vm0, %v1716_v45, 0.0  ;;  %v1724_v42 = vsel %vm70_vm1, %v1717_v21, 0.0 }
 0xe11   :  { %1722 = vadd.xlane.f32.xlu0 %v1721_v8  ;;  %1725 = vadd.xlane.f32.xlu1 %v1724_v42 }
 0xe15   :  { %983 = vadd.xlane.f32.xlu0 %v982_v31  ;;  %986 = vadd.xlane.f32.xlu1 %v985_v51 }
 0xe19   :  { %989 = vadd.xlane.f32.xlu0 %v988_v18 }
 0xe96   :  { %v1720_v60 = vpop.xlane.xlu0 %1719 }
 0xe97   :  { %v1727_v62 = vmul.f32 0.015625, %v1720_v60 }
 0xe99   :  { %v1730_v63 = vadd.f32 1e-05, %v1727_v62 }
 0xe9a   :  { %v1726_v0 = vpop.xlane.xlu1 %1725  ;;  %v1723_v1 = vpop.xlane.xlu0 %1722 }
 0xe9b   :  { %2696 = vrsqrt.f32 %v1730_v63  ;;  %v1729_v2 = vmul.f32 0.015625, %v1726_v0  ;;  %v1728_v4 = vmul.f32 0.015625, %v1723_v1 }
 0xe9d   :  { %v1732_v6 = vadd.f32 1e-05, %v1729_v2  ;;  %v1731_v7 = vadd.f32 1e-05, %v1728_v4 }
 0xe9e   :  { %v984_v46 = vpop.xlane.xlu0 %983 }
 0xe9f   :  { %2698 = vrsqrt.f32 %v1732_v6  ;;  %v991_v45 = vmul.f32 0.015625, %v984_v46 }
 0xea0   :  { %2700 = vrsqrt.f32 %v1731_v7 }
 0xea1   :  { %v994_v18 = vsub.f32 %v3289_v47, %v991_v45 }
 0xea2   :  { %v990_v42 = vpop.xlane.xlu0 %989 }
 0xea3   :  { %v993_v49 = vmul.f32 0.015625, %v990_v42  ;;  %v997_v62 = vmul.f32 %v994_v18, %v994_v18 }
 0xea5   :  { %v996_v58 = vsub.f32 %v3299_v40, %v993_v49 }
 0xea8   :  { %v2697_v11 = vpop.eup %2696 }
 0xea9   :  { %v1736_v57 = vmul.f32 %v2697_v11, %v3266_v41 }
 0xeab   :  { %v1745_v17 = vmul.f32 %v3100_v5, %v1736_v57 }
 0xeac   :  { %v2699_v14 = vpop.eup %2698 }
 0xead   :  { %v2701_v61 = vpop.eup %2700  ;;  %v1738_v56 = vmul.f32 %v2699_v14, %v1714_v43  ;;  %v1754_v10 = vadd.f32 %v3107_v13, %v1745_v17 }
 0xeae   :  { %v1737_v15 = vmul.f32 %v2701_v61, %v3279_v33  ;;  %v987_v33 = vpop.xlane.xlu1 %986 }
 0xeaf   :  { %v1747_v3 = vmul.f32 %v3100_v5, %v1738_v56  ;;  %v992_v44 = vmul.f32 0.015625, %v987_v33 }
 0xeb0   :  { %v1746_v20 = vmul.f32 %v3100_v5, %v1737_v15  ;;  %v2620_v5 = vld [vmem:[%s3460_s11 + $0x8] sm:$0xff]  }
 0xeb1   :  { %v1756_v34 = vadd.f32 %v3107_v13, %v1747_v3  ;;  %2533 = vmatprep.subr.bf16.mxu0 %v2620_v5  ;;  %v995_v51 = vsub.f32 %v3292_v48, %v992_v44  ;;  %v1000_v48 = vsel %vm63_vm0, %v997_v62, 0.0  ;;  %v2627_v62 = vld [vmem:[%s3464_s15 + $0x10] sm:$0xff]  }
 0xeb2   :  { %v1755_v35 = vadd.f32 %v3107_v13, %v1746_v20  ;;  %2534 = vmatpush3.bf16.msra.mxu0 %v2620_v5  ;;  %v2621_v13 = vld [vmem:[%s3460_s11] sm:$0xff]  }
 0xeb3   :  { %v1758_v36 = vpack.c.bf16 %v1756_v34, %v1756_v34  ;;  %2535 = vmatprep.subr.bf16.mxu0 %v2621_v13  ;;  %v998_v50 = vmul.f32 %v995_v51, %v995_v51 }
 0xeb4   :  { %v1757_v38 = vpack.c.bf16 %v1755_v35, %v1754_v10 }
 0xeb5   :  { %v1003_v47 = vsel %vm63_vm0, %v998_v50, 0.0  ;;  %v2623_v50 = vld [vmem:[%s3464_s15 + $0x30] sm:$0xff]  }
 0xeb6   :  { %2517 = vmatprep.mubr.msk.bf16.mxu1 %vm63_vm0, %v1757_v38  ;;  %2536 = vmatpush3.bf16.msra.mxu0 %v2621_v13 }
 0xeb7   :  { %2518 = vmatmul.mubr.msk.bf16.vlgmr.msra.gmra.mxu1 %vm63_vm0, %v1758_v36 }
 0xf77   :  { %v2519_v23 = vpop.f32.mrf.mxu1 }
 0xf78   :  { %v1847_v26 = vadd.f32 %v2519_v23, %v3169_v16 }
 0xf79   :  { %v1838_v24 = vpop.f32.mrf.mxu1 }
 0xf7a   :  { %v1839_v29 = vadd.f32 %v3169_v16, %v1838_v24  ;;  %v1854_v12 = vmax.f32 %v1847_v26, 0.0  ;;  %v3382_v24 = vld [vmem:[%s3462_s13] ss:$0 sm:$0xff] }
 0xf7b   :  { %v2520_v28 = vpop.f32.mrf.mxu1 }
 0xf7c   :  { %v1852_v27 = vmax.f32 %v1839_v29, 0.0  ;;  %v1856_v59 = vpack.c.bf16 %v1854_v12, %v1854_v12 }
 0xf7d   :  { %v1841_v41 = vpop.f32.mrf.mxu1 }
 0xf7e   :  { %v1842_v22 = vadd.f32 %v3169_v16, %v1841_v41  ;;  %v3387_v41 = vld [vmem:[%s3463_s14] ss:$0 sm:$0xff] }
 0xf80   :  { %v1853_v25 = vmax.f32 %v1842_v22, 0.0 }
 0xf82   :  { %v1855_v9 = vpack.c.bf16 %v1853_v25, %v1852_v27 }
 0xf84   :  { %2537 = vmatprep.mubr.bf16.mxu0 %v1855_v9 }
 0xf85   :  { %2538 = vmatmul.mubr.bf16.vlgmr.msra.gmra.mxu0 %v1856_v59 }
0x1045   :  { %v2539_v43 = vpop.f32.mrf.mxu0 }
0x1046   :  { %v1971_v32 = vadd.f32 %v2539_v43, %v3271_v37 }
0x1047   :  { %v1962_v21 = vpop.f32.mrf.mxu0 }
0x1048   :  { %v1963_v8 = vadd.f32 %v3271_v37, %v1962_v21  ;;  %v1978_v54 = vadd.f32 %v1971_v32, %v1756_v34 }
0x1049   :  { %v2540_v31 = vpop.f32.mrf.mxu0 }
0x104a   :  { %v1976_v16 = vadd.f32 %v1963_v8, %v1754_v10  ;;  %v1987_v60 = vsel %vm70_vm1, %v1978_v54, 0.0 }
0x104b   :  { %v1965_v19 = vpop.f32.mrf.mxu0 }
0x104c   :  { %v1966_v30 = vadd.f32 %v3271_v37, %v1965_v19  ;;  %v1981_v52 = vsel %vm63_vm0, %v1976_v16, 0.0  ;;  %v999_v37 = vmul.f32 %v996_v58, %v996_v58 }
0x104d   :  { %1982 = vadd.xlane.f32.xlu1 %v1981_v52 }
0x104e   :  { %v1977_v55 = vadd.f32 %v1966_v30, %v1755_v35  ;;  %v1006_v63 = vsel %vm70_vm1, %v999_v37, 0.0 }
0x1050   :  { %v1984_v53 = vsel %vm63_vm0, %v1977_v55, 0.0 }
0x1051   :  { %1985 = vadd.xlane.f32.xlu0 %v1984_v53  ;;  %1988 = vadd.xlane.f32.xlu1 %v1987_v60  ;;  %v2625_v53 = vld [vmem:[%s3464_s15 + $0x20] sm:$0xff]   ;;  %v2626_v60 = vld [vmem:[%s3464_s15 + $0x18] sm:$0xff]  }
0x1055   :  { %1004 = vadd.xlane.f32.xlu1 %v1003_v47  ;;  %1001 = vadd.xlane.f32.xlu0 %v1000_v48 }
0x1059   :  { %1007 = vadd.xlane.f32.xlu0 %v1006_v63 }
0x10d6   :  { %v1983_v0 = vpop.xlane.xlu1 %1982 }
0x10d7   :  { %v1990_v1 = vmul.f32 0.015625, %v1983_v0 }
0x10d9   :  { %v3364_v40 = vsub.f32 %v1976_v16, %v1990_v1 }
0x10da   :  { %v1989_v2 = vpop.xlane.xlu1 %1988  ;;  %v1986_v4 = vpop.xlane.xlu0 %1985 }
0x10db   :  { %v1992_v6 = vmul.f32 0.015625, %v1989_v2  ;;  %v1991_v7 = vmul.f32 0.015625, %v1986_v4  ;;  %v1996_v11 = vmul.f32 %v3364_v40, %v3364_v40 }
0x10dd   :  { %v3368_v57 = vsub.f32 %v1978_v54, %v1992_v6  ;;  %v3370_v14 = vsub.f32 %v1977_v55, %v1991_v7  ;;  %v1999_v61 = vsel %vm63_vm0, %v1996_v11, 0.0  ;;  %v2622_v54 = vld [vmem:[%s3464_s15 + $0x38] sm:$0xff]   ;;  %v2740_v55 = vmov 0.0  }
0x10de   :  { %2000 = vadd.xlane.f32.xlu1 %v1999_v61  ;;  %v1005_v56 = vpop.xlane.xlu1 %1004  ;;  %v1002_v15 = vpop.xlane.xlu0 %1001  ;;  %2541 = vmatprep.subr.bf16.mxu1 %v2740_v55 }
0x10df   :  { %v1010_v17 = vmul.f32 0.015625, %v1005_v56  ;;  %v1009_v3 = vmul.f32 0.015625, %v1002_v15  ;;  %v1998_v20 = vmul.f32 %v3368_v57, %v3368_v57  ;;  %v1997_v34 = vmul.f32 %v3370_v14, %v3370_v14  ;;  %2542 = vmatpush3.bf16.msra.mxu1 %v2622_v54  ;;  %2557 = vmatprep.mubr.msk.bf16.mxu1 %vm2741_vm11, %v2740_v55 }
0x10e0   :  { %2543 = vmatprep.subr.bf16.mxu1 %v2740_v55 }
0x10e1   :  { %v1013_v10 = vadd.f32 1e-05, %v1010_v17  ;;  %v1012_v35 = vadd.f32 1e-05, %v1009_v3  ;;  %v2005_v36 = vsel %vm70_vm1, %v1998_v20, 0.0  ;;  %v2002_v38 = vsel %vm63_vm0, %v1997_v34, 0.0 }
0x10e2   :  { %2006 = vadd.xlane.f32.xlu1 %v2005_v36  ;;  %2003 = vadd.xlane.f32.xlu0 %v2002_v38  ;;  %v1008_v39 = vpop.xlane.xlu0 %1007 }
0x10e3   :  { %2702 = vrsqrt.f32 %v1013_v10  ;;  %v1011_v5 = vmul.f32 0.015625, %v1008_v39  ;;  %2544 = vmatpush3.bf16.msra.mxu1 %v2623_v50 }
0x10e4   :  { %2704 = vrsqrt.f32 %v1012_v35  ;;  %2545 = vmatprep.subr.bf16.mxu1 %v2740_v55 }
0x10e5   :  { %v1014_v13 = vadd.f32 1e-05, %v1011_v5 }
0x10e7   :  { %2706 = vrsqrt.f32 %v1014_v13 }
0x10f0   :  { %v2703_v23 = vpop.eup %2702 }
0x10f1   :  { %v2705_v26 = vpop.eup %2704  ;;  %v1019_v28 = vmul.f32 %v2703_v23, %v995_v51 }
0x10f2   :  { %v1018_v29 = vmul.f32 %v2705_v26, %v994_v18 }
0x10f3   :  { %v1028_v22 = vmul.f32 %v3382_v24, %v1019_v28  ;;  %v2628_v28 = vld [vmem:[%s3464_s15 + $0x8] sm:$0xff]  }
0x10f4   :  { %v2707_v12 = vpop.eup %2706  ;;  %v1027_v27 = vmul.f32 %v3382_v24, %v1018_v29 }
0x10f5   :  { %v1020_v25 = vmul.f32 %v2707_v12, %v996_v58  ;;  %v1037_v9 = vadd.f32 %v3387_v41, %v1028_v22  ;;  %v2624_v58 = vld [vmem:[%s3464_s15 + $0x28] sm:$0xff]  }
0x10f6   :  { %v1036_v59 = vadd.f32 %v3387_v41, %v1027_v27  ;;  %2546 = vmatpush3.bf16.msra.mxu1 %v2624_v58 }
0x10f7   :  { %v1029_v46 = vmul.f32 %v3382_v24, %v1020_v25  ;;  %v1044_v33 = vrot.slane %v1037_v9, 1  ;;  %2547 = vmatprep.subr.bf16.mxu1 %v2740_v55 }
0x10f8   :  { %v1043_v43 = vrot.slane %v1036_v59, 1  ;;  %1061 = vst.msk [vmem:[#allocation3] sm:$0x1] %vm70_vm1, %v1036_v59 }
0x10f9   :  { %v1038_v44 = vadd.f32 %v3387_v41, %v1029_v46 }
0x10fa   :  { %v1045_v45 = vsel %vm1042_vm9, %v1043_v43, %v1044_v33  ;;  %2548 = vmatpush3.bf16.msra.mxu1 %v2625_v53  ;;  %v2295_v43 = vld [vmem:[%s3465_s16] ss:$0 sm:$0xff] }
0x10fb   :  { %v1046_v21 = vrot.slane %v1038_v44, 1  ;;  %v1050_v8 = vsel %vm63_vm0, %v1045_v45, 0.0  ;;  %2549 = vmatprep.subr.bf16.mxu1 %v2740_v55 }
0x10fd   :  { %v1047_v32 = vsel %vm1042_vm9, %v1044_v33, %v1046_v21 }
0x10fe   :  { %v1051_v42 = vsel %vm63_vm0, %v1047_v32, 0.0  ;;  %2550 = vmatpush3.bf16.msra.mxu1 %v2626_v60 }
0x10ff   :  { %v1052_v31 = vadd.f32 %v1051_v42, %v1050_v8  ;;  %2551 = vmatprep.subr.bf16.mxu1 %v2740_v55 }
0x1101   :  { %v1053_v16 = vrot.slane %v1052_v31, 4 }
0x1102   :  { %2552 = vmatpush3.bf16.msra.mxu1 %v2627_v62 }
0x1103   :  { %v1054_v51 = vadd.f32 %v1053_v16, %v1052_v31  ;;  %2553 = vmatprep.subr.bf16.mxu1 %v2740_v55 }
0x1105   :  { %v1055_v18 = vrot.slane %v1054_v51, 2 }
0x1106   :  { %2554 = vmatpush3.bf16.msra.mxu1 %v2628_v28 }
0x1107   :  { %v1056_v19 = vadd.f32 %v1055_v18, %v1054_v51  ;;  %2555 = vmatprep.subr.bf16.mxu1 %v2740_v55 }
0x1109   :  { %v1057_v49 = vrot.slane %v1056_v19, 1 }
0x110b   :  { %v1058_v30 = vadd.f32 %v1057_v49, %v1056_v19 }
0x110d   :  { %v1060_v52 = vmul.f32 0.0625, %v1058_v30 }
0x110f   :  { %1063 = vrot.lane.b32.xlu0 %v1060_v52, %s2737_s23 }
0x1167   :  { %v2001_v47 = vpop.xlane.xlu1 %2000 }
0x1168   :  { %v2008_v48 = vmul.f32 0.015625, %v2001_v47 }
0x116a   :  { %v2011_v37 = vadd.f32 1e-05, %v2008_v48 }
0x116b   :  { %v2007_v63 = vpop.xlane.xlu1 %2006  ;;  %v2004_v0 = vpop.xlane.xlu0 %2003 }
0x116c   :  { %2708 = vrsqrt.f32 %v2011_v37  ;;  %v2010_v1 = vmul.f32 0.015625, %v2007_v63  ;;  %v2009_v2 = vmul.f32 0.015625, %v2004_v0 }
0x116e   :  { %v2013_v4 = vadd.f32 1e-05, %v2010_v1  ;;  %v2012_v6 = vadd.f32 1e-05, %v2009_v2 }
0x1170   :  { %2710 = vrsqrt.f32 %v2013_v4 }
0x1171   :  { %2712 = vrsqrt.f32 %v2012_v6 }
0x1179   :  { %v2709_v7 = vpop.eup %2708 }
0x117a   :  { %v2017_v11 = vmul.f32 %v2709_v7, %v3364_v40 }
0x117c   :  { %v2026_v61 = vmul.f32 %v3382_v24, %v2017_v11 }
0x117d   :  { %v2711_v56 = vpop.eup %2710 }
0x117e   :  { %v2713_v15 = vpop.eup %2712  ;;  %v2019_v17 = vmul.f32 %v2711_v56, %v3368_v57  ;;  %v2035_v3 = vadd.f32 %v3387_v41, %v2026_v61 }
0x117f   :  { %v2018_v20 = vmul.f32 %v2713_v15, %v3370_v14 }
0x1180   :  { %v2028_v34 = vmul.f32 %v3382_v24, %v2019_v17  ;;  %2058 = vst.msk [vmem:[#allocation3 + $0x1] sm:$0x1] %vm70_vm1, %v2035_v3  ;;  %v2041_v57 = vrot.slane %v2035_v3, 1 }
0x1181   :  { %v2027_v10 = vmul.f32 %v3382_v24, %v2018_v20  ;;  %v1064_v35 = vpop.permute.xlu0 %1063 }
0x1182   :  { %1067 = vst.msk [vmem:[#allocation3] sm:$0x1] %vm1066_vm10, %v1064_v35  ;;  %v2037_v40 = vadd.f32 %v3387_v41, %v2028_v34 }
0x1183   :  { %v2036_v36 = vadd.f32 %v3387_v41, %v2027_v10  ;;  %v2629_v41 = vld [vmem:[%s3464_s15] sm:$0xff]   ;;  %s2742_s15 = smov [#allocation4]  }
0x1184   :  { %v2044_v38 = vrot.slane %v2037_v40, 1  ;;  %2556 = vmatpush3.bf16.msra.mxu1 %v2629_v41  ;;  %s2187_s0 = sshll.u32 %s2742_s15, 4  ;;  %s2188_s0 = int_to_ptr.vmem [resolvable:$true] %s2187_s0 }
0x1185   :  { %v2042_v39 = vrot.slane %v2036_v36, 1  ;;  %p2719_p1 = scmp.lt.s32.totalorder %s2188_s0, %s2188_s0 }
0x1187   :  { %v2043_v5 = vsel %vm1042_vm9, %v2041_v57, %v2042_v39  ;;  %v2045_v14 = vsel %vm1042_vm9, %v2042_v39, %v2044_v38 }
0x1188   :  { %v2048_v13 = vsel %vm63_vm0, %v2043_v5, 0.0  ;;  %v2049_v23 = vsel %vm63_vm0, %v2045_v14, 0.0 }
0x1189   :  { %v2050_v26 = vadd.f32 %v2049_v23, %v2048_v13 }
0x118b   :  { %v2051_v24 = vrot.slane %v2050_v26, 4 }
0x118d   :  { %v2052_v29 = vadd.f32 %v2051_v24, %v2050_v26 }
0x118f   :  { %v2053_v22 = vrot.slane %v2052_v29, 2 }
0x1191   :  { %v2054_v12 = vadd.f32 %v2053_v22, %v2052_v29 }
0x1193   :  { %v2055_v27 = vrot.slane %v2054_v12, 1 }
0x1195   :  { %v2056_v25 = vadd.f32 %v2055_v27, %v2054_v12 }
0x1197   :  { %v2057_v9 = vmul.f32 0.0625, %v2056_v25 }
0x1199   :  { %2060 = vrot.lane.b32.xlu1 %v2057_v9, %s2737_s23  ;;  %s2714_s23 = scalar_lea.vmem %s2188_s0, 32 }
0x119a   :  { %p2715_p0 = scmp.ne.s32.totalorder %s2188_s0, %s2714_s23  ;;  %p2720_p2 = scmp.lt.s32.totalorder %s2714_s23, %s2714_s23 }
0x119c   :  { %p2721_p3 = por %p2720_p2, %p2719_p1 }
0x119e   :  { %p2722_p4 = pnand %p2721_p3, %p2715_p0 }
0x120b   :  { %v2061_v59 = vpop.permute.xlu1 %2060 }
0x120c   :  { %2063 = vst.msk [vmem:[#allocation3 + $0x1] sm:$0x1] %vm1066_vm10, %v2061_v59 }
0x1213   :  { %v2064_v46 = vld [vmem:[#allocation3] sm:$0x3] }
0x1214   :  { %v2065_v33 = vpack.c.bf16 %v2064_v46, %v2064_v46 }
0x1216   :  { %2558 = vmatmul.mubr.bf16.vlgmr.msra.gmra.mxu1 %v2065_v33 }
0x12d6   :  { %v2171_v44 = vpop.f32.mrf.mxu1 }
0x12d7   :  { %v2172_v45 = vadd.f32 %v2295_v43, %v2171_v44 }
0x12d8   :  { %v2559_v21 = vpop.f32.mrf.mxu1 }
0x12d9   :  { %v2177_v32 = vmax.f32 %v2172_v45, 0.0 }
0x12da   :  { %v2174_v8 = vpop.f32.mrf.mxu1 }
0x12db   :  { %2178 = vst.msk [vmem:[#allocation4] sm:$0x1] %vm412_vm6, %v2177_v32 }
0x12dc   :  { %2181 = vst.msk [vmem:[#allocation4] sm:$0x2] %vm2180_vm12, %v2177_v32  ;;  %v2560_v42 = vpop.f32.mrf.mxu1 }
0x12dd   :  { %2725 = shalt.err (!%p2722_p4)
}
0x12de   :  { %s2743_s16 = smov 16   ;;  %s2744_s30 = smov 1  }
0x12df   :  { %2193 = dma.vmem_to_hbm [thread:$0]  %s2188_s0, 32, %s3466_s17, [#allocation5], %s2743_s16, %s2743_s16, %s2744_s30  }
0x12e0   :  { %2734 = dma.done.wait [#allocation5], 32  }
0x12e1   :  { %2735 = vsyncadd [#allocation5], 4294967264 }
0x12e2   :  { %2197 = vsyncpa [#allocation5], 1 }

</bundles_post_ra>
